<compile_context>
chip_gen: v7x
topology: tpu7x:2x2x1
jax: 0.10.0
libtpu: 0.0.40
codegen_flags: <defaults>
</compile_context>

<pallas_src>
import numpy as np
import jax
import jax.numpy as jnp
from jax.experimental import pallas as pl
from jax.experimental.pallas import tpu as pltpu

# ---------------- configuration (mirrors SAINet defaults) ----------------
CH_IN = 3
CH_OUT = 3            # channel_split_num of every inv block
DOWN_NUM = 2
E_BLOCKS = 5
V_BLOCKS = 3
CLAMP = 1.0

CUR_CH = CH_IN * (4 ** DOWN_NUM)   # 48 channels after 2 Haar downsamplings
S1 = CH_OUT                        # 3
S2 = CUR_CH - CH_OUT               # 45

TILE_PIX = 512                     # pixels (lanes) per grid step; 512-2048 ok


def _round_up(x, m):
    return ((x + m - 1) // m) * m


def _sigmoid(x):
    return 1.0 / (1.0 + jnp.exp(-x))


# =============== fused 2-level Haar as a constant (48, 48) matrix =========
def _haar_np(x):
    """Numpy mirror of the reference Haar downsampling (NCHW)."""
    B, C, H, W = x.shape
    xr = x.reshape(B, C, H // 2, 2, W // 2, 2)
    a = xr[:, :, :, 0, :, 0]
    b = xr[:, :, :, 0, :, 1]
    c = xr[:, :, :, 1, :, 0]
    d = xr[:, :, :, 1, :, 1]
    comps = np.stack([a + b + c + d, a - b + c - d,
                      a + b - c - d, a - b - c + d], axis=1) * 0.25
    return comps.reshape(B, 4 * C, H // 2, W // 2)


def build_haar_matrix(c_in=CH_IN, down_num=DOWN_NUM):
    """(C*4^d, C*4^d) matrix mapping phase-major rows -> SAINet channel order.

    Phase row index for pixel (i, j) of the 2^d x 2^d patch, channel c is
    (i * 2^d + j) * c_in + c.  Built by pushing a basis through the reference
    Haar transform, so it is exact by construction (entries are +-1/16).
    """
    pw = 2 ** down_num
    n = c_in * pw * pw
    basis = np.eye(n, dtype=np.float64).reshape(n, pw, pw, c_in)
    basis = basis.transpose(0, 3, 1, 2)            # (n, C, pw, pw)
    out = basis
    for _ in range(down_num):
        out = _haar_np(out)                        # (n, n, 1, 1) at the end
    return jnp.asarray(out[:, :, 0, 0].T, dtype=jnp.float32)


# ==========================  the fused kernel  ============================
def sainet_kernel(ph_ref, m_ref, weEF_ref, beEF_ref, weHG_ref, beHG_ref,
                  wvF_ref, bvF_ref, wvHG_ref, bvHG_ref, y_ref, lr_ref):
    # ph_ref: (48, T) phase-major rows of one pixel tile (channel-major).
    # Fused double Haar: one (48,48) @ (48,T) MXU matmul.
    xf = jnp.dot(m_ref[...], ph_ref[...], preferred_element_type=jnp.float32)
    x1 = xf[:S1, :]           # (3,  T)
    x2 = xf[S1:, :]           # (45, T)
    lr = x1

    # EnhancedInvBlock x E_BLOCKS (E|F and H|G fused into single matmuls)
    for j in range(E_BLOCKS):
        ef = jnp.dot(weEF_ref[j], x2,
                     preferred_element_type=jnp.float32) + beEF_ref[j]  # (6,T)
        LR = x1 + ef[:S1, :]
        y1 = LR - ef[S1:, :]
        hg = jnp.dot(weHG_ref[j], y1,
                     preferred_element_type=jnp.float32) + beHG_ref[j]  # (90,T)
        s = CLAMP * jnp.tanh(0.5 * hg[:S2, :])    # == clamp*(sigmoid(h)*2-1)
        y2 = x2 * jnp.exp(s) + hg[S2:, :]
        x1, x2 = y1, y2
        if j == E_BLOCKS - 1:
            lr = LR                                # self.down_operations[-1].LR

    # VanillaInvBlock x V_BLOCKS (H|G fused)
    for j in range(V_BLOCKS):
        f = jnp.dot(wvF_ref[j], x2,
                    preferred_element_type=jnp.float32) + bvF_ref[j]    # (3,T)
        y1 = x1 + f
        hg = jnp.dot(wvHG_ref[j], y1,
                     preferred_element_type=jnp.float32) + bvHG_ref[j]  # (90,T)
        s = CLAMP * jnp.tanh(0.5 * hg[:S2, :])
        y2 = x2 * jnp.exp(s) + hg[S2:, :]
        x1, x2 = y1, y2

    # single lane-dense stores
    y_ref[...] = jnp.concatenate([x1, x2], axis=0)   # (48, T)
    lr_ref[...] = lr                                 # (3,  T)


def _const_spec(a):
    zeros = (0,) * a.ndim
    return pl.BlockSpec(a.shape, lambda b, t, _z=zeros: _z)


# ==========================  full forward  ================================
def sainet_forward(x, kernel_params):
    (m_haar, weEF, beEF, weHG, beHG, wvF, bvF, wvHG, bvHG) = kernel_params
    B, C, H, W = x.shape
    F4 = 2 ** DOWN_NUM                      # 4
    Hq, Wq = H // F4, W // F4
    P = Hq * Wq

    # One cheap XLA pass over the *3-channel* input: phase-major rows
    # row index = (i*4 + j)*C + c  for position (i, j) in the 4x4 patch.
    ph = x.reshape(B, C, Hq, F4, Wq, F4)
    ph = jnp.transpose(ph, (0, 3, 5, 1, 2, 4)).reshape(B, CUR_CH, P)

    T = min(TILE_PIX, _round_up(P, 128))
    Pp = _round_up(P, T)
    if Pp != P:
        ph = jnp.pad(ph, ((0, 0), (0, 0), (0, Pp - P)))

    params = (m_haar, weEF, beEF, weHG, beHG, wvF, bvF, wvHG, bvHG)
    in_specs = [pl.BlockSpec((None, CUR_CH, T), lambda b, t: (b, 0, t))]
    in_specs += [_const_spec(a) for a in params]
    out_specs = [pl.BlockSpec((None, CUR_CH, T), lambda b, t: (b, 0, t)),
                 pl.BlockSpec((None, S1, T), lambda b, t: (b, 0, t))]
    out_shape = [jax.ShapeDtypeStruct((B, CUR_CH, Pp), jnp.float32),
                 jax.ShapeDtypeStruct((B, S1, Pp), jnp.float32)]

    y, lr = pl.pallas_call(
        sainet_kernel,
        out_shape=out_shape,
        grid=(B, Pp // T),
        in_specs=in_specs,
        out_specs=out_specs,
        compiler_params=pltpu.CompilerParams(
            dimension_semantics=("parallel", "parallel")),
    )(ph, *params)

    y = y[:, :, :P].reshape(B, CUR_CH, Hq, Wq)       # NCHW, free reshape
    lr = lr[:, :, :P].reshape(B, S1, Hq, Wq)
    return y, lr


# =====================  deterministic parameter init  =====================
def init_raw_params(key):
    n_sub = E_BLOCKS * 4 + V_BLOCKS * 3
    keys = list(jax.random.split(key, n_sub))
    it = iter(keys)

    def sub(c_in, c_out):
        k1, k2 = jax.random.split(next(it))
        w = 0.1 * jax.random.normal(k1, (c_in, c_out), jnp.float32)
        b = 0.1 * jax.random.normal(k2, (1, c_out), jnp.float32)
        return w, b

    weE, beE, weF, beF, weH, beH, weG, beG = ([] for _ in range(8))
    for _ in range(E_BLOCKS):
        w, b = sub(S2, S1); weE.append(w); beE.append(b)
        w, b = sub(S2, S1); weF.append(w); beF.append(b)
        w, b = sub(S1, S2); weH.append(w); beH.append(b)
        w, b = sub(S1, S2); weG.append(w); beG.append(b)
    wvF, bvF, wvH, bvH, wvG, bvG = ([] for _ in range(6))
    for _ in range(V_BLOCKS):
        w, b = sub(S2, S1); wvF.append(w); bvF.append(b)
        w, b = sub(S1, S2); wvH.append(w); bvH.append(b)
        w, b = sub(S1, S2); wvG.append(w); bvG.append(b)

    stk = jnp.stack
    return dict(weE=stk(weE), beE=stk(beE), weF=stk(weF), beF=stk(beF),
                weH=stk(weH), beH=stk(beH), weG=stk(weG), beG=stk(beG),
                wvF=stk(wvF), bvF=stk(bvF), wvH=stk(wvH), bvH=stk(bvH),
                wvG=stk(wvG), bvG=stk(bvG))


def pack_kernel_params(p):
    """Channel-major (out, in) weights; fuse subnets that share an input."""
    tr = lambda w: jnp.swapaxes(w, -1, -2)    # (n, in, out) -> (n, out, in)
    col = lambda b: jnp.swapaxes(b, -1, -2)   # (n, 1, out)  -> (n, out, 1)
    weEF = jnp.concatenate([tr(p['weE']), tr(p['weF'])], axis=1)   # (5, 6, 45)
    beEF = jnp.concatenate([col(p['beE']), col(p['beF'])], axis=1)  # (5, 6, 1)
    weHG = jnp.concatenate([tr(p['weH']), tr(p['weG'])], axis=1)   # (5, 90, 3)
    beHG = jnp.concatenate([col(p['beH']), col(p['beG'])], axis=1)  # (5, 90, 1)
    wvF = tr(p['wvF'])                                              # (3, 3, 45)
    bvF = col(p['bvF'])                                             # (3, 3, 1)
    wvHG = jnp.concatenate([tr(p['wvH']), tr(p['wvG'])], axis=1)   # (3, 90, 3)
    bvHG = jnp.concatenate([col(p['bvH']), col(p['bvG'])], axis=1)  # (3, 90, 1)
    m_haar = build_haar_matrix(CH_IN, DOWN_NUM)                     # (48, 48)
    return (m_haar, weEF, beEF, weHG, beHG, wvF, bvF, wvHG, bvHG)


# ====================  pure-JAX reference (NCHW)  =========================
def _haar_ref(x):
    B, C, H, W = x.shape
    xr = x.reshape(B, C, H // 2, 2, W // 2, 2)
    a = xr[:, :, :, 0, :, 0]
    b = xr[:, :, :, 0, :, 1]
    c = xr[:, :, :, 1, :, 0]
    d = xr[:, :, :, 1, :, 1]
    comps = jnp.stack([a + b + c + d, a - b + c - d,
                       a + b - c - d, a - b - c + d], axis=1) * 0.25
    return comps.reshape(B, 4 * C, H // 2, W // 2)


def _subnet_nchw(x, w, b):
    return jnp.einsum('bihw,io->bohw', x, w) + b.reshape(1, -1, 1, 1)


def reference_forward(x, p):
    out = x
    for _ in range(DOWN_NUM):
        out = _haar_ref(out)
    x1, x2 = out[:, :S1], out[:, S1:]
    lr = None
    for j in range(E_BLOCKS):
        LR = x1 + _subnet_nchw(x2, p['weE'][j], p['beE'][j])
        y1 = LR - _subnet_nchw(x2, p['weF'][j], p['beF'][j])
        s = CLAMP * (_sigmoid(_subnet_nchw(y1, p['weH'][j], p['beH'][j])) * 2.0 - 1.0)
        y2 = x2 * jnp.exp(s) + _subnet_nchw(y1, p['weG'][j], p['beG'][j])
        x1, x2 = y1, y2
        if j == E_BLOCKS - 1:
            lr = LR
    for j in range(V_BLOCKS):
        y1 = x1 + _subnet_nchw(x2, p['wvF'][j], p['bvF'][j])
        s = CLAMP * (_sigmoid(_subnet_nchw(y1, p['wvH'][j], p['bvH'][j])) * 2.0 - 1.0)
        y2 = x2 * jnp.exp(s) + _subnet_nchw(y1, p['wvG'][j], p['bvG'][j])
        x1, x2 = y1, y2
    return jnp.concatenate([x1, x2], axis=1), lr


# ===============================  main  ===================================
if __name__ == "__main__":
    key = jax.random.PRNGKey(0)
    kx, kp = jax.random.split(key)
    x = jax.random.normal(kx, (2, CH_IN, 16, 16), jnp.float32)

    raw = init_raw_params(kp)
    kparams = pack_kernel_params(raw)

    fwd = jax.jit(sainet_forward)
    y, lr = fwd(x, kparams)
    jax.block_until_ready((y, lr))

    y_ref, lr_ref = reference_forward(x, raw)
    assert y.shape == (2, CUR_CH, 4, 4) and lr.shape == (2, S1, 4, 4)
    assert jnp.allclose(y, y_ref, atol=1e-4, rtol=1e-4), \
        float(jnp.max(jnp.abs(y - y_ref)))
    assert jnp.allclose(lr, lr_ref, atol=1e-4, rtol=1e-4), \
        float(jnp.max(jnp.abs(lr - lr_ref)))

    print("KERNEL_OK")
</pallas_src>

<mosaic_0001>
module attributes {stable_mosaic.version = 11 : i64} {
  func.func @sainet_kernel(%arg0: i32, %arg1: i32, %arg2: memref<1x48x128xf32, #tpu.memory_space<vmem>>, %arg3: memref<48x48xf32, #tpu.memory_space<vmem>>, %arg4: memref<5x6x45xf32, #tpu.memory_space<vmem>>, %arg5: memref<5x6x1xf32, #tpu.memory_space<vmem>>, %arg6: memref<5x90x3xf32, #tpu.memory_space<vmem>>, %arg7: memref<5x90x1xf32, #tpu.memory_space<vmem>>, %arg8: memref<3x3x45xf32, #tpu.memory_space<vmem>>, %arg9: memref<3x3x1xf32, #tpu.memory_space<vmem>>, %arg10: memref<3x90x3xf32, #tpu.memory_space<vmem>>, %arg11: memref<3x90x1xf32, #tpu.memory_space<vmem>>, %arg12: memref<1x48x128xf32, #tpu.memory_space<vmem>>, %arg13: memref<1x3x128xf32, #tpu.memory_space<vmem>>) attributes {dimension_semantics = [#tpu.dimension_semantics<parallel>, #tpu.dimension_semantics<parallel>], iteration_bounds = array<i64: 2, 1>, scalar_prefetch = 0 : i64, scratch_operands = 0 : i64, tpu.core_type = #tpu.core_type<tc>, window_params = [{transform_indices = @transform_0, window_bounds = array<i64: 1, 48, 128>}, {pipeline_mode = #tpu.pipeline_mode<synchronous>, transform_indices = @transform_1, window_bounds = array<i64: 48, 48>}, {pipeline_mode = #tpu.pipeline_mode<synchronous>, transform_indices = @transform_2, window_bounds = array<i64: 5, 6, 45>}, {pipeline_mode = #tpu.pipeline_mode<synchronous>, transform_indices = @transform_3, window_bounds = array<i64: 5, 6, 1>}, {pipeline_mode = #tpu.pipeline_mode<synchronous>, transform_indices = @transform_4, window_bounds = array<i64: 5, 90, 3>}, {pipeline_mode = #tpu.pipeline_mode<synchronous>, transform_indices = @transform_5, window_bounds = array<i64: 5, 90, 1>}, {pipeline_mode = #tpu.pipeline_mode<synchronous>, transform_indices = @transform_6, window_bounds = array<i64: 3, 3, 45>}, {pipeline_mode = #tpu.pipeline_mode<synchronous>, transform_indices = @transform_7, window_bounds = array<i64: 3, 3, 1>}, {pipeline_mode = #tpu.pipeline_mode<synchronous>, transform_indices = @transform_8, window_bounds = array<i64: 3, 90, 3>}, {pipeline_mode = #tpu.pipeline_mode<synchronous>, transform_indices = @transform_9, window_bounds = array<i64: 3, 90, 1>}, {transform_indices = @transform_10, window_bounds = array<i64: 1, 48, 128>}, {transform_indices = @transform_11, window_bounds = array<i64: 1, 3, 128>}]} {
    %c0 = arith.constant 0 : index
    %c0_0 = arith.constant 0 : index
    %0 = vector.load %arg3[%c0, %c0_0] : memref<48x48xf32, #tpu.memory_space<vmem>>, vector<48x48xf32>
    %c0_1 = arith.constant 0 : index
    %c0_2 = arith.constant 0 : index
    %c0_3 = arith.constant 0 : index
    %1 = vector.load %arg2[%c0_1, %c0_2, %c0_3] : memref<1x48x128xf32, #tpu.memory_space<vmem>>, vector<1x48x128xf32>
    %2 = vector.shape_cast %1 : vector<1x48x128xf32> to vector<48x128xf32>
    %cst = arith.constant dense<0.000000e+00> : vector<48x128xf32>
    %3 = tpu.matmul %0, %2, %cst {dimension_numbers = #tpu.dot_dimension_numbers<[1], [0], [0], [1], [0, 0, 1, 1], [], []>} : vector<48x48xf32>, vector<48x128xf32>, vector<48x128xf32> -> vector<48x128xf32>
    %4 = vector.extract_strided_slice %3 {offsets = [0, 0], sizes = [3, 128], strides = [1, 1]} : vector<48x128xf32> to vector<3x128xf32>
    %5 = vector.extract_strided_slice %3 {offsets = [3, 0], sizes = [45, 128], strides = [1, 1]} : vector<48x128xf32> to vector<45x128xf32>
    %c0_4 = arith.constant 0 : index
    %c0_5 = arith.constant 0 : index
    %c0_6 = arith.constant 0 : index
    %6 = vector.load %arg4[%c0_4, %c0_5, %c0_6] : memref<5x6x45xf32, #tpu.memory_space<vmem>>, vector<1x6x45xf32>
    %7 = vector.shape_cast %6 : vector<1x6x45xf32> to vector<6x45xf32>
    %cst_7 = arith.constant dense<0.000000e+00> : vector<6x128xf32>
    %8 = tpu.matmul %7, %5, %cst_7 {dimension_numbers = #tpu.dot_dimension_numbers<[1], [0], [0], [1], [0, 0, 1, 1], [], []>} : vector<6x45xf32>, vector<45x128xf32>, vector<6x128xf32> -> vector<6x128xf32>
    %c0_8 = arith.constant 0 : index
    %c0_9 = arith.constant 0 : index
    %c0_10 = arith.constant 0 : index
    %9 = vector.load %arg5[%c0_8, %c0_9, %c0_10] : memref<5x6x1xf32, #tpu.memory_space<vmem>>, vector<1x6x1xf32>
    %10 = vector.shape_cast %9 : vector<1x6x1xf32> to vector<6x1xf32>
    %11 = vector.broadcast %10 : vector<6x1xf32> to vector<6x128xf32>
    %12 = arith.addf %8, %11 : vector<6x128xf32>
    %13 = vector.extract_strided_slice %12 {offsets = [0, 0], sizes = [3, 128], strides = [1, 1]} : vector<6x128xf32> to vector<3x128xf32>
    %14 = arith.addf %4, %13 : vector<3x128xf32>
    %15 = vector.extract_strided_slice %12 {offsets = [3, 0], sizes = [3, 128], strides = [1, 1]} : vector<6x128xf32> to vector<3x128xf32>
    %16 = arith.subf %14, %15 : vector<3x128xf32>
    %c0_11 = arith.constant 0 : index
    %c0_12 = arith.constant 0 : index
    %c0_13 = arith.constant 0 : index
    %17 = vector.load %arg6[%c0_11, %c0_12, %c0_13] : memref<5x90x3xf32, #tpu.memory_space<vmem>>, vector<1x90x3xf32>
    %18 = vector.shape_cast %17 : vector<1x90x3xf32> to vector<90x3xf32>
    %cst_14 = arith.constant dense<0.000000e+00> : vector<90x128xf32>
    %19 = tpu.matmul %18, %16, %cst_14 {dimension_numbers = #tpu.dot_dimension_numbers<[1], [0], [0], [1], [0, 0, 1, 1], [], []>} : vector<90x3xf32>, vector<3x128xf32>, vector<90x128xf32> -> vector<90x128xf32>
    %c0_15 = arith.constant 0 : index
    %c0_16 = arith.constant 0 : index
    %c0_17 = arith.constant 0 : index
    %20 = vector.load %arg7[%c0_15, %c0_16, %c0_17] : memref<5x90x1xf32, #tpu.memory_space<vmem>>, vector<1x90x1xf32>
    %21 = vector.shape_cast %20 : vector<1x90x1xf32> to vector<90x1xf32>
    %22 = vector.broadcast %21 : vector<90x1xf32> to vector<90x128xf32>
    %23 = arith.addf %19, %22 : vector<90x128xf32>
    %24 = vector.extract_strided_slice %23 {offsets = [0, 0], sizes = [45, 128], strides = [1, 1]} : vector<90x128xf32> to vector<45x128xf32>
    %cst_18 = arith.constant 5.000000e-01 : f32
    %25 = vector.broadcast %cst_18 : f32 to vector<45x128xf32>
    %26 = arith.mulf %25, %24 : vector<45x128xf32>
    %27 = math.tanh %26 : vector<45x128xf32>
    %cst_19 = arith.constant 1.000000e+00 : f32
    %28 = vector.broadcast %cst_19 : f32 to vector<45x128xf32>
    %29 = arith.mulf %28, %27 : vector<45x128xf32>
    %30 = math.exp %29 : vector<45x128xf32>
    %31 = arith.mulf %5, %30 : vector<45x128xf32>
    %32 = vector.extract_strided_slice %23 {offsets = [45, 0], sizes = [45, 128], strides = [1, 1]} : vector<90x128xf32> to vector<45x128xf32>
    %33 = arith.addf %31, %32 : vector<45x128xf32>
    %c1 = arith.constant 1 : index
    %c0_20 = arith.constant 0 : index
    %c0_21 = arith.constant 0 : index
    %34 = vector.load %arg4[%c1, %c0_20, %c0_21] : memref<5x6x45xf32, #tpu.memory_space<vmem>>, vector<1x6x45xf32>
    %35 = vector.shape_cast %34 : vector<1x6x45xf32> to vector<6x45xf32>
    %cst_22 = arith.constant dense<0.000000e+00> : vector<6x128xf32>
    %36 = tpu.matmul %35, %33, %cst_22 {dimension_numbers = #tpu.dot_dimension_numbers<[1], [0], [0], [1], [0, 0, 1, 1], [], []>} : vector<6x45xf32>, vector<45x128xf32>, vector<6x128xf32> -> vector<6x128xf32>
    %c1_23 = arith.constant 1 : index
    %c0_24 = arith.constant 0 : index
    %c0_25 = arith.constant 0 : index
    %37 = vector.load %arg5[%c1_23, %c0_24, %c0_25] : memref<5x6x1xf32, #tpu.memory_space<vmem>>, vector<1x6x1xf32>
    %38 = vector.shape_cast %37 : vector<1x6x1xf32> to vector<6x1xf32>
    %39 = vector.broadcast %38 : vector<6x1xf32> to vector<6x128xf32>
    %40 = arith.addf %36, %39 : vector<6x128xf32>
    %41 = vector.extract_strided_slice %40 {offsets = [0, 0], sizes = [3, 128], strides = [1, 1]} : vector<6x128xf32> to vector<3x128xf32>
    %42 = arith.addf %16, %41 : vector<3x128xf32>
    %43 = vector.extract_strided_slice %40 {offsets = [3, 0], sizes = [3, 128], strides = [1, 1]} : vector<6x128xf32> to vector<3x128xf32>
    %44 = arith.subf %42, %43 : vector<3x128xf32>
    %c1_26 = arith.constant 1 : index
    %c0_27 = arith.constant 0 : index
    %c0_28 = arith.constant 0 : index
    %45 = vector.load %arg6[%c1_26, %c0_27, %c0_28] : memref<5x90x3xf32, #tpu.memory_space<vmem>>, vector<1x90x3xf32>
    %46 = vector.shape_cast %45 : vector<1x90x3xf32> to vector<90x3xf32>
    %cst_29 = arith.constant dense<0.000000e+00> : vector<90x128xf32>
    %47 = tpu.matmul %46, %44, %cst_29 {dimension_numbers = #tpu.dot_dimension_numbers<[1], [0], [0], [1], [0, 0, 1, 1], [], []>} : vector<90x3xf32>, vector<3x128xf32>, vector<90x128xf32> -> vector<90x128xf32>
    %c1_30 = arith.constant 1 : index
    %c0_31 = arith.constant 0 : index
    %c0_32 = arith.constant 0 : index
    %48 = vector.load %arg7[%c1_30, %c0_31, %c0_32] : memref<5x90x1xf32, #tpu.memory_space<vmem>>, vector<1x90x1xf32>
    %49 = vector.shape_cast %48 : vector<1x90x1xf32> to vector<90x1xf32>
    %50 = vector.broadcast %49 : vector<90x1xf32> to vector<90x128xf32>
    %51 = arith.addf %47, %50 : vector<90x128xf32>
    %52 = vector.extract_strided_slice %51 {offsets = [0, 0], sizes = [45, 128], strides = [1, 1]} : vector<90x128xf32> to vector<45x128xf32>
    %cst_33 = arith.constant 5.000000e-01 : f32
    %53 = vector.broadcast %cst_33 : f32 to vector<45x128xf32>
    %54 = arith.mulf %53, %52 : vector<45x128xf32>
    %55 = math.tanh %54 : vector<45x128xf32>
    %cst_34 = arith.constant 1.000000e+00 : f32
    %56 = vector.broadcast %cst_34 : f32 to vector<45x128xf32>
    %57 = arith.mulf %56, %55 : vector<45x128xf32>
    %58 = math.exp %57 : vector<45x128xf32>
    %59 = arith.mulf %33, %58 : vector<45x128xf32>
    %60 = vector.extract_strided_slice %51 {offsets = [45, 0], sizes = [45, 128], strides = [1, 1]} : vector<90x128xf32> to vector<45x128xf32>
    %61 = arith.addf %59, %60 : vector<45x128xf32>
    %c2 = arith.constant 2 : index
    %c0_35 = arith.constant 0 : index
    %c0_36 = arith.constant 0 : index
    %62 = vector.load %arg4[%c2, %c0_35, %c0_36] : memref<5x6x45xf32, #tpu.memory_space<vmem>>, vector<1x6x45xf32>
    %63 = vector.shape_cast %62 : vector<1x6x45xf32> to vector<6x45xf32>
    %cst_37 = arith.constant dense<0.000000e+00> : vector<6x128xf32>
    %64 = tpu.matmul %63, %61, %cst_37 {dimension_numbers = #tpu.dot_dimension_numbers<[1], [0], [0], [1], [0, 0, 1, 1], [], []>} : vector<6x45xf32>, vector<45x128xf32>, vector<6x128xf32> -> vector<6x128xf32>
    %c2_38 = arith.constant 2 : index
    %c0_39 = arith.constant 0 : index
    %c0_40 = arith.constant 0 : index
    %65 = vector.load %arg5[%c2_38, %c0_39, %c0_40] : memref<5x6x1xf32, #tpu.memory_space<vmem>>, vector<1x6x1xf32>
    %66 = vector.shape_cast %65 : vector<1x6x1xf32> to vector<6x1xf32>
    %67 = vector.broadcast %66 : vector<6x1xf32> to vector<6x128xf32>
    %68 = arith.addf %64, %67 : vector<6x128xf32>
    %69 = vector.extract_strided_slice %68 {offsets = [0, 0], sizes = [3, 128], strides = [1, 1]} : vector<6x128xf32> to vector<3x128xf32>
    %70 = arith.addf %44, %69 : vector<3x128xf32>
    %71 = vector.extract_strided_slice %68 {offsets = [3, 0], sizes = [3, 128], strides = [1, 1]} : vector<6x128xf32> to vector<3x128xf32>
    %72 = arith.subf %70, %71 : vector<3x128xf32>
    %c2_41 = arith.constant 2 : index
    %c0_42 = arith.constant 0 : index
    %c0_43 = arith.constant 0 : index
    %73 = vector.load %arg6[%c2_41, %c0_42, %c0_43] : memref<5x90x3xf32, #tpu.memory_space<vmem>>, vector<1x90x3xf32>
    %74 = vector.shape_cast %73 : vector<1x90x3xf32> to vector<90x3xf32>
    %cst_44 = arith.constant dense<0.000000e+00> : vector<90x128xf32>
    %75 = tpu.matmul %74, %72, %cst_44 {dimension_numbers = #tpu.dot_dimension_numbers<[1], [0], [0], [1], [0, 0, 1, 1], [], []>} : vector<90x3xf32>, vector<3x128xf32>, vector<90x128xf32> -> vector<90x128xf32>
    %c2_45 = arith.constant 2 : index
    %c0_46 = arith.constant 0 : index
    %c0_47 = arith.constant 0 : index
    %76 = vector.load %arg7[%c2_45, %c0_46, %c0_47] : memref<5x90x1xf32, #tpu.memory_space<vmem>>, vector<1x90x1xf32>
    %77 = vector.shape_cast %76 : vector<1x90x1xf32> to vector<90x1xf32>
    %78 = vector.broadcast %77 : vector<90x1xf32> to vector<90x128xf32>
    %79 = arith.addf %75, %78 : vector<90x128xf32>
    %80 = vector.extract_strided_slice %79 {offsets = [0, 0], sizes = [45, 128], strides = [1, 1]} : vector<90x128xf32> to vector<45x128xf32>
    %cst_48 = arith.constant 5.000000e-01 : f32
    %81 = vector.broadcast %cst_48 : f32 to vector<45x128xf32>
    %82 = arith.mulf %81, %80 : vector<45x128xf32>
    %83 = math.tanh %82 : vector<45x128xf32>
    %cst_49 = arith.constant 1.000000e+00 : f32
    %84 = vector.broadcast %cst_49 : f32 to vector<45x128xf32>
    %85 = arith.mulf %84, %83 : vector<45x128xf32>
    %86 = math.exp %85 : vector<45x128xf32>
    %87 = arith.mulf %61, %86 : vector<45x128xf32>
    %88 = vector.extract_strided_slice %79 {offsets = [45, 0], sizes = [45, 128], strides = [1, 1]} : vector<90x128xf32> to vector<45x128xf32>
    %89 = arith.addf %87, %88 : vector<45x128xf32>
    %c3 = arith.constant 3 : index
    %c0_50 = arith.constant 0 : index
    %c0_51 = arith.constant 0 : index
    %90 = vector.load %arg4[%c3, %c0_50, %c0_51] : memref<5x6x45xf32, #tpu.memory_space<vmem>>, vector<1x6x45xf32>
    %91 = vector.shape_cast %90 : vector<1x6x45xf32> to vector<6x45xf32>
    %cst_52 = arith.constant dense<0.000000e+00> : vector<6x128xf32>
    %92 = tpu.matmul %91, %89, %cst_52 {dimension_numbers = #tpu.dot_dimension_numbers<[1], [0], [0], [1], [0, 0, 1, 1], [], []>} : vector<6x45xf32>, vector<45x128xf32>, vector<6x128xf32> -> vector<6x128xf32>
    %c3_53 = arith.constant 3 : index
    %c0_54 = arith.constant 0 : index
    %c0_55 = arith.constant 0 : index
    %93 = vector.load %arg5[%c3_53, %c0_54, %c0_55] : memref<5x6x1xf32, #tpu.memory_space<vmem>>, vector<1x6x1xf32>
    %94 = vector.shape_cast %93 : vector<1x6x1xf32> to vector<6x1xf32>
    %95 = vector.broadcast %94 : vector<6x1xf32> to vector<6x128xf32>
    %96 = arith.addf %92, %95 : vector<6x128xf32>
    %97 = vector.extract_strided_slice %96 {offsets = [0, 0], sizes = [3, 128], strides = [1, 1]} : vector<6x128xf32> to vector<3x128xf32>
    %98 = arith.addf %72, %97 : vector<3x128xf32>
    %99 = vector.extract_strided_slice %96 {offsets = [3, 0], sizes = [3, 128], strides = [1, 1]} : vector<6x128xf32> to vector<3x128xf32>
    %100 = arith.subf %98, %99 : vector<3x128xf32>
    %c3_56 = arith.constant 3 : index
    %c0_57 = arith.constant 0 : index
    %c0_58 = arith.constant 0 : index
    %101 = vector.load %arg6[%c3_56, %c0_57, %c0_58] : memref<5x90x3xf32, #tpu.memory_space<vmem>>, vector<1x90x3xf32>
    %102 = vector.shape_cast %101 : vector<1x90x3xf32> to vector<90x3xf32>
    %cst_59 = arith.constant dense<0.000000e+00> : vector<90x128xf32>
    %103 = tpu.matmul %102, %100, %cst_59 {dimension_numbers = #tpu.dot_dimension_numbers<[1], [0], [0], [1], [0, 0, 1, 1], [], []>} : vector<90x3xf32>, vector<3x128xf32>, vector<90x128xf32> -> vector<90x128xf32>
    %c3_60 = arith.constant 3 : index
    %c0_61 = arith.constant 0 : index
    %c0_62 = arith.constant 0 : index
    %104 = vector.load %arg7[%c3_60, %c0_61, %c0_62] : memref<5x90x1xf32, #tpu.memory_space<vmem>>, vector<1x90x1xf32>
    %105 = vector.shape_cast %104 : vector<1x90x1xf32> to vector<90x1xf32>
    %106 = vector.broadcast %105 : vector<90x1xf32> to vector<90x128xf32>
    %107 = arith.addf %103, %106 : vector<90x128xf32>
    %108 = vector.extract_strided_slice %107 {offsets = [0, 0], sizes = [45, 128], strides = [1, 1]} : vector<90x128xf32> to vector<45x128xf32>
    %cst_63 = arith.constant 5.000000e-01 : f32
    %109 = vector.broadcast %cst_63 : f32 to vector<45x128xf32>
    %110 = arith.mulf %109, %108 : vector<45x128xf32>
    %111 = math.tanh %110 : vector<45x128xf32>
    %cst_64 = arith.constant 1.000000e+00 : f32
    %112 = vector.broadcast %cst_64 : f32 to vector<45x128xf32>
    %113 = arith.mulf %112, %111 : vector<45x128xf32>
    %114 = math.exp %113 : vector<45x128xf32>
    %115 = arith.mulf %89, %114 : vector<45x128xf32>
    %116 = vector.extract_strided_slice %107 {offsets = [45, 0], sizes = [45, 128], strides = [1, 1]} : vector<90x128xf32> to vector<45x128xf32>
    %117 = arith.addf %115, %116 : vector<45x128xf32>
    %c4 = arith.constant 4 : index
    %c0_65 = arith.constant 0 : index
    %c0_66 = arith.constant 0 : index
    %118 = vector.load %arg4[%c4, %c0_65, %c0_66] : memref<5x6x45xf32, #tpu.memory_space<vmem>>, vector<1x6x45xf32>
    %119 = vector.shape_cast %118 : vector<1x6x45xf32> to vector<6x45xf32>
    %cst_67 = arith.constant dense<0.000000e+00> : vector<6x128xf32>
    %120 = tpu.matmul %119, %117, %cst_67 {dimension_numbers = #tpu.dot_dimension_numbers<[1], [0], [0], [1], [0, 0, 1, 1], [], []>} : vector<6x45xf32>, vector<45x128xf32>, vector<6x128xf32> -> vector<6x128xf32>
    %c4_68 = arith.constant 4 : index
    %c0_69 = arith.constant 0 : index
    %c0_70 = arith.constant 0 : index
    %121 = vector.load %arg5[%c4_68, %c0_69, %c0_70] : memref<5x6x1xf32, #tpu.memory_space<vmem>>, vector<1x6x1xf32>
    %122 = vector.shape_cast %121 : vector<1x6x1xf32> to vector<6x1xf32>
    %123 = vector.broadcast %122 : vector<6x1xf32> to vector<6x128xf32>
    %124 = arith.addf %120, %123 : vector<6x128xf32>
    %125 = vector.extract_strided_slice %124 {offsets = [0, 0], sizes = [3, 128], strides = [1, 1]} : vector<6x128xf32> to vector<3x128xf32>
    %126 = arith.addf %100, %125 : vector<3x128xf32>
    %127 = vector.extract_strided_slice %124 {offsets = [3, 0], sizes = [3, 128], strides = [1, 1]} : vector<6x128xf32> to vector<3x128xf32>
    %128 = arith.subf %126, %127 : vector<3x128xf32>
    %c4_71 = arith.constant 4 : index
    %c0_72 = arith.constant 0 : index
    %c0_73 = arith.constant 0 : index
    %129 = vector.load %arg6[%c4_71, %c0_72, %c0_73] : memref<5x90x3xf32, #tpu.memory_space<vmem>>, vector<1x90x3xf32>
    %130 = vector.shape_cast %129 : vector<1x90x3xf32> to vector<90x3xf32>
    %cst_74 = arith.constant dense<0.000000e+00> : vector<90x128xf32>
    %131 = tpu.matmul %130, %128, %cst_74 {dimension_numbers = #tpu.dot_dimension_numbers<[1], [0], [0], [1], [0, 0, 1, 1], [], []>} : vector<90x3xf32>, vector<3x128xf32>, vector<90x128xf32> -> vector<90x128xf32>
    %c4_75 = arith.constant 4 : index
    %c0_76 = arith.constant 0 : index
    %c0_77 = arith.constant 0 : index
    %132 = vector.load %arg7[%c4_75, %c0_76, %c0_77] : memref<5x90x1xf32, #tpu.memory_space<vmem>>, vector<1x90x1xf32>
    %133 = vector.shape_cast %132 : vector<1x90x1xf32> to vector<90x1xf32>
    %134 = vector.broadcast %133 : vector<90x1xf32> to vector<90x128xf32>
    %135 = arith.addf %131, %134 : vector<90x128xf32>
    %136 = vector.extract_strided_slice %135 {offsets = [0, 0], sizes = [45, 128], strides = [1, 1]} : vector<90x128xf32> to vector<45x128xf32>
    %cst_78 = arith.constant 5.000000e-01 : f32
    %137 = vector.broadcast %cst_78 : f32 to vector<45x128xf32>
    %138 = arith.mulf %137, %136 : vector<45x128xf32>
    %139 = math.tanh %138 : vector<45x128xf32>
    %cst_79 = arith.constant 1.000000e+00 : f32
    %140 = vector.broadcast %cst_79 : f32 to vector<45x128xf32>
    %141 = arith.mulf %140, %139 : vector<45x128xf32>
    %142 = math.exp %141 : vector<45x128xf32>
    %143 = arith.mulf %117, %142 : vector<45x128xf32>
    %144 = vector.extract_strided_slice %135 {offsets = [45, 0], sizes = [45, 128], strides = [1, 1]} : vector<90x128xf32> to vector<45x128xf32>
    %145 = arith.addf %143, %144 : vector<45x128xf32>
    %c0_80 = arith.constant 0 : index
    %c0_81 = arith.constant 0 : index
    %c0_82 = arith.constant 0 : index
    %146 = vector.load %arg8[%c0_80, %c0_81, %c0_82] : memref<3x3x45xf32, #tpu.memory_space<vmem>>, vector<1x3x45xf32>
    %147 = vector.shape_cast %146 : vector<1x3x45xf32> to vector<3x45xf32>
    %cst_83 = arith.constant dense<0.000000e+00> : vector<3x128xf32>
    %148 = tpu.matmul %147, %145, %cst_83 {dimension_numbers = #tpu.dot_dimension_numbers<[1], [0], [0], [1], [0, 0, 1, 1], [], []>} : vector<3x45xf32>, vector<45x128xf32>, vector<3x128xf32> -> vector<3x128xf32>
    %c0_84 = arith.constant 0 : index
    %c0_85 = arith.constant 0 : index
    %c0_86 = arith.constant 0 : index
    %149 = vector.load %arg9[%c0_84, %c0_85, %c0_86] : memref<3x3x1xf32, #tpu.memory_space<vmem>>, vector<1x3x1xf32>
    %150 = vector.shape_cast %149 : vector<1x3x1xf32> to vector<3x1xf32>
    %151 = vector.broadcast %150 : vector<3x1xf32> to vector<3x128xf32>
    %152 = arith.addf %148, %151 : vector<3x128xf32>
    %153 = arith.addf %128, %152 : vector<3x128xf32>
    %c0_87 = arith.constant 0 : index
    %c0_88 = arith.constant 0 : index
    %c0_89 = arith.constant 0 : index
    %154 = vector.load %arg10[%c0_87, %c0_88, %c0_89] : memref<3x90x3xf32, #tpu.memory_space<vmem>>, vector<1x90x3xf32>
    %155 = vector.shape_cast %154 : vector<1x90x3xf32> to vector<90x3xf32>
    %cst_90 = arith.constant dense<0.000000e+00> : vector<90x128xf32>
    %156 = tpu.matmul %155, %153, %cst_90 {dimension_numbers = #tpu.dot_dimension_numbers<[1], [0], [0], [1], [0, 0, 1, 1], [], []>} : vector<90x3xf32>, vector<3x128xf32>, vector<90x128xf32> -> vector<90x128xf32>
    %c0_91 = arith.constant 0 : index
    %c0_92 = arith.constant 0 : index
    %c0_93 = arith.constant 0 : index
    %157 = vector.load %arg11[%c0_91, %c0_92, %c0_93] : memref<3x90x1xf32, #tpu.memory_space<vmem>>, vector<1x90x1xf32>
    %158 = vector.shape_cast %157 : vector<1x90x1xf32> to vector<90x1xf32>
    %159 = vector.broadcast %158 : vector<90x1xf32> to vector<90x128xf32>
    %160 = arith.addf %156, %159 : vector<90x128xf32>
    %161 = vector.extract_strided_slice %160 {offsets = [0, 0], sizes = [45, 128], strides = [1, 1]} : vector<90x128xf32> to vector<45x128xf32>
    %cst_94 = arith.constant 5.000000e-01 : f32
    %162 = vector.broadcast %cst_94 : f32 to vector<45x128xf32>
    %163 = arith.mulf %162, %161 : vector<45x128xf32>
    %164 = math.tanh %163 : vector<45x128xf32>
    %cst_95 = arith.constant 1.000000e+00 : f32
    %165 = vector.broadcast %cst_95 : f32 to vector<45x128xf32>
    %166 = arith.mulf %165, %164 : vector<45x128xf32>
    %167 = math.exp %166 : vector<45x128xf32>
    %168 = arith.mulf %145, %167 : vector<45x128xf32>
    %169 = vector.extract_strided_slice %160 {offsets = [45, 0], sizes = [45, 128], strides = [1, 1]} : vector<90x128xf32> to vector<45x128xf32>
    %170 = arith.addf %168, %169 : vector<45x128xf32>
    %c1_96 = arith.constant 1 : index
    %c0_97 = arith.constant 0 : index
    %c0_98 = arith.constant 0 : index
    %171 = vector.load %arg8[%c1_96, %c0_97, %c0_98] : memref<3x3x45xf32, #tpu.memory_space<vmem>>, vector<1x3x45xf32>
    %172 = vector.shape_cast %171 : vector<1x3x45xf32> to vector<3x45xf32>
    %cst_99 = arith.constant dense<0.000000e+00> : vector<3x128xf32>
    %173 = tpu.matmul %172, %170, %cst_99 {dimension_numbers = #tpu.dot_dimension_numbers<[1], [0], [0], [1], [0, 0, 1, 1], [], []>} : vector<3x45xf32>, vector<45x128xf32>, vector<3x128xf32> -> vector<3x128xf32>
    %c1_100 = arith.constant 1 : index
    %c0_101 = arith.constant 0 : index
    %c0_102 = arith.constant 0 : index
    %174 = vector.load %arg9[%c1_100, %c0_101, %c0_102] : memref<3x3x1xf32, #tpu.memory_space<vmem>>, vector<1x3x1xf32>
    %175 = vector.shape_cast %174 : vector<1x3x1xf32> to vector<3x1xf32>
    %176 = vector.broadcast %175 : vector<3x1xf32> to vector<3x128xf32>
    %177 = arith.addf %173, %176 : vector<3x128xf32>
    %178 = arith.addf %153, %177 : vector<3x128xf32>
    %c1_103 = arith.constant 1 : index
    %c0_104 = arith.constant 0 : index
    %c0_105 = arith.constant 0 : index
    %179 = vector.load %arg10[%c1_103, %c0_104, %c0_105] : memref<3x90x3xf32, #tpu.memory_space<vmem>>, vector<1x90x3xf32>
    %180 = vector.shape_cast %179 : vector<1x90x3xf32> to vector<90x3xf32>
    %cst_106 = arith.constant dense<0.000000e+00> : vector<90x128xf32>
    %181 = tpu.matmul %180, %178, %cst_106 {dimension_numbers = #tpu.dot_dimension_numbers<[1], [0], [0], [1], [0, 0, 1, 1], [], []>} : vector<90x3xf32>, vector<3x128xf32>, vector<90x128xf32> -> vector<90x128xf32>
    %c1_107 = arith.constant 1 : index
    %c0_108 = arith.constant 0 : index
    %c0_109 = arith.constant 0 : index
    %182 = vector.load %arg11[%c1_107, %c0_108, %c0_109] : memref<3x90x1xf32, #tpu.memory_space<vmem>>, vector<1x90x1xf32>
    %183 = vector.shape_cast %182 : vector<1x90x1xf32> to vector<90x1xf32>
    %184 = vector.broadcast %183 : vector<90x1xf32> to vector<90x128xf32>
    %185 = arith.addf %181, %184 : vector<90x128xf32>
    %186 = vector.extract_strided_slice %185 {offsets = [0, 0], sizes = [45, 128], strides = [1, 1]} : vector<90x128xf32> to vector<45x128xf32>
    %cst_110 = arith.constant 5.000000e-01 : f32
    %187 = vector.broadcast %cst_110 : f32 to vector<45x128xf32>
    %188 = arith.mulf %187, %186 : vector<45x128xf32>
    %189 = math.tanh %188 : vector<45x128xf32>
    %cst_111 = arith.constant 1.000000e+00 : f32
    %190 = vector.broadcast %cst_111 : f32 to vector<45x128xf32>
    %191 = arith.mulf %190, %189 : vector<45x128xf32>
    %192 = math.exp %191 : vector<45x128xf32>
    %193 = arith.mulf %170, %192 : vector<45x128xf32>
    %194 = vector.extract_strided_slice %185 {offsets = [45, 0], sizes = [45, 128], strides = [1, 1]} : vector<90x128xf32> to vector<45x128xf32>
    %195 = arith.addf %193, %194 : vector<45x128xf32>
    %c2_112 = arith.constant 2 : index
    %c0_113 = arith.constant 0 : index
    %c0_114 = arith.constant 0 : index
    %196 = vector.load %arg8[%c2_112, %c0_113, %c0_114] : memref<3x3x45xf32, #tpu.memory_space<vmem>>, vector<1x3x45xf32>
    %197 = vector.shape_cast %196 : vector<1x3x45xf32> to vector<3x45xf32>
    %cst_115 = arith.constant dense<0.000000e+00> : vector<3x128xf32>
    %198 = tpu.matmul %197, %195, %cst_115 {dimension_numbers = #tpu.dot_dimension_numbers<[1], [0], [0], [1], [0, 0, 1, 1], [], []>} : vector<3x45xf32>, vector<45x128xf32>, vector<3x128xf32> -> vector<3x128xf32>
    %c2_116 = arith.constant 2 : index
    %c0_117 = arith.constant 0 : index
    %c0_118 = arith.constant 0 : index
    %199 = vector.load %arg9[%c2_116, %c0_117, %c0_118] : memref<3x3x1xf32, #tpu.memory_space<vmem>>, vector<1x3x1xf32>
    %200 = vector.shape_cast %199 : vector<1x3x1xf32> to vector<3x1xf32>
    %201 = vector.broadcast %200 : vector<3x1xf32> to vector<3x128xf32>
    %202 = arith.addf %198, %201 : vector<3x128xf32>
    %203 = arith.addf %178, %202 : vector<3x128xf32>
    %c2_119 = arith.constant 2 : index
    %c0_120 = arith.constant 0 : index
    %c0_121 = arith.constant 0 : index
    %204 = vector.load %arg10[%c2_119, %c0_120, %c0_121] : memref<3x90x3xf32, #tpu.memory_space<vmem>>, vector<1x90x3xf32>
    %205 = vector.shape_cast %204 : vector<1x90x3xf32> to vector<90x3xf32>
    %cst_122 = arith.constant dense<0.000000e+00> : vector<90x128xf32>
    %206 = tpu.matmul %205, %203, %cst_122 {dimension_numbers = #tpu.dot_dimension_numbers<[1], [0], [0], [1], [0, 0, 1, 1], [], []>} : vector<90x3xf32>, vector<3x128xf32>, vector<90x128xf32> -> vector<90x128xf32>
    %c2_123 = arith.constant 2 : index
    %c0_124 = arith.constant 0 : index
    %c0_125 = arith.constant 0 : index
    %207 = vector.load %arg11[%c2_123, %c0_124, %c0_125] : memref<3x90x1xf32, #tpu.memory_space<vmem>>, vector<1x90x1xf32>
    %208 = vector.shape_cast %207 : vector<1x90x1xf32> to vector<90x1xf32>
    %209 = vector.broadcast %208 : vector<90x1xf32> to vector<90x128xf32>
    %210 = arith.addf %206, %209 : vector<90x128xf32>
    %211 = vector.extract_strided_slice %210 {offsets = [0, 0], sizes = [45, 128], strides = [1, 1]} : vector<90x128xf32> to vector<45x128xf32>
    %cst_126 = arith.constant 5.000000e-01 : f32
    %212 = vector.broadcast %cst_126 : f32 to vector<45x128xf32>
    %213 = arith.mulf %212, %211 : vector<45x128xf32>
    %214 = math.tanh %213 : vector<45x128xf32>
    %cst_127 = arith.constant 1.000000e+00 : f32
    %215 = vector.broadcast %cst_127 : f32 to vector<45x128xf32>
    %216 = arith.mulf %215, %214 : vector<45x128xf32>
    %217 = math.exp %216 : vector<45x128xf32>
    %218 = arith.mulf %195, %217 : vector<45x128xf32>
    %219 = vector.extract_strided_slice %210 {offsets = [45, 0], sizes = [45, 128], strides = [1, 1]} : vector<90x128xf32> to vector<45x128xf32>
    %220 = arith.addf %218, %219 : vector<45x128xf32>
    %221 = tpu.concatenate %203, %220 in 0 : vector<3x128xf32>, vector<45x128xf32> -> vector<48x128xf32>
    %c0_128 = arith.constant 0 : index
    %c0_129 = arith.constant 0 : index
    %c0_130 = arith.constant 0 : index
    %222 = vector.load %arg12[%c0_128, %c0_129, %c0_130] : memref<1x48x128xf32, #tpu.memory_space<vmem>>, vector<1x48x128xf32>
    %223 = vector.shape_cast %222 : vector<1x48x128xf32> to vector<48x128xf32>
    %224 = vector.shape_cast %221 : vector<48x128xf32> to vector<1x48x128xf32>
    tpu.vector_store %arg12[%c0_128, %c0_129, %c0_130], %224 {strides = array<i32>} : memref<1x48x128xf32, #tpu.memory_space<vmem>>, vector<1x48x128xf32>,
    %c0_131 = arith.constant 0 : index
    %c0_132 = arith.constant 0 : index
    %c0_133 = arith.constant 0 : index
    %225 = vector.load %arg13[%c0_131, %c0_132, %c0_133] : memref<1x3x128xf32, #tpu.memory_space<vmem>>, vector<1x3x128xf32>
    %226 = vector.shape_cast %225 : vector<1x3x128xf32> to vector<3x128xf32>
    %227 = vector.shape_cast %126 : vector<3x128xf32> to vector<1x3x128xf32>
    tpu.vector_store %arg13[%c0_131, %c0_132, %c0_133], %227 {strides = array<i32>} : memref<1x3x128xf32, #tpu.memory_space<vmem>>, vector<1x3x128xf32>,
    return
  }
  func.func @transform_0(%arg0: i32, %arg1: i32) -> (i32, i32, i32) {
    %c0_i32 = arith.constant 0 : i32
    %c0_i32_0 = arith.constant 0 : i32
    return %arg0, %c0_i32, %arg1 : i32, i32, i32
  }
  func.func @transform_1(%arg0: i32, %arg1: i32) -> (i32, i32) {
    %c0_i32 = arith.constant 0 : i32
    %c0_i32_0 = arith.constant 0 : i32
    %c0_i32_1 = arith.constant 0 : i32
    return %c0_i32, %c0_i32_0 : i32, i32
  }
  func.func @transform_2(%arg0: i32, %arg1: i32) -> (i32, i32, i32) {
    %c0_i32 = arith.constant 0 : i32
    %c0_i32_0 = arith.constant 0 : i32
    %c0_i32_1 = arith.constant 0 : i32
    %c0_i32_2 = arith.constant 0 : i32
    return %c0_i32, %c0_i32_0, %c0_i32_1 : i32, i32, i32
  }
  func.func @transform_3(%arg0: i32, %arg1: i32) -> (i32, i32, i32) {
    %c0_i32 = arith.constant 0 : i32
    %c0_i32_0 = arith.constant 0 : i32
    %c0_i32_1 = arith.constant 0 : i32
    %c0_i32_2 = arith.constant 0 : i32
    return %c0_i32, %c0_i32_0, %c0_i32_1 : i32, i32, i32
  }
  func.func @transform_4(%arg0: i32, %arg1: i32) -> (i32, i32, i32) {
    %c0_i32 = arith.constant 0 : i32
    %c0_i32_0 = arith.constant 0 : i32
    %c0_i32_1 = arith.constant 0 : i32
    %c0_i32_2 = arith.constant 0 : i32
    return %c0_i32, %c0_i32_0, %c0_i32_1 : i32, i32, i32
  }
  func.func @transform_5(%arg0: i32, %arg1: i32) -> (i32, i32, i32) {
    %c0_i32 = arith.constant 0 : i32
    %c0_i32_0 = arith.constant 0 : i32
    %c0_i32_1 = arith.constant 0 : i32
    %c0_i32_2 = arith.constant 0 : i32
    return %c0_i32, %c0_i32_0, %c0_i32_1 : i32, i32, i32
  }
  func.func @transform_6(%arg0: i32, %arg1: i32) -> (i32, i32, i32) {
    %c0_i32 = arith.constant 0 : i32
    %c0_i32_0 = arith.constant 0 : i32
    %c0_i32_1 = arith.constant 0 : i32
    %c0_i32_2 = arith.constant 0 : i32
    return %c0_i32, %c0_i32_0, %c0_i32_1 : i32, i32, i32
  }
  func.func @transform_7(%arg0: i32, %arg1: i32) -> (i32, i32, i32) {
    %c0_i32 = arith.constant 0 : i32
    %c0_i32_0 = arith.constant 0 : i32
    %c0_i32_1 = arith.constant 0 : i32
    %c0_i32_2 = arith.constant 0 : i32
    return %c0_i32, %c0_i32_0, %c0_i32_1 : i32, i32, i32
  }
  func.func @transform_8(%arg0: i32, %arg1: i32) -> (i32, i32, i32) {
    %c0_i32 = arith.constant 0 : i32
    %c0_i32_0 = arith.constant 0 : i32
    %c0_i32_1 = arith.constant 0 : i32
    %c0_i32_2 = arith.constant 0 : i32
    return %c0_i32, %c0_i32_0, %c0_i32_1 : i32, i32, i32
  }
  func.func @transform_9(%arg0: i32, %arg1: i32) -> (i32, i32, i32) {
    %c0_i32 = arith.constant 0 : i32
    %c0_i32_0 = arith.constant 0 : i32
    %c0_i32_1 = arith.constant 0 : i32
    %c0_i32_2 = arith.constant 0 : i32
    return %c0_i32, %c0_i32_0, %c0_i32_1 : i32, i32, i32
  }
  func.func @transform_10(%arg0: i32, %arg1: i32) -> (i32, i32, i32) {
    %c0_i32 = arith.constant 0 : i32
    %c0_i32_0 = arith.constant 0 : i32
    return %arg0, %c0_i32, %arg1 : i32, i32, i32
  }
  func.func @transform_11(%arg0: i32, %arg1: i32) -> (i32, i32, i32) {
    %c0_i32 = arith.constant 0 : i32
    %c0_i32_0 = arith.constant 0 : i32
    return %arg0, %c0_i32, %arg1 : i32, i32, i32
  }
}

</mosaic_0001>

<bundles_post_ra>
// kernel: sainet_forward.1
= control target key start
LH: loop header
LB: loop body
LE: loop exit
PB: predicated region body
PF: predicated region fallthrough
CT: control target
= control target key end

     0   :  { %s5418_s17 = smov 0   ;;  %s5420_s18 = smov 0   ;;  %s6662_s0 = inlined_call_operand.vmem [shape: f32[2,48,128], index: 0, kind: input, shape index: {}]   ;;  %s6663_s1 = inlined_call_operand.vmem [shape: f32[48,48], index: 1, kind: input, shape index: {}]   ;;  %s6664_s2 = inlined_call_operand.vmem [shape: f32[5,6,45], index: 2, kind: input, shape index: {}]   ;;  %s6665_s3 = inlined_call_operand.vmem [shape: f32[5,6,1], index: 3, kind: input, shape index: {}]   ;;  %s6666_s4 = inlined_call_operand.vmem [shape: f32[5,90,3], index: 4, kind: input, shape index: {}]   ;;  %s6667_s5 = inlined_call_operand.vmem [shape: f32[5,90,1], index: 5, kind: input, shape index: {}]   ;;  %s6668_s6 = inlined_call_operand.vmem [shape: f32[3,3,45], index: 6, kind: input, shape index: {}]   ;;  %s6669_s7 = inlined_call_operand.vmem [shape: f32[3,3,1], index: 7, kind: input, shape index: {}]   ;;  %s6670_s8 = inlined_call_operand.vmem [shape: f32[3,90,3], index: 8, kind: input, shape index: {}]   ;;  %s6671_s9 = inlined_call_operand.vmem [shape: f32[3,90,1], index: 9, kind: input, shape index: {}]   ;;  %s6672_s10 = inlined_call_operand.vmem [shape: f32[2,48,128], index: 10, kind: output, shape index: {0}]   ;;  %s6673_s11 = inlined_call_operand.vmem [shape: f32[2,3,128], index: 11, kind: output, shape index: {1}]  }
   0x1   :  { %s5422_s19 = smov 0  }
   0x2 LB: > { %s34_s20 = sadd.s32 1, %s5347_s18  ;;  %p4252_p0 = scmp.ge.s32.totalorder %s5351_s19, 1  ;;  %s5351_s19 = sphi %s5422_s19, %s22_s19   ;;  %s5347_s18 = sphi %s5420_s18, %s6677_s18   ;;  %s5343_s17 = sphi %s5418_s17, %s6676_s17  }
   0x3   : > { %p36_p1 = scmp.ge.s32.totalorder %s34_s20, 2  ;;  %p361_p2 = scmp.lt.s32.totalorder %s5351_s19, 3 }
   0x5   : > { %s6679_s20 = smov (%p36_p1, %s34_s20), 0  ;;  %p362_p3 = pnand %p4252_p0, %p361_p2 }
   0x6   : > { %p414_p4 = scmp.lt.s32.totalorder (!%p362_p3), %s5343_s17, 1  ;;  %v437_v0 = vld [vmem:[%s6663_s1] sm:$0xff] (!%p362_p3)  ;;  %vm449_vm0 = vcmask (!%p362_p3), 392192   ;;  %v5353_v1 = vmov (!%p362_p3), 0   ;;  %v689_v9 = vld [vmem:[%s6667_s5 + $0x18] sm:$0xff] (!%p362_p3)  ;;  %v691_v14 = vld [vmem:[%s6667_s5 + $0x28] sm:$0xff] (!%p362_p3) }
   0x7   : > { %365 = sbr.rel (%p362_p3) target bundleno = 4153 (0x1039), region = 60  ;;  %4724 = vmatprep.mubr.msk.f32.mxu0 (!%p362_p3), %vm449_vm0, %v437_v0  ;;  %5135 = vset.pattern.permute.xlu0 (!%p362_p3), %v5353_v1  ;;  %v564_v2 = vld [vmem:[%s6665_s3] sm:$0x3f] (!%p362_p3)  ;;  %v693_v15 = vld [vmem:[%s6667_s5 + $0x38] sm:$0xff] (!%p362_p3)  ;;  %v438_v16 = vld [vmem:[%s6663_s1 + $0x8] sm:$0xff] (!%p362_p3)  ;;  %v5354_v44 = vmov (!%p362_p3), 0.0|0.0  }
   0x8   : > { %5136 = vset.pattern.permute.xlu1 (!%p362_p3), %v5353_v1  ;;  %567 = vperm.xlu0 (!%p362_p3), %5135, %v564_v2   ;;  %v686_v3 = vld [vmem:[%s6667_s5] sm:$0xff] (!%p362_p3)  ;;  %v439_v17 = vld [vmem:[%s6663_s1 + $0x10] sm:$0xff] (!%p362_p3)  ;;  %v695_v18 = vld [vmem:[%s6667_s5 + $0x48] sm:$0xff] (!%p362_p3)  ;;  %vm5355_vm1 = vmmov (!%p362_p3), 0   ;;  %v5356_v48 = vmov (!%p362_p3), 0.0   ;;  %vm576_vm2 = vcmask (!%p362_p3), 1044480  }
   0x9   : > { %v440_v19 = vld [vmem:[%s6663_s1 + $0x18] sm:$0xff] (!%p362_p3)  ;;  %v441_v20 = vld [vmem:[%s6663_s1 + $0x20] sm:$0xff] (!%p362_p3)  ;;  %v442_v22 = vld [vmem:[%s6663_s1 + $0x28] sm:$0xff] (!%p362_p3)  ;;  %5025 = vmatprep.subr.bf16.mxu1 (!%p362_p3), %v5354_v44  ;;  %4745 = vmatprep.mubr.msk.f32.mxu1 (!%p362_p3), %vm5355_vm1, %v5356_v48  ;;  %vm5357_vm3 = vmmov (!%p362_p3), 1   ;;  %vm593_vm5 = vcmask (!%p362_p3), 367616   ;;  %vm758_vm6 = vcmask (!%p362_p3), 23552  }
   0xa   : > { %v697_v21 = vld [vmem:[%s6667_s5 + $0x58] sm:$0x3] (!%p362_p3)  ;;  %v4293_v23 = vld [vmem:[%s6667_s5 + $0x60] sm:$0xff] (!%p362_p3)  ;;  %v4295_v24 = vld [vmem:[%s6667_s5 + $0x70] sm:$0xff] (!%p362_p3)  ;;  %vm795_vm7 = vcmask (!%p362_p3), 1042432   ;;  %vm984_vm8 = vcmask (!%p362_p3), 1045504  }
   0xb   : > { %v4297_v25 = vld [vmem:[%s6667_s5 + $0x80] sm:$0xff] (!%p362_p3)  ;;  %v4299_v26 = vld [vmem:[%s6667_s5 + $0x90] sm:$0xff] (!%p362_p3)  ;;  %v4335_v30 = vld [vmem:[%s6667_s5 + $0xc8] sm:$0xff] (!%p362_p3) }
   0xc   : > { %700 = vperm.xlu0 (!%p362_p3), %5135, %v686_v3   ;;  %v4301_v27 = vld [vmem:[%s6667_s5 + $0xa0] sm:$0xff] (!%p362_p3)  ;;  %v4303_v28 = vld [vmem:[%s6667_s5 + $0xb0] sm:$0xff] (!%p362_p3)  ;;  %v4337_v31 = vld [vmem:[%s6667_s5 + $0xd8] sm:$0xff] (!%p362_p3) }
   0xd   : > { %v4319_v29 = vld [vmem:[%s6665_s3 + $0x10] sm:$0x3f] (!%p362_p3)  ;;  %v4339_v32 = vld [vmem:[%s6667_s5 + $0xe8] sm:$0xff] (!%p362_p3)  ;;  %v4341_v33 = vld [vmem:[%s6667_s5 + $0xf8] sm:$0xff] (!%p362_p3) }
   0xe   : > { %s6681_s17 = smov (!%p414_p4, %s5343_s17), 1  ;;  %v4343_v34 = vld [vmem:[%s6667_s5 + $0x108] sm:$0xff]  ;;  %v4345_v35 = vld [vmem:[%s6667_s5 + $0x118] sm:$0x3]  ;;  %v4375_v36 = vld [vmem:[%s6667_s5 + $0x120] sm:$0xff] }
   0xf   : > { %s5105_s25 = smul.u32 48, %s6681_s17  ;;  %v4377_v37 = vld [vmem:[%s6667_s5 + $0x130] sm:$0xff]  ;;  %v4379_v38 = vld [vmem:[%s6667_s5 + $0x140] sm:$0xff]  ;;  %v4417_v43 = vld [vmem:[%s6667_s5 + $0x188] sm:$0xff]  ;;  %s4255_s12 = sshll.u32 %s6681_s17, 2 }
  0x10   : > { %715 = vperm.xlu0 %5135, %v689_v9   ;;  %v4381_v39 = vld [vmem:[%s6667_s5 + $0x150] sm:$0xff]  ;;  %v4383_v40 = vld [vmem:[%s6667_s5 + $0x160] sm:$0xff]  ;;  %v4419_v45 = vld [vmem:[%s6667_s5 + $0x198] sm:$0xff]  ;;  %s436_s15 = scalar_lea.vmem %s6673_s11, %s4255_s12 }
  0x11   : > { %s421_s30 = scalar_lea.vmem %s6662_s0, %s5105_s25  ;;  %v4385_v41 = vld [vmem:[%s6667_s5 + $0x170] sm:$0xff]  ;;  %v4401_v42 = vld [vmem:[%s6665_s3 + $0x20] sm:$0x3f]  ;;  %v4421_v46 = vld [vmem:[%s6667_s5 + $0x1a8] sm:$0xff]  ;;  %s429_s24 = scalar_lea.vmem %s6672_s10, %s5105_s25 }
  0x12   : > { %v443_v4 = vld [vmem:[%s421_s30] sm:$0xff]  ;;  %v444_v5 = vld [vmem:[%s421_s30 + $0x8] sm:$0xff]  ;;  %v445_v6 = vld [vmem:[%s421_s30 + $0x10] sm:$0xff] }
  0x13   : > { %v5013_v7 = vpack.c.bf16 %v444_v5, %v443_v4  ;;  %v446_v8 = vld [vmem:[%s421_s30 + $0x18] sm:$0xff]  ;;  %v447_v11 = vld [vmem:[%s421_s30 + $0x20] sm:$0xff]  ;;  %v448_v12 = vld [vmem:[%s421_s30 + $0x28] sm:$0xff] }
  0x14   : > { %v5017_v10 = vpack.c.bf16 %v446_v8, %v445_v6  ;;  %v5021_v13 = vpack.c.bf16 %v448_v12, %v447_v11  ;;  %725 = vperm.xlu0 %5135, %v691_v14   ;;  %v4423_v47 = vld [vmem:[%s6667_s5 + $0x1b8] sm:$0xff]  ;;  %v4425_v49 = vld [vmem:[%s6667_s5 + $0x1c8] sm:$0xff]  ;;  %v2911_v52 = vld [vmem:[%s6671_s9] sm:$0xff] }
  0x15   : > { %5014 = vmatprep.subr.bf16.mxu0 %v5013_v7  ;;  %v4427_v50 = vld [vmem:[%s6667_s5 + $0x1d8] sm:$0x3]  ;;  %v687_v51 = vld [vmem:[%s6667_s5 + $0x8] sm:$0xff]  ;;  %v688_v53 = vld [vmem:[%s6667_s5 + $0x10] sm:$0xff] }
  0x16   : > { %5016 = vmatpush3.bf16.msra.mxu0 %v5013_v7  ;;  %705 = vperm.xlu1 %5136, %v687_v51   ;;  %v2913_v54 = vld [vmem:[%s6671_s9 + $0x10] sm:$0xff]  ;;  %v690_v55 = vld [vmem:[%s6667_s5 + $0x20] sm:$0xff]  ;;  %v4278_v63 = vld [vmem:[%s6665_s3 + $0x8] sm:$0x3f] }
  0x17   : > { %5018 = vmatprep.subr.bf16.mxu0 %v5017_v10  ;;  %v2915_v56 = vld [vmem:[%s6671_s9 + $0x20] sm:$0xff]  ;;  %v692_v57 = vld [vmem:[%s6667_s5 + $0x30] sm:$0xff]  ;;  %v4294_v1 = vld [vmem:[%s6667_s5 + $0x68] sm:$0xff] }
  0x18   : > { %735 = vperm.xlu0 %5135, %v693_v15   ;;  %v2917_v58 = vld [vmem:[%s6671_s9 + $0x30] sm:$0xff]  ;;  %v694_v59 = vld [vmem:[%s6667_s5 + $0x40] sm:$0xff]  ;;  %v4473_v2 = vld [vmem:[%s6671_s9 + $0x68] sm:$0xff] }
  0x19   : > { %v2919_v60 = vld [vmem:[%s6671_s9 + $0x40] sm:$0xff]  ;;  %v696_v61 = vld [vmem:[%s6667_s5 + $0x50] sm:$0xff]  ;;  %v4296_v3 = vld [vmem:[%s6667_s5 + $0x78] sm:$0xff] }
  0x1a   : > { %5020 = vmatpush3.bf16.msra.mxu0 %v5017_v10  ;;  %710 = vperm.xlu1 %5136, %v688_v53   ;;  %v2921_v62 = vld [vmem:[%s6671_s9 + $0x50] sm:$0xff]  ;;  %v4457_v0 = vld [vmem:[%s6669_s7 + $0x4] sm:$0x7]  ;;  %v4475_v4 = vld [vmem:[%s6671_s9 + $0x78] sm:$0xff] }
  0x1b   : > { %5022 = vmatprep.subr.bf16.mxu0 %v5021_v13  ;;  %v4298_v5 = vld [vmem:[%s6667_s5 + $0x88] sm:$0xff]  ;;  %v4300_v7 = vld [vmem:[%s6667_s5 + $0x98] sm:$0xff]  ;;  %v4513_v14 = vld [vmem:[%s6671_s9 + $0xc0] sm:$0xff] }
  0x1c   : > { %745 = vperm.xlu0 %5135, %v695_v18   ;;  %v4477_v6 = vld [vmem:[%s6671_s9 + $0x88] sm:$0xff]  ;;  %v4479_v8 = vld [vmem:[%s6671_s9 + $0x98] sm:$0xff]  ;;  %v4336_v15 = vld [vmem:[%s6667_s5 + $0xd0] sm:$0xff] }
  0x1d   : > { %v4302_v9 = vld [vmem:[%s6667_s5 + $0xa8] sm:$0xff]  ;;  %v4304_v11 = vld [vmem:[%s6667_s5 + $0xb8] sm:$0x3]  ;;  %v4517_v18 = vld [vmem:[%s6671_s9 + $0xe0] sm:$0xff] }
  0x1e   : > { %5024 = vmatpush3.bf16.msra.mxu0 %v5021_v13  ;;  %720 = vperm.xlu1 %5136, %v690_v55   ;;  %v4481_v10 = vld [vmem:[%s6671_s9 + $0xa8] sm:$0xff]  ;;  %v4483_v12 = vld [vmem:[%s6671_s9 + $0xb8] sm:$0x3]  ;;  %v4334_v13 = vld [vmem:[%s6667_s5 + $0xc0] sm:$0xff] }
  0x1f   : > { %5035 = vmatprep.subr.bf16.mxu0 %v5354_v44  ;;  %vm5746_vm4 = vmpackc.low %vm576_vm2, %vm5357_vm3 }
  0x20   : > { %755 = vperm.xlu0 %5135, %v697_v21   ;;  %v4519_v21 = vld [vmem:[%s6671_s9 + $0xf0] sm:$0xff] }
  0x21   : > { %4725 = vmatmul.mubr.msk.f32.vlgmr.msra.gmra.mrb[0].mxu0 %vm449_vm0, %v438_v16  ;;  %v4515_v16 = vld [vmem:[%s6671_s9 + $0xd0] sm:$0xff] }
  0x22   : > { %4727 = vmatprep.mubr.msk.f32.mxu0 %vm449_vm0, %v439_v17  ;;  %730 = vperm.xlu1 %5136, %v692_v57   ;;  %v4338_v17 = vld [vmem:[%s6667_s5 + $0xe0] sm:$0xff] }
  0x24   : > { %1149 = vperm.xlu0 %5135, %v4293_v23   ;;  %v4521_v23 = vld [vmem:[%s6671_s9 + $0x100] sm:$0xff] }
  0x25   : > { %4728 = vmatmul.mubr.msk.f32.gmra.mrb[2].mxu0 %vm449_vm0, %v440_v19  ;;  %v4340_v19 = vld [vmem:[%s6667_s5 + $0xf0] sm:$0xff] }
  0x26   : > { %4730 = vmatprep.mubr.msk.f32.mxu0 %vm449_vm0, %v441_v20  ;;  %740 = vperm.xlu1 %5136, %v694_v59   ;;  %v4502_v59 = vld [vmem:[%s6670_s8 + $0xc8] sm:$0xff] }
  0x28   : > { %1159 = vperm.xlu0 %5135, %v4295_v24   ;;  %v4344_v24 = vld [vmem:[%s6667_s5 + $0x110] sm:$0xff] }
  0x29   : > { %4731 = vmatmul.mubr.msk.f32.gmra.mrb[4].mxu0 %vm449_vm0, %v442_v22  ;;  %v4342_v22 = vld [vmem:[%s6667_s5 + $0x100] sm:$0xff] }
  0x2a   : > { %4780 = vmatprep.mubr.msk.f32.mxu0 %vm5355_vm1, %v5356_v48  ;;  %750 = vperm.xlu1 %5136, %v696_v61   ;;  %v4420_v61 = vld [vmem:[%s6667_s5 + $0x1a0] sm:$0xff] }
  0x2c   : > { %1169 = vperm.xlu0 %5135, %v4297_v25  }
  0x2e   : > { %1016 = vperm.xlu1 %5136, %v4278_v63   ;;  %v674_v63 = vld [vmem:[%s6666_s4] sm:$0xff] }
  0x30   : > { %1179 = vperm.xlu0 %5135, %v4299_v26   ;;  %v4523_v26 = vld [vmem:[%s6671_s9 + $0x110] sm:$0xff] }
  0x32   : > { %1154 = vperm.xlu1 %5136, %v4294_v1   ;;  %v4426_v1 = vld [vmem:[%s6667_s5 + $0x1d0] sm:$0xff] }
  0x34   : > { %1189 = vperm.xlu0 %5135, %v4301_v27   ;;  %v4360_v27 = vld [vmem:[%s6665_s3 + $0x18] sm:$0x3f] }
  0x36   : > { %1164 = vperm.xlu1 %5136, %v4296_v3   ;;  %v2912_v3 = vld [vmem:[%s6671_s9 + $0x8] sm:$0xff] }
  0x38   : > { %1199 = vperm.xlu0 %5135, %v4303_v28  }
  0x3a   : > { %1174 = vperm.xlu1 %5136, %v4298_v5   ;;  %v2916_v5 = vld [vmem:[%s6671_s9 + $0x28] sm:$0xff] }
  0x3c   : > { %1462 = vperm.xlu0 %5135, %v4319_v29   ;;  %v4376_v29 = vld [vmem:[%s6667_s5 + $0x128] sm:$0xff] }
  0x3e   : > { %1184 = vperm.xlu1 %5136, %v4300_v7   ;;  %v2920_v7 = vld [vmem:[%s6671_s9 + $0x48] sm:$0xff] }
  0x40   : > { %1600 = vperm.xlu0 %5135, %v4335_v30   ;;  %v4378_v30 = vld [vmem:[%s6667_s5 + $0x138] sm:$0xff] }
  0x42   : > { %1194 = vperm.xlu1 %5136, %v4302_v9   ;;  %v4472_v9 = vld [vmem:[%s6671_s9 + $0x60] sm:$0xff] }
  0x44   : > { %1610 = vperm.xlu0 %5135, %v4337_v31   ;;  %v4380_v31 = vld [vmem:[%s6667_s5 + $0x148] sm:$0xff] }
  0x46   : > { %1204 = vperm.xlu1 %5136, %v4304_v11   ;;  %v4476_v11 = vld [vmem:[%s6671_s9 + $0x80] sm:$0xff] }
  0x48   : > { %1620 = vperm.xlu0 %5135, %v4339_v32   ;;  %v4382_v32 = vld [vmem:[%s6667_s5 + $0x158] sm:$0xff] }
  0x4a   : > { %1595 = vperm.xlu1 %5136, %v4334_v13   ;;  %v4480_v13 = vld [vmem:[%s6671_s9 + $0xa0] sm:$0xff] }
  0x4c   : > { %1630 = vperm.xlu0 %5135, %v4341_v33   ;;  %v4384_v33 = vld [vmem:[%s6667_s5 + $0x168] sm:$0xff] }
  0x4e   : > { %1605 = vperm.xlu1 %5136, %v4336_v15   ;;  %v4498_v15 = vld [vmem:[%s6669_s7 + $0x8] sm:$0x7] }
  0x50   : > { %1640 = vperm.xlu0 %5135, %v4343_v34   ;;  %v4386_v34 = vld [vmem:[%s6667_s5 + $0x178] sm:$0x3] }
  0x52   : > { %1615 = vperm.xlu1 %5136, %v4338_v17   ;;  %v4516_v17 = vld [vmem:[%s6671_s9 + $0xd8] sm:$0xff] }
  0x54   : > { %1650 = vperm.xlu0 %5135, %v4345_v35  }
  0x56   : > { %1625 = vperm.xlu1 %5136, %v4340_v19  }
  0x58   : > { %2041 = vperm.xlu0 %5135, %v4375_v36  }
  0x5a   : > { %1635 = vperm.xlu1 %5136, %v4342_v22   ;;  %v4522_v22 = vld [vmem:[%s6671_s9 + $0x108] sm:$0xff] }
  0x5c   : > { %2051 = vperm.xlu0 %5135, %v4377_v37  }
  0x5e   : > { %1645 = vperm.xlu1 %5136, %v4344_v24   ;;  %v4524_v24 = vld [vmem:[%s6671_s9 + $0x118] sm:$0x3] }
  0x60   : > { %2061 = vperm.xlu0 %5135, %v4379_v38  }
  0x62   : > { %1908 = vperm.xlu1 %5136, %v4360_v27  }
  0x64   : > { %2071 = vperm.xlu0 %5135, %v4381_v39   ;;  %v4416_v39 = vld [vmem:[%s6667_s5 + $0x180] sm:$0xff] }
  0x66   : > { %2046 = vperm.xlu1 %5136, %v4376_v29  }
  0x68   : > { %2081 = vperm.xlu0 %5135, %v4383_v40  }
  0x6a   : > { %2056 = vperm.xlu1 %5136, %v4378_v30  }
  0x6c   : > { %2091 = vperm.xlu0 %5135, %v4385_v41  }
  0x6e   : > { %2066 = vperm.xlu1 %5136, %v4380_v31  }
  0x70   : > { %2354 = vperm.xlu0 %5135, %v4401_v42  }
  0x72   : > { %2076 = vperm.xlu1 %5136, %v4382_v32  }
  0x74   : > { %2492 = vperm.xlu0 %5135, %v4417_v43  }
  0x76   : > { %2086 = vperm.xlu1 %5136, %v4384_v33  }
  0x78   : > { %2502 = vperm.xlu0 %5135, %v4419_v45  }
  0x7a   : > { %2096 = vperm.xlu1 %5136, %v4386_v34   ;;  %v675_v34 = vld [vmem:[%s6666_s4 + $0x8] sm:$0xff] }
  0x7c   : > { %2512 = vperm.xlu0 %5135, %v4421_v46   ;;  %v4418_v46 = vld [vmem:[%s6667_s5 + $0x190] sm:$0xff] }
  0x7e   : > { %2487 = vperm.xlu1 %5136, %v4416_v39   ;;  %v679_v39 = vld [vmem:[%s6666_s4 + $0x28] sm:$0xff] }
  0x80   : > { %2522 = vperm.xlu0 %5135, %v4423_v47  }
  0x82   : > { %2497 = vperm.xlu1 %5136, %v4418_v46   ;;  %v683_v46 = vld [vmem:[%s6666_s4 + $0x48] sm:$0xff] }
  0x84   : > { %2532 = vperm.xlu0 %5135, %v4425_v49  }
  0x86   : > { %2507 = vperm.xlu1 %5136, %v4420_v61  }
  0x87   : > { %v5672_v20 = vpop.permute.xlu0 %567 }
  0x88   : > { %2542 = vperm.xlu0 %5135, %v4427_v50  }
  0x8b   : > { %v5686_v25 = vpop.permute.xlu0 %700 }
  0x8c   : > { %2925 = vperm.xlu0 %5135, %v2911_v52  }
  0x8f   : > { %v5694_v28 = vpop.permute.xlu0 %715 }
  0x90   : > { %2935 = vperm.xlu0 %5135, %v2913_v54  }
  0x94   : > { %2945 = vperm.xlu0 %5135, %v2915_v56  }
  0x95   : > { %v706_v19 = vpop.permute.xlu1 %705 }
  0x98   : > { %2955 = vperm.xlu0 %5135, %v2917_v58  }
  0x9c   : > { %2965 = vperm.xlu0 %5135, %v2919_v60   ;;  %v563_v60 = vld [vmem:[%s6664_s2] sm:$0x3f] }
  0xa0   : > { %2975 = vperm.xlu0 %5135, %v2921_v62   ;;  %v4422_v62 = vld [vmem:[%s6667_s5 + $0x1b0] sm:$0xff] }
  0xa1   : > { %2517 = vperm.xlu1 %5136, %v4422_v62  }
  0xa4   : > { %3238 = vperm.xlu0 %5135, %v4457_v0   ;;  %v4424_v0 = vld [vmem:[%s6667_s5 + $0x1c0] sm:$0xff] }
  0xa5   : > { %2527 = vperm.xlu1 %5136, %v4424_v0  }
  0xa8   : > { %3372 = vperm.xlu0 %5135, %v4473_v2   ;;  %v2795_v2 = vld [vmem:[%s6669_s7] sm:$0x7] }
  0xa9   : > { %2537 = vperm.xlu1 %5136, %v4426_v1  }
  0xac   : > { %3382 = vperm.xlu0 %5135, %v4475_v4   ;;  %v2914_v4 = vld [vmem:[%s6671_s9 + $0x18] sm:$0xff] }
  0xad   : > { %2798 = vperm.xlu1 %5136, %v2795_v2  }
  0xb0   : > { %3392 = vperm.xlu0 %5135, %v4477_v6   ;;  %v2918_v6 = vld [vmem:[%s6671_s9 + $0x38] sm:$0xff] }
  0xb1   : > { %2930 = vperm.xlu1 %5136, %v2912_v3  }
  0xb4   : > { %3402 = vperm.xlu0 %5135, %v4479_v8   ;;  %v2922_v8 = vld [vmem:[%s6671_s9 + $0x58] sm:$0x3] }
  0xb5   : > { %2940 = vperm.xlu1 %5136, %v2914_v4  }
  0xb8   : > { %3412 = vperm.xlu0 %5135, %v4481_v10   ;;  %v4474_v10 = vld [vmem:[%s6671_s9 + $0x70] sm:$0xff] }
  0xb9   : > { %2950 = vperm.xlu1 %5136, %v2916_v5  }
  0xbc   : > { %3422 = vperm.xlu0 %5135, %v4483_v12   ;;  %v4478_v12 = vld [vmem:[%s6671_s9 + $0x90] sm:$0xff] }
  0xbd   : > { %2960 = vperm.xlu1 %5136, %v2918_v6  }
  0xc0   : > { %3809 = vperm.xlu0 %5135, %v4513_v14   ;;  %v4482_v14 = vld [vmem:[%s6671_s9 + $0xb0] sm:$0xff] }
  0xc1   : > { %2970 = vperm.xlu1 %5136, %v2920_v7  }
  0xc4   : > { %3819 = vperm.xlu0 %5135, %v4515_v16   ;;  %v4514_v16 = vld [vmem:[%s6671_s9 + $0xc8] sm:$0xff] }
  0xc5   : > { %2980 = vperm.xlu1 %5136, %v2922_v8  }
  0xc8   : > { %3829 = vperm.xlu0 %5135, %v4517_v18   ;;  %v4518_v18 = vld [vmem:[%s6671_s9 + $0xe8] sm:$0xff] }
  0xc9   : > { %3367 = vperm.xlu1 %5136, %v4472_v9  }
  0xcc   : > { %3839 = vperm.xlu0 %5135, %v4519_v21   ;;  %v4520_v21 = vld [vmem:[%s6671_s9 + $0xf8] sm:$0xff] }
  0xcd   : > { %3377 = vperm.xlu1 %5136, %v4474_v10  }
  0xd0   : > { %3849 = vperm.xlu0 %5135, %v4521_v23   ;;  %v711_v23 = vpop.permute.xlu1 %710 }
  0xd1   : > { %3387 = vperm.xlu1 %5136, %v4476_v11  }
  0xd4   : > { %3859 = vperm.xlu0 %5135, %v4523_v26   ;;  %v721_v26 = vpop.permute.xlu1 %720 }
  0xd5   : > { %3397 = vperm.xlu1 %5136, %v4478_v12  }
  0xd8   : > { %v731_v4 = vpop.permute.xlu1 %730 }
  0xd9   : > { %3407 = vperm.xlu1 %5136, %v4480_v13  }
  0xdd   : > { %3417 = vperm.xlu1 %5136, %v4482_v14   ;;  %v741_v14 = vpop.permute.xlu1 %740 }
  0xe1   : > { %3680 = vperm.xlu1 %5136, %v4498_v15  }
  0xe5   : > { %3814 = vperm.xlu1 %5136, %v4514_v16  }
  0xe9   : > { %3824 = vperm.xlu1 %5136, %v4516_v17  }
  0xed   : > { %3834 = vperm.xlu1 %5136, %v4518_v18  }
  0xf1   : > { %3844 = vperm.xlu1 %5136, %v4520_v21  }
  0xf4   : > { %v5714_v35 = vpop.f32.mrb[0].mxu0 }
  0xf5   : > { %v578_v36 = vrot.slane %v5714_v35, 3  ;;  %v5717_v37 = vpop.f32.mrb[1].mxu0  ;;  %3854 = vperm.xlu1 %5136, %v4522_v22  }
  0xf6   : > { %v577_v38 = vrot.slane %v5717_v37, 3 }
  0xf8   : > { %v5723_v40 = vpop.f32.mrb[2].mxu0  ;;  %v579_v41 = vsel %vm576_vm2, %v577_v38, %v578_v36  ;;  %v678_v38 = vld [vmem:[%s6666_s4 + $0x20] sm:$0xff] }
  0xf9   : > { %v582_v42 = vrot.slane %v5723_v40, 3  ;;  %v5727_v43 = vpop.f32.mrb[3].mxu0  ;;  %3864 = vperm.xlu1 %5136, %v4524_v24  }
  0xfa   : > { %v580_v45 = vrot.slane %v5727_v43, 3 }
  0xfc   : > { %v5733_v47 = vpop.f32.mrb[4].mxu0  ;;  %v581_v49 = vsel %vm576_vm2, %v578_v36, %v580_v45  ;;  %v583_v50 = vsel %vm576_vm2, %v580_v45, %v582_v42  ;;  %v676_v36 = vld [vmem:[%s6666_s4 + $0x10] sm:$0xff]  ;;  %v682_v45 = vld [vmem:[%s6666_s4 + $0x40] sm:$0xff] }
  0xfd   : > { %v586_v51 = vrot.slane %v5733_v47, 3  ;;  %v5738_v52 = vpop.f32.mrb[5].mxu0  ;;  %v5026_v53 = vpack.c.bf16 %v581_v49, %v579_v41  ;;  %v680_v41 = vld [vmem:[%s6666_s4 + $0x30] sm:$0xff] }
  0xfe   : > { %v584_v54 = vrot.slane %v5738_v52, 3  ;;  %v684_v49 = vld [vmem:[%s6666_s4 + $0x50] sm:$0xff] }
  0xff   : > { %5027 = vmatpush3.bf16.msra.mxu1 %v5026_v53 }
 0x100   : > { %v587_v55 = vsel %vm576_vm2, %v584_v54, %v586_v51  ;;  %5028 = vmatprep.subr.bf16.mxu1 %v5354_v44  ;;  %v585_v56 = vsel %vm576_vm2, %v582_v42, %v584_v54  ;;  %v681_v42 = vld [vmem:[%s6666_s4 + $0x38] sm:$0xff] }
 0x101   : > { %v5032_v57 = vpack.c.bf16 %v586_v51, %v587_v55  ;;  %v5029_v58 = vpack.c.bf16 %v585_v56, %v583_v50  ;;  %v685_v50 = vld [vmem:[%s6666_s4 + $0x58] sm:$0x3]  ;;  %v726_v55 = vpop.permute.xlu0 %725 }
 0x103   : > { %5030 = vmatpush3.bf16.msra.mxu1 %v5029_v58 }
 0x104   : > { %5031 = vmatprep.subr.bf16.mxu1 %v5354_v44 }
 0x105   : > { %v736_v1 = vpop.permute.xlu0 %735 }
 0x107   : > { %5034 = vmatpush3.bf16.msk.msra.mxu1 %vm5746_vm4, %v5032_v57 }
 0x10a   : > { %4746 = vmatmul.mubr.msk.f32.vlgmr.msra.gmra.mrb[0].mxu1 %vm593_vm5, %v563_v60 }
 0x10b   : > { %4750 = vmatprep.mubr.msk.f32.mxu1 %vm758_vm6, %v674_v63 }
 0x1dd   : > { %v665_v27 = vpop.f32.mrb[0].mxu1 }
 0x1de   : > { %v666_v29 = vadd.f32 %v665_v27, %v5672_v20  ;;  %v4747_v30 = vpop.f32.mrb[1].mxu1  ;;  %v677_v20 = vld [vmem:[%s6666_s4 + $0x18] sm:$0xff] }
 0x1e0   : > { %v669_v31 = vadd.f32 %v666_v29, %v5717_v37  ;;  %v671_v32 = vrot.slane %v666_v29, 3 }
 0x1e2   : > { %v5834_v33 = vsub.f32 %v669_v31, %v671_v32 }
 0x1e4   : > { %4748 = vmatprep.subr.msk.mxu1 %vm795_vm7, %v5834_v33 }
 0x1e5   : > { %4749 = vmatpush3.msk.msra.mxu1 %vm795_vm7, %v5834_v33 }
 0x1e6   : > { %4751 = vmatmul.mubr.msk.f32.vlgmr.msra.gmra.mrb[2].mxu1 %vm758_vm6, %v675_v34  ;;  %5045 = vmatprep.subr.bf16.mxu1 %v5354_v44 }
 0x1e7   : > { %4753 = vmatprep.mubr.msk.f32.mxu1 %vm758_vm6, %v676_v36 }
 0x1ea   : > { %4754 = vmatmul.mubr.msk.f32.gmra.mrb[4].mxu1 %vm758_vm6, %v677_v20 }
 0x1eb   : > { %4756 = vmatprep.mubr.msk.f32.mxu1 %vm758_vm6, %v678_v38 }
 0x1ee   : > { %4757 = vmatmul.mubr.msk.f32.gmra.mrb[6].mxu1 %vm758_vm6, %v679_v39  ;;  %v751_v39 = vpop.permute.xlu1 %750 }
 0x1ef   : > { %4759 = vmatprep.mubr.msk.f32.mxu1 %vm758_vm6, %v680_v41 }
 0x1f2   : > { %4760 = vmatmul.mubr.msk.f32.gmra.mrb[8].mxu1 %vm758_vm6, %v681_v42 }
 0x1f3   : > { %4762 = vmatprep.mubr.msk.f32.mxu1 %vm758_vm6, %v682_v45 }
 0x1f6   : > { %4763 = vmatmul.mubr.msk.f32.gmra.mrb[10].mxu1 %vm758_vm6, %v683_v46 }
 0x1f7   : > { %4765 = vmatprep.mubr.msk.f32.mxu1 %vm758_vm6, %v684_v49 }
 0x1fa   : > { %4766 = vmatmul.mubr.msk.f32.gmra.mrb[12].mxu1 %vm758_vm6, %v685_v50 }
 0x1fb   : > { %4815 = vmatprep.mubr.msk.f32.mxu1 %vm5355_vm1, %v5356_v48 }
 0x2b9   : > { %v4752_v51 = vpop.f32.mrb[2].mxu1 }
 0x2ba   : > { %v871_v53 = vadd.f32 %v4752_v51, %v706_v19  ;;  %v865_v54 = vpop.f32.mrb[3].mxu1 }
 0x2bb   : > { %v866_v56 = vadd.f32 %v865_v54, %v5686_v25 }
 0x2bc   : > { %v925_v57 = vmul.f32 0.5, %v871_v53 }
 0x2bd   : > { %v924_v58 = vmul.f32 0.5, %v866_v56  ;;  %v4755_v60 = vpop.f32.mrb[4].mxu1 }
 0x2be   : > { %5137 = vtanh.f32 %v925_v57  ;;  %v881_v61 = vadd.f32 %v4755_v60, %v5694_v28  ;;  %v875_v62 = vpop.f32.mrb[5].mxu1  ;;  %v746_v28 = vpop.permute.xlu0 %745 }
 0x2bf   : > { %5139 = vtanh.f32 %v924_v58  ;;  %v876_v63 = vadd.f32 %v875_v62, %v711_v23 }
 0x2c0   : > { %v927_v0 = vmul.f32 0.5, %v881_v61 }
 0x2c1   : > { %v926_v2 = vmul.f32 0.5, %v876_v63  ;;  %v4758_v3 = vpop.f32.mrb[6].mxu1 }
 0x2c2   : > { %5141 = vtanh.f32 %v927_v0  ;;  %v891_v5 = vadd.f32 %v4758_v3, %v726_v55  ;;  %v885_v6 = vpop.f32.mrb[7].mxu1  ;;  %v756_v34 = vpop.permute.xlu0 %755 }
 0x2c3   : > { %5143 = vtanh.f32 %v926_v2  ;;  %v886_v7 = vadd.f32 %v885_v6, %v721_v26 }
 0x2c4   : > { %v929_v25 = vmul.f32 0.5, %v891_v5  ;;  %v985_v18 = vrot.slane %v891_v5, 2 }
 0x2c5   : > { %v928_v8 = vmul.f32 0.5, %v886_v7  ;;  %v4761_v9 = vpop.f32.mrb[8].mxu1 }
 0x2c6   : > { %5145 = vtanh.f32 %v929_v25  ;;  %v901_v10 = vadd.f32 %v4761_v9, %v736_v1  ;;  %v895_v11 = vpop.f32.mrb[9].mxu1 }
 0x2c7   : > { %5147 = vtanh.f32 %v928_v8  ;;  %v896_v12 = vadd.f32 %v895_v11, %v731_v4 }
 0x2c8   : > { %v5138_v13 = vpop.eup %5137  ;;  %v988_v15 = vrot.slane %v901_v10, 2 }
 0x2c9   : > { %v5140_v16 = vpop.eup %5139  ;;  %v938_v17 = vmul.f32 1.442695, %v5138_v13  ;;  %v986_v19 = vrot.slane %v896_v12, 2  ;;  %v4764_v21 = vpop.f32.mrb[10].mxu1 }
 0x2ca   : > { %v936_v22 = vmul.f32 1.442695, %v5140_v16  ;;  %v911_v23 = vadd.f32 %v4764_v21, %v746_v28  ;;  %v905_v24 = vpop.f32.mrb[11].mxu1 }
 0x2cb   : > { %5149 = vpow2.f32 %v938_v17  ;;  %v987_v26 = vsel %vm984_vm8, %v985_v18, %v986_v19  ;;  %v989_v27 = vsel %vm984_vm8, %v986_v19, %v988_v15  ;;  %v906_v29 = vadd.f32 %v905_v24, %v741_v14 }
 0x2cc   : > { %v5142_v30 = vpop.eup %5141  ;;  %5151 = vpow2.f32 %v936_v22  ;;  %v992_v31 = vrot.slane %v911_v23, 2 }
 0x2cd   : > { %v5144_v32 = vpop.eup %5143  ;;  %v942_v36 = vmul.f32 1.442695, %v5142_v30  ;;  %v990_v20 = vrot.slane %v906_v29, 2  ;;  %v4767_v38 = vpop.f32.mrb[12].mxu1 }
 0x2ce   : > { %v940_v41 = vmul.f32 1.442695, %v5144_v32  ;;  %v921_v42 = vadd.f32 %v4767_v38, %v756_v34  ;;  %v915_v45 = vpop.f32.mrb[13].mxu1  ;;  %v4281_v38 = vld [vmem:[%s6666_s4 + $0x60] sm:$0xff] }
 0x2cf   : > { %5153 = vpow2.f32 %v942_v36  ;;  %v991_v46 = vsel %vm984_vm8, %v988_v15, %v990_v20  ;;  %v993_v49 = vsel %vm984_vm8, %v990_v20, %v992_v31  ;;  %v916_v50 = vadd.f32 %v915_v45, %v751_v39  ;;  %v4277_v20 = vld [vmem:[%s6664_s2 + $0x8] sm:$0x3f]  ;;  %v1017_v39 = vpop.permute.xlu1 %1016 }
 0x2d0   : > { %v5146_v51 = vpop.eup %5145  ;;  %5155 = vpow2.f32 %v940_v41  ;;  %v996_v53 = vrot.slane %v921_v42, 2 }
 0x2d1   : > { %v5148_v54 = vpop.eup %5147  ;;  %v946_v55 = vmul.f32 1.442695, %v5146_v51  ;;  %v994_v56 = vrot.slane %v916_v50, 2  ;;  %v4282_v51 = vld [vmem:[%s6666_s4 + $0x68] sm:$0xff] }
 0x2d2   : > { %v944_v57 = vmul.f32 1.442695, %v5148_v54  ;;  %v4285_v54 = vld [vmem:[%s6666_s4 + $0x80] sm:$0xff] }
 0x2d3   : > { %5157 = vpow2.f32 %v946_v55  ;;  %v995_v58 = vsel %vm984_vm8, %v992_v31, %v994_v56  ;;  %v997_v60 = vsel %vm984_vm8, %v994_v56, %v996_v53  ;;  %v4283_v53 = vld [vmem:[%s6666_s4 + $0x70] sm:$0xff]  ;;  %v4286_v55 = vld [vmem:[%s6666_s4 + $0x88] sm:$0xff] }
 0x2d4   : > { %5159 = vpow2.f32 %v944_v57  ;;  %v4287_v56 = vld [vmem:[%s6666_s4 + $0x90] sm:$0xff]  ;;  %v4288_v57 = vld [vmem:[%s6666_s4 + $0x98] sm:$0xff] }
 0x2d5   : > { %v5150_v61 = vpop.eup %5149 }
 0x2d6   : > { %v5152_v62 = vpop.eup %5151  ;;  %v955_v63 = vrot.slane %v5150_v61, 5  ;;  %v4291_v61 = vld [vmem:[%s6666_s4 + $0xb0] sm:$0xff] }
 0x2d7   : > { %v954_v0 = vrot.slane %v5152_v62, 5  ;;  %v4292_v62 = vld [vmem:[%s6666_s4 + $0xb8] sm:$0x3] }
 0x2d9   : > { %v5154_v1 = vpop.eup %5153  ;;  %v956_v2 = vsel %vm795_vm7, %v954_v0, %v955_v63  ;;  %v971_v3 = vmul.f32 %v954_v0, %v5717_v37  ;;  %v1150_v0 = vpop.permute.xlu0 %1149 }
 0x2da   : > { %v5156_v4 = vpop.eup %5155  ;;  %v959_v5 = vrot.slane %v5154_v1, 5  ;;  %v972_v6 = vmul.f32 %v5714_v35, %v956_v2 }
 0x2db   : > { %v957_v7 = vrot.slane %v5156_v4, 5  ;;  %v5898_v25 = vadd.f32 %v987_v26, %v971_v3 }
 0x2dc   : > { %v5900_v8 = vadd.f32 %v989_v27, %v972_v6 }
 0x2dd   : > { %v5158_v9 = vpop.eup %5157  ;;  %v958_v10 = vsel %vm795_vm7, %v955_v63, %v957_v7  ;;  %v960_v11 = vsel %vm795_vm7, %v957_v7, %v959_v5  ;;  %v1025_v15 = vrot.slane %v5898_v25, 3  ;;  %v1155_v63 = vpop.permute.xlu1 %1154 }
 0x2de   : > { %v5160_v28 = vpop.eup %5159  ;;  %v963_v12 = vrot.slane %v5158_v9, 5  ;;  %v973_v13 = vmul.f32 %v958_v10, %v5727_v43  ;;  %v974_v37 = vmul.f32 %v5723_v40, %v960_v11  ;;  %v1026_v35 = vrot.slane %v5900_v8, 3  ;;  %v1160_v2 = vpop.permute.xlu0 %1159 }
 0x2df   : > { %v961_v14 = vrot.slane %v5160_v28, 5 }
 0x2e0   : > { %v5908_v16 = vadd.f32 %v991_v46, %v973_v13  ;;  %v5910_v17 = vadd.f32 %v993_v49, %v974_v37  ;;  %v1027_v40 = vsel %vm576_vm2, %v1025_v15, %v1026_v35 }
 0x2e1   : > { %v962_v18 = vsel %vm795_vm7, %v959_v5, %v961_v14  ;;  %v964_v19 = vsel %vm795_vm7, %v961_v14, %v963_v12  ;;  %v1165_v1 = vpop.permute.xlu1 %1164 }
 0x2e2   : > { %v1028_v21 = vrot.slane %v5908_v16, 3  ;;  %v975_v22 = vmul.f32 %v962_v18, %v5738_v52  ;;  %v976_v43 = vmul.f32 %v5733_v47, %v964_v19  ;;  %v1030_v23 = vrot.slane %v5910_v17, 3  ;;  %v1170_v9 = vpop.permute.xlu0 %1169 }
 0x2e4   : > { %v5919_v24 = vadd.f32 %v995_v58, %v975_v22  ;;  %v5921_v26 = vadd.f32 %v997_v60, %v976_v43  ;;  %v1029_v27 = vsel %vm576_vm2, %v1026_v35, %v1028_v21  ;;  %v1031_v47 = vsel %vm576_vm2, %v1028_v21, %v1030_v23  ;;  %v4289_v58 = vld [vmem:[%s6666_s4 + $0xa0] sm:$0xff]  ;;  %v4290_v60 = vld [vmem:[%s6666_s4 + $0xa8] sm:$0xff] }
 0x2e5   : > { %v5036_v29 = vpack.c.bf16 %v1029_v27, %v1027_v40  ;;  %v1175_v6 = vpop.permute.xlu1 %1174 }
 0x2e6   : > { %v1032_v30 = vrot.slane %v5919_v24, 3  ;;  %v1034_v31 = vrot.slane %v5921_v26, 3  ;;  %v1180_v19 = vpop.permute.xlu0 %1179 }
 0x2e7   : > { %5037 = vmatpush3.bf16.msra.mxu0 %v5036_v29 }
 0x2e8   : > { %5038 = vmatprep.subr.bf16.mxu0 %v5354_v44  ;;  %v1033_v52 = vsel %vm576_vm2, %v1030_v23, %v1032_v30  ;;  %v1035_v34 = vsel %vm576_vm2, %v1032_v30, %v1034_v31 }
 0x2e9   : > { %v5039_v32 = vpack.c.bf16 %v1033_v52, %v1031_v47  ;;  %v5042_v36 = vpack.c.bf16 %v1034_v31, %v1035_v34  ;;  %v1185_v15 = vpop.permute.xlu1 %1184 }
 0x2eb   : > { %5040 = vmatpush3.bf16.msra.mxu0 %v5039_v32  ;;  %v1190_v32 = vpop.permute.xlu0 %1189 }
 0x2ec   : > { %5041 = vmatprep.subr.bf16.mxu0 %v5354_v44 }
 0x2ed   : > { %v1195_v31 = vpop.permute.xlu1 %1194 }
 0x2ef   : > { %5044 = vmatpush3.bf16.msk.msra.mxu0 %vm5746_vm4, %v5042_v36 }
 0x2f2   : > { %4781 = vmatmul.mubr.msk.f32.vlgmr.msra.gmra.mrb[6].mxu0 %vm593_vm5, %v4277_v20 }
 0x2f3   : > { %4785 = vmatprep.mubr.msk.f32.mxu0 %vm758_vm6, %v4281_v38 }
 0x3c5   : > { %v1112_v41 = vpop.f32.mrb[6].mxu0 }
 0x3c6   : > { %v1113_v42 = vadd.f32 %v1112_v41, %v1017_v39  ;;  %v4782_v45 = vpop.f32.mrb[7].mxu0 }
 0x3c8   : > { %v1116_v46 = vadd.f32 %v1113_v42, %v5834_v33  ;;  %v1118_v49 = vrot.slane %v1113_v42, 3  ;;  %v4284_v33 = vld [vmem:[%s6666_s4 + $0x78] sm:$0xff] }
 0x3ca   : > { %v5942_v50 = vsub.f32 %v1116_v46, %v1118_v49 }
 0x3cc   : > { %4783 = vmatprep.subr.msk.mxu0 %vm795_vm7, %v5942_v50 }
 0x3cd   : > { %4784 = vmatpush3.msk.msra.mxu0 %vm795_vm7, %v5942_v50 }
 0x3ce   : > { %4786 = vmatmul.mubr.msk.f32.vlgmr.msra.gmra.mrb[8].mxu0 %vm758_vm6, %v4282_v51  ;;  %5055 = vmatprep.subr.bf16.mxu0 %v5354_v44 }
 0x3cf   : > { %4788 = vmatprep.mubr.msk.f32.mxu0 %vm758_vm6, %v4283_v53 }
 0x3d2   : > { %4789 = vmatmul.mubr.msk.f32.gmra.mrb[10].mxu0 %vm758_vm6, %v4284_v33 }
 0x3d3   : > { %4791 = vmatprep.mubr.msk.f32.mxu0 %vm758_vm6, %v4285_v54 }
 0x3d6   : > { %4792 = vmatmul.mubr.msk.f32.gmra.mrb[12].mxu0 %vm758_vm6, %v4286_v55 }
 0x3d7   : > { %4794 = vmatprep.mubr.msk.f32.mxu0 %vm758_vm6, %v4287_v56  ;;  %v1205_v56 = vpop.permute.xlu1 %1204 }
 0x3da   : > { %4795 = vmatmul.mubr.msk.f32.gmra.mrb[14].mxu0 %vm758_vm6, %v4288_v57 }
 0x3db   : > { %4797 = vmatprep.mubr.msk.f32.mxu0 %vm758_vm6, %v4289_v58 }
 0x3de   : > { %4798 = vmatmul.mubr.msk.f32.gmra.mrb[16].mxu0 %vm758_vm6, %v4290_v60 }
 0x3df   : > { %4800 = vmatprep.mubr.msk.f32.mxu0 %vm758_vm6, %v4291_v61  ;;  %v1200_v61 = vpop.permute.xlu0 %1199 }
 0x3e2   : > { %4801 = vmatmul.mubr.msk.f32.gmra.mrb[18].mxu0 %vm758_vm6, %v4292_v62 }
 0x3e3   : > { %4850 = vmatprep.mubr.msk.f32.mxu0 %vm5355_vm1, %v5356_v48 }
 0x4a1   : > { %v4787_v3 = vpop.f32.mrb[8].mxu0 }
 0x4a2   : > { %v1318_v4 = vadd.f32 %v4787_v3, %v1155_v63  ;;  %v1312_v5 = vpop.f32.mrb[9].mxu0 }
 0x4a3   : > { %v1313_v7 = vadd.f32 %v1312_v5, %v1150_v0 }
 0x4a4   : > { %v1372_v10 = vmul.f32 0.5, %v1318_v4 }
 0x4a5   : > { %v1371_v11 = vmul.f32 0.5, %v1313_v7  ;;  %v4790_v28 = vpop.f32.mrb[10].mxu0 }
 0x4a6   : > { %5161 = vtanh.f32 %v1372_v10  ;;  %v1328_v12 = vadd.f32 %v4790_v28, %v1165_v1  ;;  %v1322_v13 = vpop.f32.mrb[11].mxu0 }
 0x4a7   : > { %5163 = vtanh.f32 %v1371_v11  ;;  %v1323_v37 = vadd.f32 %v1322_v13, %v1160_v2 }
 0x4a8   : > { %v1374_v14 = vmul.f32 0.5, %v1328_v12 }
 0x4a9   : > { %v1373_v35 = vmul.f32 0.5, %v1323_v37  ;;  %v4793_v18 = vpop.f32.mrb[12].mxu0 }
 0x4aa   : > { %5165 = vtanh.f32 %v1374_v14  ;;  %v1338_v21 = vadd.f32 %v4793_v18, %v1175_v6  ;;  %v1332_v22 = vpop.f32.mrb[13].mxu0 }
 0x4ab   : > { %5167 = vtanh.f32 %v1373_v35  ;;  %v1333_v43 = vadd.f32 %v1332_v22, %v1170_v9 }
 0x4ac   : > { %v1376_v40 = vmul.f32 0.5, %v1338_v21  ;;  %v1431_v38 = vrot.slane %v1338_v21, 2 }
 0x4ad   : > { %v1375_v23 = vmul.f32 0.5, %v1333_v43  ;;  %v4796_v27 = vpop.f32.mrb[14].mxu0 }
 0x4ae   : > { %5169 = vtanh.f32 %v1376_v40  ;;  %v1348_v29 = vadd.f32 %v4796_v27, %v1185_v15  ;;  %v1342_v30 = vpop.f32.mrb[15].mxu0 }
 0x4af   : > { %5171 = vtanh.f32 %v1375_v23  ;;  %v1343_v47 = vadd.f32 %v1342_v30, %v1180_v19 }
 0x4b0   : > { %v5162_v52 = vpop.eup %5161  ;;  %v1434_v34 = vrot.slane %v1348_v29, 2 }
 0x4b1   : > { %v5164_v36 = vpop.eup %5163  ;;  %v1385_v20 = vmul.f32 1.442695, %v5162_v52  ;;  %v1432_v39 = vrot.slane %v1343_v47, 2  ;;  %v4799_v41 = vpop.f32.mrb[16].mxu0 }
 0x4b2   : > { %v1383_v42 = vmul.f32 1.442695, %v5164_v36  ;;  %v1358_v45 = vadd.f32 %v4799_v41, %v1195_v31  ;;  %v1352_v46 = vpop.f32.mrb[17].mxu0 }
 0x4b3   : > { %5173 = vpow2.f32 %v1385_v20  ;;  %v1433_v49 = vsel %vm984_vm8, %v1431_v38, %v1432_v39  ;;  %v1435_v51 = vsel %vm984_vm8, %v1432_v39, %v1434_v34  ;;  %v1353_v53 = vadd.f32 %v1352_v46, %v1190_v32 }
 0x4b4   : > { %v5166_v33 = vpop.eup %5165  ;;  %5175 = vpow2.f32 %v1383_v42  ;;  %v1438_v54 = vrot.slane %v1358_v45, 2 }
 0x4b5   : > { %v5168_v55 = vpop.eup %5167  ;;  %v1389_v57 = vmul.f32 1.442695, %v5166_v33  ;;  %v1436_v58 = vrot.slane %v1353_v53, 2  ;;  %v4802_v60 = vpop.f32.mrb[18].mxu0 }
 0x4b6   : > { %v1387_v62 = vmul.f32 1.442695, %v5168_v55  ;;  %v1368_v63 = vadd.f32 %v4802_v60, %v1205_v56  ;;  %v1362_v0 = vpop.f32.mrb[19].mxu0  ;;  %v4322_v60 = vld [vmem:[%s6666_s4 + $0xc0] sm:$0xff] }
 0x4b7   : > { %5177 = vpow2.f32 %v1389_v57  ;;  %v1437_v1 = vsel %vm984_vm8, %v1434_v34, %v1436_v58  ;;  %v1439_v2 = vsel %vm984_vm8, %v1436_v58, %v1438_v54  ;;  %v1363_v3 = vadd.f32 %v1362_v0, %v1200_v61  ;;  %v4318_v58 = vld [vmem:[%s6664_s2 + $0x10] sm:$0x3f]  ;;  %v1463_v61 = vpop.permute.xlu0 %1462 }
 0x4b8   : > { %v5170_v4 = vpop.eup %5169  ;;  %5179 = vpow2.f32 %v1387_v62  ;;  %v1442_v5 = vrot.slane %v1368_v63, 2 }
 0x4b9   : > { %v5172_v6 = vpop.eup %5171  ;;  %v1393_v7 = vmul.f32 1.442695, %v5170_v4  ;;  %v1440_v9 = vrot.slane %v1363_v3, 2  ;;  %v4323_v4 = vld [vmem:[%s6666_s4 + $0xc8] sm:$0xff] }
 0x4ba   : > { %v1391_v10 = vmul.f32 1.442695, %v5172_v6  ;;  %v4326_v6 = vld [vmem:[%s6666_s4 + $0xe0] sm:$0xff] }
 0x4bb   : > { %5181 = vpow2.f32 %v1393_v7  ;;  %v1441_v11 = vsel %vm984_vm8, %v1438_v54, %v1440_v9  ;;  %v1443_v28 = vsel %vm984_vm8, %v1440_v9, %v1442_v5  ;;  %v4324_v5 = vld [vmem:[%s6666_s4 + $0xd0] sm:$0xff]  ;;  %v4327_v7 = vld [vmem:[%s6666_s4 + $0xe8] sm:$0xff] }
 0x4bc   : > { %5183 = vpow2.f32 %v1391_v10  ;;  %v4328_v9 = vld [vmem:[%s6666_s4 + $0xf0] sm:$0xff]  ;;  %v4329_v10 = vld [vmem:[%s6666_s4 + $0xf8] sm:$0xff] }
 0x4bd   : > { %v5174_v12 = vpop.eup %5173 }
 0x4be   : > { %v5176_v13 = vpop.eup %5175  ;;  %v1402_v37 = vrot.slane %v5174_v12, 5  ;;  %v4332_v12 = vld [vmem:[%s6666_s4 + $0x110] sm:$0xff] }
 0x4bf   : > { %v1401_v14 = vrot.slane %v5176_v13, 5  ;;  %v4333_v13 = vld [vmem:[%s6666_s4 + $0x118] sm:$0x3] }
 0x4c1   : > { %v5178_v15 = vpop.eup %5177  ;;  %v1403_v35 = vsel %vm795_vm7, %v1401_v14, %v1402_v37  ;;  %v1418_v18 = vmul.f32 %v1401_v14, %v5898_v25  ;;  %v1596_v14 = vpop.permute.xlu1 %1595 }
 0x4c2   : > { %v5180_v19 = vpop.eup %5179  ;;  %v1406_v21 = vrot.slane %v5178_v15, 5  ;;  %v1419_v22 = vmul.f32 %v1403_v35, %v5900_v8 }
 0x4c3   : > { %v1404_v43 = vrot.slane %v5180_v19, 5  ;;  %v6004_v40 = vadd.f32 %v1433_v49, %v1418_v18 }
 0x4c4   : > { %v6006_v23 = vadd.f32 %v1435_v51, %v1419_v22 }
 0x4c5   : > { %v5182_v27 = vpop.eup %5181  ;;  %v1405_v29 = vsel %vm795_vm7, %v1402_v37, %v1404_v43  ;;  %v1407_v30 = vsel %vm795_vm7, %v1404_v43, %v1406_v21  ;;  %v1471_v34 = vrot.slane %v6004_v40, 3  ;;  %v1601_v37 = vpop.permute.xlu0 %1600 }
 0x4c6   : > { %v5184_v31 = vpop.eup %5183  ;;  %v1410_v47 = vrot.slane %v5182_v27, 5  ;;  %v1420_v52 = vmul.f32 %v1405_v29, %v5908_v16  ;;  %v1421_v25 = vmul.f32 %v1407_v30, %v5910_v17  ;;  %v1472_v8 = vrot.slane %v6006_v23, 3  ;;  %v1606_v35 = vpop.permute.xlu1 %1605 }
 0x4c7   : > { %v1408_v32 = vrot.slane %v5184_v31, 5 }
 0x4c8   : > { %v6014_v36 = vadd.f32 %v1437_v1, %v1420_v52  ;;  %v6016_v20 = vadd.f32 %v1439_v2, %v1421_v25  ;;  %v1473_v17 = vsel %vm576_vm2, %v1471_v34, %v1472_v8 }
 0x4c9   : > { %v1409_v38 = vsel %vm795_vm7, %v1406_v21, %v1408_v32  ;;  %v1411_v39 = vsel %vm795_vm7, %v1408_v32, %v1410_v47  ;;  %v1611_v15 = vpop.permute.xlu0 %1610 }
 0x4ca   : > { %v1474_v41 = vrot.slane %v6014_v36, 3  ;;  %v1422_v42 = vmul.f32 %v1409_v38, %v5919_v24  ;;  %v1423_v16 = vmul.f32 %v1411_v39, %v5921_v26  ;;  %v1476_v45 = vrot.slane %v6016_v20, 3  ;;  %v1616_v27 = vpop.permute.xlu1 %1615 }
 0x4cc   : > { %v6025_v46 = vadd.f32 %v1441_v11, %v1422_v42  ;;  %v6027_v49 = vadd.f32 %v1443_v28, %v1423_v16  ;;  %v1475_v51 = vsel %vm576_vm2, %v1472_v8, %v1474_v41  ;;  %v1477_v24 = vsel %vm576_vm2, %v1474_v41, %v1476_v45  ;;  %v4330_v11 = vld [vmem:[%s6666_s4 + $0x100] sm:$0xff]  ;;  %v4331_v28 = vld [vmem:[%s6666_s4 + $0x108] sm:$0xff] }
 0x4cd   : > { %v5046_v53 = vpack.c.bf16 %v1475_v51, %v1473_v17  ;;  %v1621_v22 = vpop.permute.xlu0 %1620 }
 0x4ce   : > { %v1478_v33 = vrot.slane %v6025_v46, 3  ;;  %v1480_v54 = vrot.slane %v6027_v49, 3  ;;  %v1626_v39 = vpop.permute.xlu1 %1625 }
 0x4cf   : > { %5047 = vmatpush3.bf16.msra.mxu1 %v5046_v53 }
 0x4d0   : > { %5048 = vmatprep.subr.bf16.mxu1 %v5354_v44  ;;  %v1479_v26 = vsel %vm576_vm2, %v1476_v45, %v1478_v33  ;;  %v1481_v56 = vsel %vm576_vm2, %v1478_v33, %v1480_v54 }
 0x4d1   : > { %v5049_v55 = vpack.c.bf16 %v1479_v26, %v1477_v24  ;;  %v5052_v57 = vpack.c.bf16 %v1480_v54, %v1481_v56  ;;  %v1631_v34 = vpop.permute.xlu0 %1630 }
 0x4d3   : > { %5050 = vmatpush3.bf16.msra.mxu1 %v5049_v55  ;;  %v1636_v55 = vpop.permute.xlu1 %1635 }
 0x4d4   : > { %5051 = vmatprep.subr.bf16.mxu1 %v5354_v44 }
 0x4d5   : > { %v1641_v54 = vpop.permute.xlu0 %1640 }
 0x4d7   : > { %5054 = vmatpush3.bf16.msk.msra.mxu1 %vm5746_vm4, %v5052_v57 }
 0x4da   : > { %4816 = vmatmul.mubr.msk.f32.vlgmr.msra.gmra.mrb[14].mxu1 %vm593_vm5, %v4318_v58 }
 0x4db   : > { %4820 = vmatprep.mubr.msk.f32.mxu1 %vm758_vm6, %v4322_v60 }
 0x5ad   : > { %v1558_v62 = vpop.f32.mrb[14].mxu1 }
 0x5ae   : > { %v1559_v63 = vadd.f32 %v1558_v62, %v1463_v61  ;;  %v4817_v0 = vpop.f32.mrb[15].mxu1 }
 0x5b0   : > { %v1562_v1 = vadd.f32 %v1559_v63, %v5942_v50  ;;  %v1564_v2 = vrot.slane %v1559_v63, 3  ;;  %v4325_v50 = vld [vmem:[%s6666_s4 + $0xd8] sm:$0xff] }
 0x5b2   : > { %v6048_v3 = vsub.f32 %v1562_v1, %v1564_v2 }
 0x5b4   : > { %4818 = vmatprep.subr.msk.mxu1 %vm795_vm7, %v6048_v3 }
 0x5b5   : > { %4819 = vmatpush3.msk.msra.mxu1 %vm795_vm7, %v6048_v3 }
 0x5b6   : > { %4821 = vmatmul.mubr.msk.f32.vlgmr.msra.gmra.mrb[16].mxu1 %vm758_vm6, %v4323_v4  ;;  %5065 = vmatprep.subr.bf16.mxu1 %v5354_v44 }
 0x5b7   : > { %4823 = vmatprep.mubr.msk.f32.mxu1 %vm758_vm6, %v4324_v5 }
 0x5ba   : > { %4824 = vmatmul.mubr.msk.f32.gmra.mrb[18].mxu1 %vm758_vm6, %v4325_v50 }
 0x5bb   : > { %4826 = vmatprep.mubr.msk.f32.mxu1 %vm758_vm6, %v4326_v6 }
 0x5be   : > { %4827 = vmatmul.mubr.msk.f32.gmra.mrb[20].mxu1 %vm758_vm6, %v4327_v7 }
 0x5bf   : > { %4829 = vmatprep.mubr.msk.f32.mxu1 %vm758_vm6, %v4328_v9  ;;  %v1651_v9 = vpop.permute.xlu0 %1650 }
 0x5c2   : > { %4830 = vmatmul.mubr.msk.f32.gmra.mrb[22].mxu1 %vm758_vm6, %v4329_v10 }
 0x5c3   : > { %4832 = vmatprep.mubr.msk.f32.mxu1 %vm758_vm6, %v4330_v11 }
 0x5c6   : > { %4833 = vmatmul.mubr.msk.f32.gmra.mrb[24].mxu1 %vm758_vm6, %v4331_v28 }
 0x5c7   : > { %4835 = vmatprep.mubr.msk.f32.mxu1 %vm758_vm6, %v4332_v12  ;;  %v1646_v12 = vpop.permute.xlu1 %1645 }
 0x5ca   : > { %4836 = vmatmul.mubr.msk.f32.gmra.mrb[26].mxu1 %vm758_vm6, %v4333_v13 }
 0x5cb   : > { %4885 = vmatprep.mubr.msk.f32.mxu1 %vm5355_vm1, %v5356_v48 }
 0x689   : > { %v4822_v18 = vpop.f32.mrb[16].mxu1 }
 0x68a   : > { %v1764_v19 = vadd.f32 %v4822_v18, %v1601_v37  ;;  %v1758_v21 = vpop.f32.mrb[17].mxu1 }
 0x68b   : > { %v1759_v43 = vadd.f32 %v1758_v21, %v1596_v14 }
 0x68c   : > { %v1818_v29 = vmul.f32 0.5, %v1764_v19 }
 0x68d   : > { %v1817_v30 = vmul.f32 0.5, %v1759_v43  ;;  %v4825_v31 = vpop.f32.mrb[18].mxu1 }
 0x68e   : > { %5185 = vtanh.f32 %v1818_v29  ;;  %v1774_v47 = vadd.f32 %v4825_v31, %v1611_v15  ;;  %v1768_v52 = vpop.f32.mrb[19].mxu1 }
 0x68f   : > { %5187 = vtanh.f32 %v1817_v30  ;;  %v1769_v25 = vadd.f32 %v1768_v52, %v1606_v35 }
 0x690   : > { %v1820_v32 = vmul.f32 0.5, %v1774_v47 }
 0x691   : > { %v1819_v8 = vmul.f32 0.5, %v1769_v25  ;;  %v4828_v38 = vpop.f32.mrb[20].mxu1 }
 0x692   : > { %5189 = vtanh.f32 %v1820_v32  ;;  %v1784_v41 = vadd.f32 %v4828_v38, %v1621_v22  ;;  %v1778_v42 = vpop.f32.mrb[21].mxu1 }
 0x693   : > { %5191 = vtanh.f32 %v1819_v8  ;;  %v1779_v16 = vadd.f32 %v1778_v42, %v1616_v27 }
 0x694   : > { %v1822_v17 = vmul.f32 0.5, %v1784_v41  ;;  %v1877_v60 = vrot.slane %v1784_v41, 2 }
 0x695   : > { %v1821_v45 = vmul.f32 0.5, %v1779_v16  ;;  %v4831_v51 = vpop.f32.mrb[22].mxu1 }
 0x696   : > { %5193 = vtanh.f32 %v1822_v17  ;;  %v1794_v53 = vadd.f32 %v4831_v51, %v1631_v34  ;;  %v1788_v33 = vpop.f32.mrb[23].mxu1 }
 0x697   : > { %5195 = vtanh.f32 %v1821_v45  ;;  %v1789_v24 = vadd.f32 %v1788_v33, %v1626_v39 }
 0x698   : > { %v5186_v26 = vpop.eup %5185  ;;  %v1880_v56 = vrot.slane %v1794_v53, 2 }
 0x699   : > { %v5188_v57 = vpop.eup %5187  ;;  %v1831_v58 = vmul.f32 1.442695, %v5186_v26  ;;  %v1878_v61 = vrot.slane %v1789_v24, 2  ;;  %v4834_v62 = vpop.f32.mrb[24].mxu1 }
 0x69a   : > { %v1829_v63 = vmul.f32 1.442695, %v5188_v57  ;;  %v1804_v0 = vadd.f32 %v4834_v62, %v1641_v54  ;;  %v1798_v1 = vpop.f32.mrb[25].mxu1 }
 0x69b   : > { %5197 = vpow2.f32 %v1831_v58  ;;  %v1879_v2 = vsel %vm984_vm8, %v1877_v60, %v1878_v61  ;;  %v1881_v4 = vsel %vm984_vm8, %v1878_v61, %v1880_v56  ;;  %v1799_v5 = vadd.f32 %v1798_v1, %v1636_v55 }
 0x69c   : > { %v5190_v50 = vpop.eup %5189  ;;  %5199 = vpow2.f32 %v1829_v63  ;;  %v1884_v6 = vrot.slane %v1804_v0, 2 }
 0x69d   : > { %v5192_v7 = vpop.eup %5191  ;;  %v1835_v10 = vmul.f32 1.442695, %v5190_v50  ;;  %v1882_v11 = vrot.slane %v1799_v5, 2  ;;  %v4837_v28 = vpop.f32.mrb[26].mxu1 }
 0x69e   : > { %v1833_v13 = vmul.f32 1.442695, %v5192_v7  ;;  %v1814_v37 = vadd.f32 %v4837_v28, %v1651_v9  ;;  %v1808_v14 = vpop.f32.mrb[27].mxu1  ;;  %v4363_v28 = vld [vmem:[%s6666_s4 + $0x120] sm:$0xff] }
 0x69f   : > { %5201 = vpow2.f32 %v1835_v10  ;;  %v1883_v15 = vsel %vm984_vm8, %v1880_v56, %v1882_v11  ;;  %v1885_v35 = vsel %vm984_vm8, %v1882_v11, %v1884_v6  ;;  %v1809_v18 = vadd.f32 %v1808_v14, %v1646_v12  ;;  %v4359_v11 = vld [vmem:[%s6664_s2 + $0x18] sm:$0x3f]  ;;  %v1909_v12 = vpop.permute.xlu1 %1908 }
 0x6a0   : > { %v5194_v19 = vpop.eup %5193  ;;  %5203 = vpow2.f32 %v1833_v13  ;;  %v1888_v21 = vrot.slane %v1814_v37, 2 }
 0x6a1   : > { %v5196_v22 = vpop.eup %5195  ;;  %v1839_v43 = vmul.f32 1.442695, %v5194_v19  ;;  %v1886_v27 = vrot.slane %v1809_v18, 2  ;;  %v4364_v19 = vld [vmem:[%s6666_s4 + $0x128] sm:$0xff] }
 0x6a2   : > { %v1837_v29 = vmul.f32 1.442695, %v5196_v22  ;;  %v4367_v22 = vld [vmem:[%s6666_s4 + $0x140] sm:$0xff] }
 0x6a3   : > { %5205 = vpow2.f32 %v1839_v43  ;;  %v1887_v30 = vsel %vm984_vm8, %v1884_v6, %v1886_v27  ;;  %v1889_v31 = vsel %vm984_vm8, %v1886_v27, %v1888_v21  ;;  %v4365_v21 = vld [vmem:[%s6666_s4 + $0x130] sm:$0xff]  ;;  %v4368_v43 = vld [vmem:[%s6666_s4 + $0x148] sm:$0xff] }
 0x6a4   : > { %5207 = vpow2.f32 %v1837_v29  ;;  %v4369_v27 = vld [vmem:[%s6666_s4 + $0x150] sm:$0xff]  ;;  %v4370_v29 = vld [vmem:[%s6666_s4 + $0x158] sm:$0xff] }
 0x6a5   : > { %v5198_v47 = vpop.eup %5197 }
 0x6a6   : > { %v5200_v52 = vpop.eup %5199  ;;  %v1848_v25 = vrot.slane %v5198_v47, 5  ;;  %v4373_v47 = vld [vmem:[%s6666_s4 + $0x170] sm:$0xff] }
 0x6a7   : > { %v1847_v32 = vrot.slane %v5200_v52, 5  ;;  %v4374_v52 = vld [vmem:[%s6666_s4 + $0x178] sm:$0x3] }
 0x6a9   : > { %v5202_v34 = vpop.eup %5201  ;;  %v1849_v8 = vsel %vm795_vm7, %v1847_v32, %v1848_v25  ;;  %v1864_v38 = vmul.f32 %v1847_v32, %v6004_v40  ;;  %v2042_v32 = vpop.permute.xlu0 %2041 }
 0x6aa   : > { %v5204_v39 = vpop.eup %5203  ;;  %v1852_v41 = vrot.slane %v5202_v34, 5  ;;  %v1865_v42 = vmul.f32 %v1849_v8, %v6006_v23 }
 0x6ab   : > { %v1850_v16 = vrot.slane %v5204_v39, 5  ;;  %v6110_v17 = vadd.f32 %v1879_v2, %v1864_v38 }
 0x6ac   : > { %v6112_v45 = vadd.f32 %v1881_v4, %v1865_v42 }
 0x6ad   : > { %v5206_v51 = vpop.eup %5205  ;;  %v1851_v53 = vsel %vm795_vm7, %v1848_v25, %v1850_v16  ;;  %v1853_v33 = vsel %vm795_vm7, %v1850_v16, %v1852_v41  ;;  %v1917_v56 = vrot.slane %v6110_v17, 3  ;;  %v2047_v25 = vpop.permute.xlu1 %2046 }
 0x6ae   : > { %v5208_v54 = vpop.eup %5207  ;;  %v1856_v24 = vrot.slane %v5206_v51, 5  ;;  %v1866_v26 = vmul.f32 %v1851_v53, %v6014_v36  ;;  %v1867_v40 = vmul.f32 %v1853_v33, %v6016_v20  ;;  %v1918_v23 = vrot.slane %v6112_v45, 3  ;;  %v2052_v8 = vpop.permute.xlu0 %2051 }
 0x6af   : > { %v1854_v55 = vrot.slane %v5208_v54, 5 }
 0x6b0   : > { %v6120_v57 = vadd.f32 %v1883_v15, %v1866_v26  ;;  %v6122_v58 = vadd.f32 %v1885_v35, %v1867_v40  ;;  %v1919_v20 = vsel %vm576_vm2, %v1917_v56, %v1918_v23 }
 0x6b1   : > { %v1855_v60 = vsel %vm795_vm7, %v1852_v41, %v1854_v55  ;;  %v1857_v61 = vsel %vm795_vm7, %v1854_v55, %v1856_v24  ;;  %v2057_v34 = vpop.permute.xlu1 %2056 }
 0x6b2   : > { %v1920_v62 = vrot.slane %v6120_v57, 3  ;;  %v1868_v63 = vmul.f32 %v1855_v60, %v6025_v46  ;;  %v1869_v36 = vmul.f32 %v1857_v61, %v6027_v49  ;;  %v1922_v0 = vrot.slane %v6122_v58, 3  ;;  %v2062_v51 = vpop.permute.xlu0 %2061 }
 0x6b4   : > { %v6131_v1 = vadd.f32 %v1887_v30, %v1868_v63  ;;  %v6133_v2 = vadd.f32 %v1889_v31, %v1869_v36  ;;  %v1921_v4 = vsel %vm576_vm2, %v1918_v23, %v1920_v62  ;;  %v1923_v46 = vsel %vm576_vm2, %v1920_v62, %v1922_v0  ;;  %v4371_v30 = vld [vmem:[%s6666_s4 + $0x160] sm:$0xff]  ;;  %v4372_v31 = vld [vmem:[%s6666_s4 + $0x168] sm:$0xff] }
 0x6b5   : > { %v5056_v5 = vpack.c.bf16 %v1921_v4, %v1919_v20  ;;  %v2067_v42 = vpop.permute.xlu1 %2066 }
 0x6b6   : > { %v1924_v50 = vrot.slane %v6131_v1, 3  ;;  %v1926_v6 = vrot.slane %v6133_v2, 3  ;;  %v2072_v61 = vpop.permute.xlu0 %2071 }
 0x6b7   : > { %5057 = vmatpush3.bf16.msra.mxu0 %v5056_v5 }
 0x6b8   : > { %5058 = vmatprep.subr.bf16.mxu0 %v5354_v44  ;;  %v1925_v49 = vsel %vm576_vm2, %v1922_v0, %v1924_v50  ;;  %v1927_v9 = vsel %vm576_vm2, %v1924_v50, %v1926_v6 }
 0x6b9   : > { %v5059_v7 = vpack.c.bf16 %v1925_v49, %v1923_v46  ;;  %v5062_v10 = vpack.c.bf16 %v1926_v6, %v1927_v9  ;;  %v2077_v56 = vpop.permute.xlu1 %2076 }
 0x6bb   : > { %5060 = vmatpush3.bf16.msra.mxu0 %v5059_v7  ;;  %v2082_v7 = vpop.permute.xlu0 %2081 }
 0x6bc   : > { %5061 = vmatprep.subr.bf16.mxu0 %v5354_v44 }
 0x6bd   : > { %v2087_v6 = vpop.permute.xlu1 %2086 }
 0x6bf   : > { %5064 = vmatpush3.bf16.msk.msra.mxu0 %vm5746_vm4, %v5062_v10 }
 0x6c2   : > { %4851 = vmatmul.mubr.msk.f32.vlgmr.msra.gmra.mrb[20].mxu0 %vm593_vm5, %v4359_v11 }
 0x6c3   : > { %4855 = vmatprep.mubr.msk.f32.mxu0 %vm758_vm6, %v4363_v28 }
 0x795   : > { %v2004_v13 = vpop.f32.mrb[20].mxu0 }
 0x796   : > { %v2005_v37 = vadd.f32 %v2004_v13, %v1909_v12  ;;  %v4852_v14 = vpop.f32.mrb[21].mxu0 }
 0x798   : > { %v2008_v15 = vadd.f32 %v2005_v37, %v6048_v3  ;;  %v2010_v35 = vrot.slane %v2005_v37, 3  ;;  %v4366_v3 = vld [vmem:[%s6666_s4 + $0x138] sm:$0xff] }
 0x79a   : > { %v6154_v18 = vsub.f32 %v2008_v15, %v2010_v35 }
 0x79c   : > { %4853 = vmatprep.subr.msk.mxu0 %vm795_vm7, %v6154_v18 }
 0x79d   : > { %4854 = vmatpush3.msk.msra.mxu0 %vm795_vm7, %v6154_v18 }
 0x79e   : > { %4856 = vmatmul.mubr.msk.f32.vlgmr.msra.gmra.mrb[22].mxu0 %vm758_vm6, %v4364_v19  ;;  %5075 = vmatprep.subr.bf16.mxu0 %v5354_v44 }
 0x79f   : > { %4858 = vmatprep.mubr.msk.f32.mxu0 %vm758_vm6, %v4365_v21 }
 0x7a2   : > { %4859 = vmatmul.mubr.msk.f32.gmra.mrb[24].mxu0 %vm758_vm6, %v4366_v3 }
 0x7a3   : > { %4861 = vmatprep.mubr.msk.f32.mxu0 %vm758_vm6, %v4367_v22 }
 0x7a6   : > { %4862 = vmatmul.mubr.msk.f32.gmra.mrb[26].mxu0 %vm758_vm6, %v4368_v43 }
 0x7a7   : > { %4864 = vmatprep.mubr.msk.f32.mxu0 %vm758_vm6, %v4369_v27  ;;  %v2097_v27 = vpop.permute.xlu1 %2096 }
 0x7aa   : > { %4865 = vmatmul.mubr.msk.f32.gmra.mrb[28].mxu0 %vm758_vm6, %v4370_v29 }
 0x7ab   : > { %4867 = vmatprep.mubr.msk.f32.mxu0 %vm758_vm6, %v4371_v30 }
 0x7ae   : > { %4868 = vmatmul.mubr.msk.f32.gmra.mrb[30].mxu0 %vm758_vm6, %v4372_v31 }
 0x7af   : > { %4870 = vmatprep.mubr.msk.f32.mxu0 %vm758_vm6, %v4373_v47  ;;  %v2092_v47 = vpop.permute.xlu0 %2091 }
 0x7b2   : > { %4871 = vmatmul.mubr.msk.f32.gmra.mrb[32].mxu0 %vm758_vm6, %v4374_v52 }
 0x7b3   : > { %4920 = vmatprep.mubr.msk.f32.mxu0 %vm5355_vm1, %v5356_v48 }
 0x871   : > { %v4857_v38 = vpop.f32.mrb[22].mxu0 }
 0x872   : > { %v2210_v39 = vadd.f32 %v4857_v38, %v2047_v25  ;;  %v2204_v41 = vpop.f32.mrb[23].mxu0 }
 0x873   : > { %v2205_v16 = vadd.f32 %v2204_v41, %v2042_v32 }
 0x874   : > { %v2264_v53 = vmul.f32 0.5, %v2210_v39 }
 0x875   : > { %v2263_v33 = vmul.f32 0.5, %v2205_v16  ;;  %v4860_v54 = vpop.f32.mrb[24].mxu0 }
 0x876   : > { %5209 = vtanh.f32 %v2264_v53  ;;  %v2220_v24 = vadd.f32 %v4860_v54, %v2057_v34  ;;  %v2214_v26 = vpop.f32.mrb[25].mxu0 }
 0x877   : > { %5211 = vtanh.f32 %v2263_v33  ;;  %v2215_v40 = vadd.f32 %v2214_v26, %v2052_v8 }
 0x878   : > { %v2266_v55 = vmul.f32 0.5, %v2220_v24 }
 0x879   : > { %v2265_v23 = vmul.f32 0.5, %v2215_v40  ;;  %v4863_v60 = vpop.f32.mrb[26].mxu0 }
 0x87a   : > { %5213 = vtanh.f32 %v2266_v55  ;;  %v2230_v62 = vadd.f32 %v4863_v60, %v2067_v42  ;;  %v2224_v63 = vpop.f32.mrb[27].mxu0 }
 0x87b   : > { %5215 = vtanh.f32 %v2265_v23  ;;  %v2225_v36 = vadd.f32 %v2224_v63, %v2062_v51 }
 0x87c   : > { %v2268_v20 = vmul.f32 0.5, %v2230_v62  ;;  %v2323_v28 = vrot.slane %v2230_v62, 2 }
 0x87d   : > { %v2267_v0 = vmul.f32 0.5, %v2225_v36  ;;  %v4866_v4 = vpop.f32.mrb[28].mxu0 }
 0x87e   : > { %5217 = vtanh.f32 %v2268_v20  ;;  %v2240_v5 = vadd.f32 %v4866_v4, %v2077_v56  ;;  %v2234_v50 = vpop.f32.mrb[29].mxu0 }
 0x87f   : > { %5219 = vtanh.f32 %v2267_v0  ;;  %v2235_v46 = vadd.f32 %v2234_v50, %v2072_v61 }
 0x880   : > { %v5210_v49 = vpop.eup %5209  ;;  %v2326_v9 = vrot.slane %v2240_v5, 2 }
 0x881   : > { %v5212_v10 = vpop.eup %5211  ;;  %v2277_v11 = vmul.f32 1.442695, %v5210_v49  ;;  %v2324_v12 = vrot.slane %v2235_v46, 2  ;;  %v4869_v13 = vpop.f32.mrb[30].mxu0 }
 0x882   : > { %v2275_v37 = vmul.f32 1.442695, %v5212_v10  ;;  %v2250_v14 = vadd.f32 %v4869_v13, %v2087_v6  ;;  %v2244_v15 = vpop.f32.mrb[31].mxu0 }
 0x883   : > { %5221 = vpow2.f32 %v2277_v11  ;;  %v2325_v35 = vsel %vm984_vm8, %v2323_v28, %v2324_v12  ;;  %v2327_v19 = vsel %vm984_vm8, %v2324_v12, %v2326_v9  ;;  %v2245_v21 = vadd.f32 %v2244_v15, %v2082_v7 }
 0x884   : > { %v5214_v3 = vpop.eup %5213  ;;  %5223 = vpow2.f32 %v2275_v37  ;;  %v2330_v22 = vrot.slane %v2250_v14, 2 }
 0x885   : > { %v5216_v43 = vpop.eup %5215  ;;  %v2281_v29 = vmul.f32 1.442695, %v5214_v3  ;;  %v2328_v30 = vrot.slane %v2245_v21, 2  ;;  %v4872_v31 = vpop.f32.mrb[32].mxu0 }
 0x886   : > { %v2279_v52 = vmul.f32 1.442695, %v5216_v43  ;;  %v2260_v25 = vadd.f32 %v4872_v31, %v2097_v27  ;;  %v2254_v32 = vpop.f32.mrb[33].mxu0  ;;  %v4404_v31 = vld [vmem:[%s6666_s4 + $0x180] sm:$0xff] }
 0x887   : > { %5225 = vpow2.f32 %v2281_v29  ;;  %v2329_v34 = vsel %vm984_vm8, %v2326_v9, %v2328_v30  ;;  %v2331_v8 = vsel %vm984_vm8, %v2328_v30, %v2330_v22  ;;  %v2255_v38 = vadd.f32 %v2254_v32, %v2092_v47  ;;  %v4400_v30 = vld [vmem:[%s6664_s2 + $0x20] sm:$0x3f]  ;;  %v2355_v47 = vpop.permute.xlu0 %2354 }
 0x888   : > { %v5218_v39 = vpop.eup %5217  ;;  %5227 = vpow2.f32 %v2279_v52  ;;  %v2334_v41 = vrot.slane %v2260_v25, 2 }
 0x889   : > { %v5220_v42 = vpop.eup %5219  ;;  %v2285_v16 = vmul.f32 1.442695, %v5218_v39  ;;  %v2332_v51 = vrot.slane %v2255_v38, 2  ;;  %v4405_v39 = vld [vmem:[%s6666_s4 + $0x188] sm:$0xff] }
 0x88a   : > { %v2283_v53 = vmul.f32 1.442695, %v5220_v42  ;;  %v4408_v42 = vld [vmem:[%s6666_s4 + $0x1a0] sm:$0xff] }
 0x88b   : > { %5229 = vpow2.f32 %v2285_v16  ;;  %v2333_v33 = vsel %vm984_vm8, %v2330_v22, %v2332_v51  ;;  %v2335_v54 = vsel %vm984_vm8, %v2332_v51, %v2334_v41  ;;  %v4406_v41 = vld [vmem:[%s6666_s4 + $0x190] sm:$0xff]  ;;  %v4409_v16 = vld [vmem:[%s6666_s4 + $0x1a8] sm:$0xff] }
 0x88c   : > { %5231 = vpow2.f32 %v2283_v53  ;;  %v4410_v51 = vld [vmem:[%s6666_s4 + $0x1b0] sm:$0xff]  ;;  %v4411_v53 = vld [vmem:[%s6666_s4 + $0x1b8] sm:$0xff] }
 0x88d   : > { %v5222_v24 = vpop.eup %5221 }
 0x88e   : > { %v5224_v26 = vpop.eup %5223  ;;  %v2294_v40 = vrot.slane %v5222_v24, 5  ;;  %v4414_v24 = vld [vmem:[%s6666_s4 + $0x1d0] sm:$0xff] }
 0x88f   : > { %v2293_v55 = vrot.slane %v5224_v26, 5  ;;  %v4415_v26 = vld [vmem:[%s6666_s4 + $0x1d8] sm:$0x3] }
 0x891   : > { %v5226_v56 = vpop.eup %5225  ;;  %v2295_v23 = vsel %vm795_vm7, %v2293_v55, %v2294_v40  ;;  %v2310_v60 = vmul.f32 %v2293_v55, %v6110_v17  ;;  %v2488_v55 = vpop.permute.xlu1 %2487 }
 0x892   : > { %v5228_v61 = vpop.eup %5227  ;;  %v2298_v62 = vrot.slane %v5226_v56, 5  ;;  %v2311_v63 = vmul.f32 %v2295_v23, %v6112_v45 }
 0x893   : > { %v2296_v36 = vrot.slane %v5228_v61, 5  ;;  %v6216_v20 = vadd.f32 %v2325_v35, %v2310_v60 }
 0x894   : > { %v6218_v0 = vadd.f32 %v2327_v19, %v2311_v63 }
 0x895   : > { %v5230_v4 = vpop.eup %5229  ;;  %v2297_v5 = vsel %vm795_vm7, %v2294_v40, %v2296_v36  ;;  %v2299_v50 = vsel %vm795_vm7, %v2296_v36, %v2298_v62  ;;  %v2363_v9 = vrot.slane %v6216_v20, 3  ;;  %v2493_v40 = vpop.permute.xlu0 %2492 }
 0x896   : > { %v5232_v6 = vpop.eup %5231  ;;  %v2302_v46 = vrot.slane %v5230_v4, 5  ;;  %v2312_v49 = vmul.f32 %v2297_v5, %v6120_v57  ;;  %v2313_v17 = vmul.f32 %v2299_v50, %v6122_v58  ;;  %v2364_v45 = vrot.slane %v6218_v0, 3  ;;  %v2498_v23 = vpop.permute.xlu1 %2497 }
 0x897   : > { %v2300_v7 = vrot.slane %v5232_v6, 5 }
 0x898   : > { %v6226_v10 = vadd.f32 %v2329_v34, %v2312_v49  ;;  %v6228_v11 = vadd.f32 %v2331_v8, %v2313_v17  ;;  %v2365_v58 = vsel %vm576_vm2, %v2363_v9, %v2364_v45 }
 0x899   : > { %v2301_v28 = vsel %vm795_vm7, %v2298_v62, %v2300_v7  ;;  %v2303_v12 = vsel %vm795_vm7, %v2300_v7, %v2302_v46  ;;  %v2503_v56 = vpop.permute.xlu0 %2502 }
 0x89a   : > { %v2366_v13 = vrot.slane %v6226_v10, 3  ;;  %v2314_v37 = vmul.f32 %v2301_v28, %v6131_v1  ;;  %v2315_v57 = vmul.f32 %v2303_v12, %v6133_v2  ;;  %v2368_v14 = vrot.slane %v6228_v11, 3  ;;  %v2508_v4 = vpop.permute.xlu1 %2507 }
 0x89c   : > { %v6237_v15 = vadd.f32 %v2333_v33, %v2314_v37  ;;  %v6239_v35 = vadd.f32 %v2335_v54, %v2315_v57  ;;  %v2367_v19 = vsel %vm576_vm2, %v2364_v45, %v2366_v13  ;;  %v2369_v1 = vsel %vm576_vm2, %v2366_v13, %v2368_v14  ;;  %v4412_v33 = vld [vmem:[%s6666_s4 + $0x1c0] sm:$0xff]  ;;  %v4413_v54 = vld [vmem:[%s6666_s4 + $0x1c8] sm:$0xff] }
 0x89d   : > { %v5066_v21 = vpack.c.bf16 %v2367_v19, %v2365_v58  ;;  %v2513_v63 = vpop.permute.xlu0 %2512 }
 0x89e   : > { %v2370_v3 = vrot.slane %v6237_v15, 3  ;;  %v2372_v22 = vrot.slane %v6239_v35, 3  ;;  %v2518_v12 = vpop.permute.xlu1 %2517 }
 0x89f   : > { %5067 = vmatpush3.bf16.msra.mxu1 %v5066_v21 }
 0x8a0   : > { %5068 = vmatprep.subr.bf16.mxu1 %v5354_v44  ;;  %v2371_v2 = vsel %vm576_vm2, %v2368_v14, %v2370_v3  ;;  %v2373_v27 = vsel %vm576_vm2, %v2370_v3, %v2372_v22 }
 0x8a1   : > { %v5069_v43 = vpack.c.bf16 %v2371_v2, %v2369_v1  ;;  %v5072_v29 = vpack.c.bf16 %v2372_v22, %v2373_v27  ;;  %v2523_v9 = vpop.permute.xlu0 %2522 }
 0x8a3   : > { %5070 = vmatpush3.bf16.msra.mxu1 %v5069_v43  ;;  %v2528_v43 = vpop.permute.xlu1 %2527 }
 0x8a4   : > { %5071 = vmatprep.subr.bf16.mxu1 %v5354_v44 }
 0x8a5   : > { %v2533_v22 = vpop.permute.xlu0 %2532 }
 0x8a7   : > { %5074 = vmatpush3.bf16.msk.msra.mxu1 %vm5746_vm4, %v5072_v29 }
 0x8aa   : > { %4886 = vmatmul.mubr.msk.f32.vlgmr.msra.gmra.mrb[28].mxu1 %vm593_vm5, %v4400_v30 }
 0x8ab   : > { %4890 = vmatprep.mubr.msk.f32.mxu1 %vm758_vm6, %v4404_v31 }
 0x97d   : > { %v2450_v52 = vpop.f32.mrb[28].mxu1 }
 0x97e   : > { %v2451_v25 = vadd.f32 %v2450_v52, %v2355_v47  ;;  %v4887_v32 = vpop.f32.mrb[29].mxu1 }
 0x980   : > { %v2454_v34 = vadd.f32 %v2451_v25, %v6154_v18  ;;  %v2456_v8 = vrot.slane %v2451_v25, 3  ;;  %v4407_v18 = vld [vmem:[%s6666_s4 + $0x198] sm:$0xff] }
 0x982   : > { %v6264_v38 = vsub.f32 %v2454_v34, %v2456_v8  ;;  %4123 = vst [vmem:[%s436_s15] sm:$0x7] %v2454_v34 }
 0x984   : > { %4888 = vmatprep.subr.msk.mxu1 %vm795_vm7, %v6264_v38 }
 0x985   : > { %4889 = vmatpush3.msk.msra.mxu1 %vm795_vm7, %v6264_v38 }
 0x986   : > { %4891 = vmatmul.mubr.msk.f32.vlgmr.msra.gmra.mrb[30].mxu1 %vm758_vm6, %v4405_v39  ;;  %5085 = vmatprep.subr.bf16.mxu1 %v5354_v44 }
 0x987   : > { %4893 = vmatprep.mubr.msk.f32.mxu1 %vm758_vm6, %v4406_v41 }
 0x98a   : > { %4894 = vmatmul.mubr.msk.f32.gmra.mrb[32].mxu1 %vm758_vm6, %v4407_v18 }
 0x98b   : > { %4896 = vmatprep.mubr.msk.f32.mxu1 %vm758_vm6, %v4408_v42 }
 0x98e   : > { %4897 = vmatmul.mubr.msk.f32.gmra.mrb[34].mxu1 %vm758_vm6, %v4409_v16 }
 0x98f   : > { %4899 = vmatprep.mubr.msk.f32.mxu1 %vm758_vm6, %v4410_v51  ;;  %v2543_v51 = vpop.permute.xlu0 %2542 }
 0x992   : > { %4900 = vmatmul.mubr.msk.f32.gmra.mrb[36].mxu1 %vm758_vm6, %v4411_v53 }
 0x993   : > { %4902 = vmatprep.mubr.msk.f32.mxu1 %vm758_vm6, %v4412_v33 }
 0x996   : > { %4903 = vmatmul.mubr.msk.f32.gmra.mrb[38].mxu1 %vm758_vm6, %v4413_v54 }
 0x997   : > { %4905 = vmatprep.mubr.msk.f32.mxu1 %vm758_vm6, %v4414_v24  ;;  %v2538_v24 = vpop.permute.xlu1 %2537 }
 0x99a   : > { %4906 = vmatmul.mubr.msk.f32.gmra.mrb[40].mxu1 %vm758_vm6, %v4415_v26 }
 0x99b   : > { %4955 = vmatprep.mubr.msk.f32.mxu1 %vm5355_vm1, %v5356_v48 }
 0xa59   : > { %v4892_v60 = vpop.f32.mrb[30].mxu1 }
 0xa5a   : > { %v2656_v61 = vadd.f32 %v4892_v60, %v2493_v40  ;;  %v2650_v62 = vpop.f32.mrb[31].mxu1 }
 0xa5b   : > { %v2651_v36 = vadd.f32 %v2650_v62, %v2488_v55 }
 0xa5c   : > { %v2710_v5 = vmul.f32 0.5, %v2656_v61 }
 0xa5d   : > { %v2709_v50 = vmul.f32 0.5, %v2651_v36  ;;  %v4895_v6 = vpop.f32.mrb[32].mxu1 }
 0xa5e   : > { %5233 = vtanh.f32 %v2710_v5  ;;  %v2666_v46 = vadd.f32 %v4895_v6, %v2503_v56  ;;  %v2660_v49 = vpop.f32.mrb[33].mxu1 }
 0xa5f   : > { %5235 = vtanh.f32 %v2709_v50  ;;  %v2661_v17 = vadd.f32 %v2660_v49, %v2498_v23 }
 0xa60   : > { %v2712_v7 = vmul.f32 0.5, %v2666_v46 }
 0xa61   : > { %v2711_v45 = vmul.f32 0.5, %v2661_v17  ;;  %v4898_v28 = vpop.f32.mrb[34].mxu1 }
 0xa62   : > { %5237 = vtanh.f32 %v2712_v7  ;;  %v2676_v13 = vadd.f32 %v4898_v28, %v2513_v63  ;;  %v2670_v37 = vpop.f32.mrb[35].mxu1 }
 0xa63   : > { %5239 = vtanh.f32 %v2711_v45  ;;  %v2671_v57 = vadd.f32 %v2670_v37, %v2508_v4 }
 0xa64   : > { %v2714_v58 = vmul.f32 0.5, %v2676_v13  ;;  %v2769_v31 = vrot.slane %v2676_v13, 2 }
 0xa65   : > { %v2713_v14 = vmul.f32 0.5, %v2671_v57  ;;  %v4901_v19 = vpop.f32.mrb[36].mxu1 }
 0xa66   : > { %5241 = vtanh.f32 %v2714_v58  ;;  %v2686_v21 = vadd.f32 %v4901_v19, %v2523_v9  ;;  %v2680_v3 = vpop.f32.mrb[37].mxu1 }
 0xa67   : > { %5243 = vtanh.f32 %v2713_v14  ;;  %v2681_v1 = vadd.f32 %v2680_v3, %v2518_v12 }
 0xa68   : > { %v5234_v2 = vpop.eup %5233  ;;  %v2772_v27 = vrot.slane %v2686_v21, 2 }
 0xa69   : > { %v5236_v29 = vpop.eup %5235  ;;  %v2723_v30 = vmul.f32 1.442695, %v5234_v2  ;;  %v2770_v47 = vrot.slane %v2681_v1, 2  ;;  %v4904_v52 = vpop.f32.mrb[38].mxu1 }
 0xa6a   : > { %v2721_v25 = vmul.f32 1.442695, %v5236_v29  ;;  %v2696_v32 = vadd.f32 %v4904_v52, %v2533_v22  ;;  %v2690_v34 = vpop.f32.mrb[39].mxu1 }
 0xa6b   : > { %5245 = vpow2.f32 %v2723_v30  ;;  %v2771_v8 = vsel %vm984_vm8, %v2769_v31, %v2770_v47  ;;  %v2773_v39 = vsel %vm984_vm8, %v2770_v47, %v2772_v27  ;;  %v2691_v41 = vadd.f32 %v2690_v34, %v2528_v43 }
 0xa6c   : > { %v5238_v18 = vpop.eup %5237  ;;  %5247 = vpow2.f32 %v2721_v25  ;;  %v2776_v42 = vrot.slane %v2696_v32, 2 }
 0xa6d   : > { %v5240_v16 = vpop.eup %5239  ;;  %v2727_v53 = vmul.f32 1.442695, %v5238_v18  ;;  %v2774_v33 = vrot.slane %v2691_v41, 2  ;;  %v4907_v54 = vpop.f32.mrb[40].mxu1 }
 0xa6e   : > { %v2725_v26 = vmul.f32 1.442695, %v5240_v16  ;;  %v2706_v40 = vadd.f32 %v4907_v54, %v2543_v51  ;;  %v2700_v55 = vpop.f32.mrb[41].mxu1  ;;  %v2899_v54 = vld [vmem:[%s6670_s8] sm:$0xff] }
 0xa6f   : > { %5249 = vpow2.f32 %v2727_v53  ;;  %v2775_v56 = vsel %vm984_vm8, %v2772_v27, %v2774_v33  ;;  %v2777_v23 = vsel %vm984_vm8, %v2774_v33, %v2776_v42  ;;  %v2701_v60 = vadd.f32 %v2700_v55, %v2538_v24  ;;  %v2794_v33 = vld [vmem:[%s6668_s6] sm:$0x7]  ;;  %v2799_v24 = vpop.permute.xlu1 %2798 }
 0xa70   : > { %v5242_v61 = vpop.eup %5241  ;;  %5251 = vpow2.f32 %v2725_v26  ;;  %v2780_v62 = vrot.slane %v2706_v40, 2 }
 0xa71   : > { %v5244_v63 = vpop.eup %5243  ;;  %v2731_v36 = vmul.f32 1.442695, %v5242_v61  ;;  %v2778_v4 = vrot.slane %v2701_v60, 2  ;;  %v2901_v60 = vld [vmem:[%s6670_s8 + $0x10] sm:$0xff]  ;;  %v2903_v61 = vld [vmem:[%s6670_s8 + $0x20] sm:$0xff] }
 0xa72   : > { %v2729_v5 = vmul.f32 1.442695, %v5244_v63  ;;  %v2905_v63 = vld [vmem:[%s6670_s8 + $0x30] sm:$0xff] }
 0xa73   : > { %5253 = vpow2.f32 %v2731_v36  ;;  %v2779_v50 = vsel %vm984_vm8, %v2776_v42, %v2778_v4  ;;  %v2781_v6 = vsel %vm984_vm8, %v2778_v4, %v2780_v62  ;;  %v2904_v62 = vld [vmem:[%s6670_s8 + $0x28] sm:$0xff]  ;;  %v2906_v36 = vld [vmem:[%s6670_s8 + $0x38] sm:$0xff]  ;;  %v2907_v4 = vld [vmem:[%s6670_s8 + $0x40] sm:$0xff] }
 0xa74   : > { %5255 = vpow2.f32 %v2729_v5  ;;  %v2908_v5 = vld [vmem:[%s6670_s8 + $0x48] sm:$0xff] }
 0xa75   : > { %v5246_v46 = vpop.eup %5245 }
 0xa76   : > { %v5248_v49 = vpop.eup %5247  ;;  %v2740_v17 = vrot.slane %v5246_v46, 5  ;;  %v2931_v46 = vpop.permute.xlu1 %2930 }
 0xa77   : > { %v2739_v7 = vrot.slane %v5248_v49, 5  ;;  %v2926_v49 = vpop.permute.xlu0 %2925 }
 0xa79   : > { %v5250_v9 = vpop.eup %5249  ;;  %v2741_v45 = vsel %vm795_vm7, %v2739_v7, %v2740_v17  ;;  %v2756_v28 = vmul.f32 %v2739_v7, %v6216_v20 }
 0xa7a   : > { %v5252_v12 = vpop.eup %5251  ;;  %v2744_v13 = vrot.slane %v5250_v9, 5  ;;  %v2757_v37 = vmul.f32 %v2741_v45, %v6218_v0 }
 0xa7b   : > { %v2742_v57 = vrot.slane %v5252_v12, 5  ;;  %v6326_v58 = vadd.f32 %v2771_v8, %v2756_v28  ;;  %v2936_v7 = vpop.permute.xlu0 %2935 }
 0xa7c   : > { %v6328_v14 = vadd.f32 %v2773_v39, %v2757_v37 }
 0xa7d   : > { %v5254_v19 = vpop.eup %5253  ;;  %v2743_v21 = vsel %vm795_vm7, %v2740_v17, %v2742_v57  ;;  %v2745_v3 = vsel %vm795_vm7, %v2742_v57, %v2744_v13  ;;  %v2807_v27 = vrot.slane %v6326_v58, 3  ;;  %v2941_v17 = vpop.permute.xlu1 %2940 }
 0xa7e   : > { %v5256_v22 = vpop.eup %5255  ;;  %v2748_v1 = vrot.slane %v5254_v19, 5  ;;  %v2758_v2 = vmul.f32 %v2743_v21, %v6226_v10  ;;  %v2759_v20 = vmul.f32 %v2745_v3, %v6228_v11  ;;  %v2808_v0 = vrot.slane %v6328_v14, 3 }
 0xa7f   : > { %v2746_v43 = vrot.slane %v5256_v22, 5  ;;  %v2946_v37 = vpop.permute.xlu0 %2945 }
 0xa80   : > { %v6336_v29 = vadd.f32 %v2775_v56, %v2758_v2  ;;  %v6338_v30 = vadd.f32 %v2777_v23, %v2759_v20  ;;  %v2809_v11 = vsel %vm576_vm2, %v2807_v27, %v2808_v0  ;;  %v2900_v23 = vld [vmem:[%s6670_s8 + $0x8] sm:$0xff] }
 0xa81   : > { %v2747_v31 = vsel %vm795_vm7, %v2744_v13, %v2746_v43  ;;  %v2749_v47 = vsel %vm795_vm7, %v2746_v43, %v2748_v1  ;;  %v2951_v12 = vpop.permute.xlu1 %2950 }
 0xa82   : > { %v2810_v52 = vrot.slane %v6336_v29, 3  ;;  %v2760_v25 = vmul.f32 %v2747_v31, %v6237_v15  ;;  %v2761_v10 = vmul.f32 %v2749_v47, %v6239_v35  ;;  %v2812_v32 = vrot.slane %v6338_v30, 3 }
 0xa84   : > { %v6347_v34 = vadd.f32 %v2779_v50, %v2760_v25  ;;  %v6349_v8 = vadd.f32 %v2781_v6, %v2761_v10  ;;  %v2811_v39 = vsel %vm576_vm2, %v2808_v0, %v2810_v52  ;;  %v2813_v15 = vsel %vm576_vm2, %v2810_v52, %v2812_v32  ;;  %v2909_v50 = vld [vmem:[%s6670_s8 + $0x50] sm:$0xff]  ;;  %v2910_v6 = vld [vmem:[%s6670_s8 + $0x58] sm:$0x3]  ;;  %v2956_v0 = vpop.permute.xlu0 %2955 }
 0xa85   : > { %v5076_v41 = vpack.c.bf16 %v2811_v39, %v2809_v11  ;;  %v2961_v20 = vpop.permute.xlu1 %2960 }
 0xa86   : > { %v2814_v18 = vrot.slane %v6347_v34, 3  ;;  %v2816_v42 = vrot.slane %v6349_v8, 3 }
 0xa87   : > { %5077 = vmatpush3.bf16.msra.mxu0 %v5076_v41 }
 0xa88   : > { %5078 = vmatprep.subr.bf16.mxu0 %v5354_v44  ;;  %v2815_v35 = vsel %vm576_vm2, %v2812_v32, %v2814_v18  ;;  %v2817_v51 = vsel %vm576_vm2, %v2814_v18, %v2816_v42 }
 0xa89   : > { %v5079_v16 = vpack.c.bf16 %v2815_v35, %v2813_v15  ;;  %v5082_v53 = vpack.c.bf16 %v2816_v42, %v2817_v51  ;;  %v2971_v41 = vpop.permute.xlu1 %2970  ;;  %v2966_v15 = vpop.permute.xlu0 %2965 }
 0xa8b   : > { %5080 = vmatpush3.bf16.msra.mxu0 %v5079_v16 }
 0xa8c   : > { %5081 = vmatprep.subr.bf16.mxu0 %v5354_v44 }
 0xa8f   : > { %5084 = vmatpush3.bf16.msk.msra.mxu0 %vm5746_vm4, %v5082_v53 }
 0xa92   : > { %4921 = vmatmul.mubr.msk.f32.vlgmr.msra.gmra.mrb[34].mxu0 %vm593_vm5, %v2794_v33 }
 0xa93   : > { %4925 = vmatprep.mubr.msk.f32.mxu0 %vm758_vm6, %v2899_v54 }
 0xb65   : > { %v2894_v26 = vpop.f32.mrb[34].mxu0 }
 0xb66   : > { %v2895_v40 = vadd.f32 %v2894_v26, %v2799_v24  ;;  %v4922_v55 = vpop.f32.mrb[35].mxu0 }
 0xb68   : > { %v6370_v56 = vadd.f32 %v2895_v40, %v6264_v38  ;;  %v2902_v38 = vld [vmem:[%s6670_s8 + $0x18] sm:$0xff] }
 0xb6a   : > { %4923 = vmatprep.subr.msk.mxu0 %vm795_vm7, %v6370_v56 }
 0xb6b   : > { %4924 = vmatpush3.msk.msra.mxu0 %vm795_vm7, %v6370_v56 }
 0xb6c   : > { %4926 = vmatmul.mubr.msk.f32.vlgmr.msra.gmra.mrb[36].mxu0 %vm758_vm6, %v2900_v23 }
 0xb6d   : > { %4928 = vmatprep.mubr.msk.f32.mxu0 %vm758_vm6, %v2901_v60 }
 0xb70   : > { %4929 = vmatmul.mubr.msk.f32.gmra.mrb[38].mxu0 %vm758_vm6, %v2902_v38 }
 0xb71   : > { %4931 = vmatprep.mubr.msk.f32.mxu0 %vm758_vm6, %v2903_v61 }
 0xb74   : > { %4932 = vmatmul.mubr.msk.f32.gmra.mrb[40].mxu0 %vm758_vm6, %v2904_v62 }
 0xb75   : > { %4934 = vmatprep.mubr.msk.f32.mxu0 %vm758_vm6, %v2905_v63  ;;  %v2981_v63 = vpop.permute.xlu1 %2980 }
 0xb78   : > { %4935 = vmatmul.mubr.msk.f32.gmra.mrb[42].mxu0 %vm758_vm6, %v2906_v36 }
 0xb79   : > { %4937 = vmatprep.mubr.msk.f32.mxu0 %vm758_vm6, %v2907_v4 }
 0xb7c   : > { %4938 = vmatmul.mubr.msk.f32.gmra.mrb[44].mxu0 %vm758_vm6, %v2908_v5 }
 0xb7d   : > { %4940 = vmatprep.mubr.msk.f32.mxu0 %vm758_vm6, %v2909_v50  ;;  %v2976_v50 = vpop.permute.xlu0 %2975 }
 0xb80   : > { %4941 = vmatmul.mubr.msk.f32.gmra.mrb[46].mxu0 %vm758_vm6, %v2910_v6 }
 0xc3f   : > { %v4927_v9 = vpop.f32.mrb[36].mxu0 }
 0xc40   : > { %v3094_v45 = vadd.f32 %v4927_v9, %v2931_v46  ;;  %v3088_v28 = vpop.f32.mrb[37].mxu0 }
 0xc41   : > { %v3089_v13 = vadd.f32 %v3088_v28, %v2926_v49 }
 0xc42   : > { %v3148_v57 = vmul.f32 0.5, %v3094_v45 }
 0xc43   : > { %v3147_v19 = vmul.f32 0.5, %v3089_v13  ;;  %v4930_v21 = vpop.f32.mrb[38].mxu0 }
 0xc44   : > { %5257 = vtanh.f32 %v3148_v57  ;;  %v3104_v3 = vadd.f32 %v4930_v21, %v2941_v17  ;;  %v3098_v22 = vpop.f32.mrb[39].mxu0 }
 0xc45   : > { %5259 = vtanh.f32 %v3147_v19  ;;  %v3099_v1 = vadd.f32 %v3098_v22, %v2936_v7 }
 0xc46   : > { %v3150_v2 = vmul.f32 0.5, %v3104_v3 }
 0xc47   : > { %v3149_v43 = vmul.f32 0.5, %v3099_v1  ;;  %v4933_v27 = vpop.f32.mrb[40].mxu0 }
 0xc48   : > { %5261 = vtanh.f32 %v3150_v2  ;;  %v3114_v31 = vadd.f32 %v4933_v27, %v2951_v12  ;;  %v3108_v47 = vpop.f32.mrb[41].mxu0 }
 0xc49   : > { %5263 = vtanh.f32 %v3149_v43  ;;  %v3109_v52 = vadd.f32 %v3108_v47, %v2946_v37 }
 0xc4a   : > { %v3152_v25 = vmul.f32 0.5, %v3114_v31  ;;  %v3207_v53 = vrot.slane %v3114_v31, 2 }
 0xc4b   : > { %v3151_v10 = vmul.f32 0.5, %v3109_v52  ;;  %v4936_v11 = vpop.f32.mrb[42].mxu0 }
 0xc4c   : > { %5265 = vtanh.f32 %v3152_v25  ;;  %v3124_v32 = vadd.f32 %v4936_v11, %v2961_v20  ;;  %v3118_v39 = vpop.f32.mrb[43].mxu0 }
 0xc4d   : > { %5267 = vtanh.f32 %v3151_v10  ;;  %v3119_v18 = vadd.f32 %v3118_v39, %v2956_v0 }
 0xc4e   : > { %v5258_v42 = vpop.eup %5257  ;;  %v3210_v35 = vrot.slane %v3124_v32, 2 }
 0xc4f   : > { %v5260_v16 = vpop.eup %5259  ;;  %v3161_v51 = vmul.f32 1.442695, %v5258_v42  ;;  %v3208_v33 = vrot.slane %v3119_v18, 2  ;;  %v4939_v54 = vpop.f32.mrb[44].mxu0 }
 0xc50   : > { %v3159_v24 = vmul.f32 1.442695, %v5260_v16  ;;  %v3134_v26 = vadd.f32 %v4939_v54, %v2971_v41  ;;  %v3128_v40 = vpop.f32.mrb[45].mxu0 }
 0xc51   : > { %5269 = vpow2.f32 %v3161_v51  ;;  %v3209_v55 = vsel %vm984_vm8, %v3207_v53, %v3208_v33  ;;  %v3211_v23 = vsel %vm984_vm8, %v3208_v33, %v3210_v35  ;;  %v3129_v60 = vadd.f32 %v3128_v40, %v2966_v15 }
 0xc52   : > { %v5262_v38 = vpop.eup %5261  ;;  %5271 = vpow2.f32 %v3159_v24  ;;  %v3214_v61 = vrot.slane %v3134_v26, 2 }
 0xc53   : > { %v5264_v62 = vpop.eup %5263  ;;  %v3165_v36 = vmul.f32 1.442695, %v5262_v38  ;;  %v3212_v4 = vrot.slane %v3129_v60, 2  ;;  %v4942_v5 = vpop.f32.mrb[46].mxu0 }
 0xc54   : > { %v3163_v6 = vmul.f32 1.442695, %v5264_v62  ;;  %v3144_v46 = vadd.f32 %v4942_v5, %v2981_v63  ;;  %v3138_v49 = vpop.f32.mrb[47].mxu0  ;;  %v4460_v5 = vld [vmem:[%s6670_s8 + $0x60] sm:$0xff] }
 0xc55   : > { %5273 = vpow2.f32 %v3165_v36  ;;  %v3213_v17 = vsel %vm984_vm8, %v3210_v35, %v3212_v4  ;;  %v3215_v7 = vsel %vm984_vm8, %v3212_v4, %v3214_v61  ;;  %v3139_v9 = vadd.f32 %v3138_v49, %v2976_v50  ;;  %v4456_v4 = vld [vmem:[%s6668_s6 + $0x4] sm:$0x7]  ;;  %v3239_v50 = vpop.permute.xlu0 %3238 }
 0xc56   : > { %v5266_v45 = vpop.eup %5265  ;;  %5275 = vpow2.f32 %v3163_v6  ;;  %v3218_v28 = vrot.slane %v3144_v46, 2 }
 0xc57   : > { %v5268_v12 = vpop.eup %5267  ;;  %v3169_v13 = vmul.f32 1.442695, %v5266_v45  ;;  %v3216_v37 = vrot.slane %v3139_v9, 2  ;;  %v4462_v9 = vld [vmem:[%s6670_s8 + $0x70] sm:$0xff]  ;;  %v4464_v45 = vld [vmem:[%s6670_s8 + $0x80] sm:$0xff] }
 0xc58   : > { %v3167_v57 = vmul.f32 1.442695, %v5268_v12  ;;  %v4466_v12 = vld [vmem:[%s6670_s8 + $0x90] sm:$0xff] }
 0xc59   : > { %5277 = vpow2.f32 %v3169_v13  ;;  %v3217_v19 = vsel %vm984_vm8, %v3214_v61, %v3216_v37  ;;  %v3219_v21 = vsel %vm984_vm8, %v3216_v37, %v3218_v28  ;;  %v4465_v28 = vld [vmem:[%s6670_s8 + $0x88] sm:$0xff]  ;;  %v4467_v13 = vld [vmem:[%s6670_s8 + $0x98] sm:$0xff]  ;;  %v4468_v37 = vld [vmem:[%s6670_s8 + $0xa0] sm:$0xff] }
 0xc5a   : > { %5279 = vpow2.f32 %v3167_v57  ;;  %v4469_v57 = vld [vmem:[%s6670_s8 + $0xa8] sm:$0xff] }
 0xc5b   : > { %v5270_v3 = vpop.eup %5269 }
 0xc5c   : > { %v5272_v22 = vpop.eup %5271  ;;  %v3178_v1 = vrot.slane %v5270_v3, 5  ;;  %v3373_v3 = vpop.permute.xlu0 %3372 }
 0xc5d   : > { %v3177_v2 = vrot.slane %v5272_v22, 5  ;;  %v3368_v22 = vpop.permute.xlu1 %3367 }
 0xc5f   : > { %v5274_v20 = vpop.eup %5273  ;;  %v3179_v43 = vsel %vm795_vm7, %v3177_v2, %v3178_v1  ;;  %v3194_v27 = vmul.f32 %v3177_v2, %v6326_v58 }
 0xc60   : > { %v5276_v0 = vpop.eup %5275  ;;  %v3182_v31 = vrot.slane %v5274_v20, 5  ;;  %v3195_v47 = vmul.f32 %v3179_v43, %v6328_v14 }
 0xc61   : > { %v3180_v52 = vrot.slane %v5276_v0, 5  ;;  %v6429_v25 = vadd.f32 %v3209_v55, %v3194_v27  ;;  %v3378_v2 = vpop.permute.xlu1 %3377 }
 0xc62   : > { %v6431_v10 = vadd.f32 %v3211_v23, %v3195_v47 }
 0xc63   : > { %v5278_v11 = vpop.eup %5277  ;;  %v3181_v32 = vsel %vm795_vm7, %v3178_v1, %v3180_v52  ;;  %v3183_v39 = vsel %vm795_vm7, %v3180_v52, %v3182_v31  ;;  %v3247_v35 = vrot.slane %v6429_v25, 3  ;;  %v3383_v1 = vpop.permute.xlu0 %3382 }
 0xc64   : > { %v5280_v41 = vpop.eup %5279  ;;  %v3186_v18 = vrot.slane %v5278_v11, 5  ;;  %v3196_v42 = vmul.f32 %v3181_v32, %v6336_v29  ;;  %v3197_v58 = vmul.f32 %v3183_v39, %v6338_v30  ;;  %v3248_v14 = vrot.slane %v6431_v10, 3 }
 0xc65   : > { %v3184_v15 = vrot.slane %v5280_v41, 5  ;;  %v3388_v47 = vpop.permute.xlu1 %3387 }
 0xc66   : > { %v6439_v16 = vadd.f32 %v3213_v17, %v3196_v42  ;;  %v6441_v51 = vadd.f32 %v3215_v7, %v3197_v58  ;;  %v3249_v30 = vsel %vm576_vm2, %v3247_v35, %v3248_v14  ;;  %v4461_v7 = vld [vmem:[%s6670_s8 + $0x68] sm:$0xff] }
 0xc67   : > { %v3185_v53 = vsel %vm795_vm7, %v3182_v31, %v3184_v15  ;;  %v3187_v33 = vsel %vm795_vm7, %v3184_v15, %v3186_v18  ;;  %v3393_v0 = vpop.permute.xlu0 %3392 }
 0xc68   : > { %v3250_v54 = vrot.slane %v6439_v16, 3  ;;  %v3198_v24 = vmul.f32 %v3185_v53, %v6347_v34  ;;  %v3199_v29 = vmul.f32 %v3187_v33, %v6349_v8  ;;  %v3252_v26 = vrot.slane %v6441_v51, 3 }
 0xc69   : > { %v3398_v35 = vpop.permute.xlu1 %3397 }
 0xc6a   : > { %v6450_v40 = vadd.f32 %v3217_v19, %v3198_v24  ;;  %v6452_v55 = vadd.f32 %v3219_v21, %v3199_v29  ;;  %v3251_v23 = vsel %vm576_vm2, %v3248_v14, %v3250_v54  ;;  %v3253_v34 = vsel %vm576_vm2, %v3250_v54, %v3252_v26  ;;  %v4470_v19 = vld [vmem:[%s6670_s8 + $0xb0] sm:$0xff]  ;;  %v4471_v21 = vld [vmem:[%s6670_s8 + $0xb8] sm:$0x3] }
 0xc6b   : > { %v5086_v60 = vpack.c.bf16 %v3251_v23, %v3249_v30 }
 0xc6c   : > { %v3254_v38 = vrot.slane %v6450_v40, 3  ;;  %v3256_v61 = vrot.slane %v6452_v55, 3 }
 0xc6d   : > { %5087 = vmatpush3.bf16.msra.mxu1 %v5086_v60 }
 0xc6e   : > { %5088 = vmatprep.subr.bf16.mxu1 %v5354_v44  ;;  %v3255_v8 = vsel %vm576_vm2, %v3252_v26, %v3254_v38  ;;  %v3257_v63 = vsel %vm576_vm2, %v3254_v38, %v3256_v61 }
 0xc6f   : > { %v5089_v62 = vpack.c.bf16 %v3255_v8, %v3253_v34  ;;  %v5092_v36 = vpack.c.bf16 %v3256_v61, %v3257_v63  ;;  %v3408_v61 = vpop.permute.xlu1 %3407 }
 0xc71   : > { %5090 = vmatpush3.bf16.msra.mxu1 %v5089_v62 }
 0xc72   : > { %5091 = vmatprep.subr.bf16.mxu1 %v5354_v44 }
 0xc75   : > { %5094 = vmatpush3.bf16.msk.msra.mxu1 %vm5746_vm4, %v5092_v36 }
 0xc78   : > { %4956 = vmatmul.mubr.msk.f32.vlgmr.msra.gmra.mrb[42].mxu1 %vm593_vm5, %v4456_v4 }
 0xc79   : > { %4960 = vmatprep.mubr.msk.f32.mxu1 %vm758_vm6, %v4460_v5 }
 0xd4b   : > { %v3334_v6 = vpop.f32.mrb[42].mxu1 }
 0xd4c   : > { %v3335_v46 = vadd.f32 %v3334_v6, %v3239_v50  ;;  %v4957_v49 = vpop.f32.mrb[43].mxu1 }
 0xd4e   : > { %v6473_v17 = vadd.f32 %v3335_v46, %v6370_v56  ;;  %v4463_v56 = vld [vmem:[%s6670_s8 + $0x78] sm:$0xff] }
 0xd50   : > { %4958 = vmatprep.subr.msk.mxu1 %vm795_vm7, %v6473_v17 }
 0xd51   : > { %4959 = vmatpush3.msk.msra.mxu1 %vm795_vm7, %v6473_v17 }
 0xd52   : > { %4961 = vmatmul.mubr.msk.f32.vlgmr.msra.gmra.mrb[44].mxu1 %vm758_vm6, %v4461_v7  ;;  %5095 = vmatprep.subr.bf16.mxu1 %v5354_v44 }
 0xd53   : > { %4963 = vmatprep.mubr.msk.f32.mxu1 %vm758_vm6, %v4462_v9 }
 0xd56   : > { %4964 = vmatmul.mubr.msk.f32.gmra.mrb[46].mxu1 %vm758_vm6, %v4463_v56 }
 0xd57   : > { %4966 = vmatprep.mubr.msk.f32.mxu1 %vm758_vm6, %v4464_v45 }
 0xd5a   : > { %4967 = vmatmul.mubr.msk.f32.gmra.mrb[48].mxu1 %vm758_vm6, %v4465_v28 }
 0xd5b   : > { %4969 = vmatprep.mubr.msk.f32.mxu1 %vm758_vm6, %v4466_v12 }
 0xd5e   : > { %4970 = vmatmul.mubr.msk.f32.gmra.mrb[50].mxu1 %vm758_vm6, %v4467_v13 }
 0xd5f   : > { %4972 = vmatprep.mubr.msk.f32.mxu1 %vm758_vm6, %v4468_v37 }
 0xd62   : > { %4973 = vmatmul.mubr.msk.f32.gmra.mrb[52].mxu1 %vm758_vm6, %v4469_v57  ;;  %v3418_v57 = vpop.permute.xlu1 %3417 }
 0xd63   : > { %4975 = vmatprep.mubr.msk.f32.mxu1 %vm758_vm6, %v4470_v19 }
 0xd66   : > { %4976 = vmatmul.mubr.msk.f32.gmra.mrb[54].mxu1 %vm758_vm6, %v4471_v21 }
 0xd67   : > { %4990 = vmatprep.mubr.msk.f32.mxu1 %vm5355_vm1, %v5356_v48  ;;  %v3403_v48 = vpop.permute.xlu0 %3402 }
 0xd6b   : > { %v3413_v23 = vpop.permute.xlu0 %3412 }
 0xd6f   : > { %v3423_v28 = vpop.permute.xlu0 %3422 }
 0xe25   : > { %v4962_v20 = vpop.f32.mrb[44].mxu1 }
 0xe26   : > { %v3536_v43 = vadd.f32 %v4962_v20, %v3373_v3  ;;  %v3530_v27 = vpop.f32.mrb[45].mxu1 }
 0xe27   : > { %v3531_v31 = vadd.f32 %v3530_v27, %v3368_v22 }
 0xe28   : > { %v3590_v52 = vmul.f32 0.5, %v3536_v43 }
 0xe29   : > { %v3589_v11 = vmul.f32 0.5, %v3531_v31  ;;  %v4965_v32 = vpop.f32.mrb[46].mxu1 }
 0xe2a   : > { %5281 = vtanh.f32 %v3590_v52  ;;  %v3546_v39 = vadd.f32 %v4965_v32, %v3383_v1  ;;  %v3540_v41 = vpop.f32.mrb[47].mxu1 }
 0xe2b   : > { %5283 = vtanh.f32 %v3589_v11  ;;  %v3541_v18 = vadd.f32 %v3540_v41, %v3378_v2 }
 0xe2c   : > { %v3592_v42 = vmul.f32 0.5, %v3546_v39 }
 0xe2d   : > { %v3591_v58 = vmul.f32 0.5, %v3541_v18  ;;  %v4968_v15 = vpop.f32.mrb[48].mxu1 }
 0xe2e   : > { %5285 = vtanh.f32 %v3592_v42  ;;  %v3556_v14 = vadd.f32 %v4968_v15, %v3393_v0  ;;  %v3550_v53 = vpop.f32.mrb[49].mxu1 }
 0xe2f   : > { %5287 = vtanh.f32 %v3591_v58  ;;  %v3551_v33 = vadd.f32 %v3550_v53, %v3388_v47 }
 0xe30   : > { %v3594_v54 = vmul.f32 0.5, %v3556_v14  ;;  %v3649_v63 = vrot.slane %v3556_v14, 2 }
 0xe31   : > { %v3593_v24 = vmul.f32 0.5, %v3551_v33  ;;  %v4971_v29 = vpop.f32.mrb[50].mxu1 }
 0xe32   : > { %5289 = vtanh.f32 %v3594_v54  ;;  %v3566_v30 = vadd.f32 %v4971_v29, %v3403_v48  ;;  %v3560_v26 = vpop.f32.mrb[51].mxu1 }
 0xe33   : > { %5291 = vtanh.f32 %v3593_v24  ;;  %v3561_v60 = vadd.f32 %v3560_v26, %v3398_v35 }
 0xe34   : > { %v5282_v38 = vpop.eup %5281  ;;  %v3652_v34 = vrot.slane %v3566_v30, 2 }
 0xe35   : > { %v5284_v8 = vpop.eup %5283  ;;  %v3603_v62 = vmul.f32 1.442695, %v5282_v38  ;;  %v3650_v36 = vrot.slane %v3561_v60, 2  ;;  %v4974_v4 = vpop.f32.mrb[52].mxu1 }
 0xe36   : > { %v3601_v5 = vmul.f32 1.442695, %v5284_v8  ;;  %v3576_v50 = vadd.f32 %v4974_v4, %v3413_v23  ;;  %v3570_v6 = vpop.f32.mrb[53].mxu1 }
 0xe37   : > { %5293 = vpow2.f32 %v3603_v62  ;;  %v3651_v46 = vsel %vm984_vm8, %v3649_v63, %v3650_v36  ;;  %v3653_v49 = vsel %vm984_vm8, %v3650_v36, %v3652_v34  ;;  %v3571_v7 = vadd.f32 %v3570_v6, %v3408_v61 }
 0xe38   : > { %v5286_v9 = vpop.eup %5285  ;;  %5295 = vpow2.f32 %v3601_v5  ;;  %v3656_v56 = vrot.slane %v3576_v50, 2 }
 0xe39   : > { %v5288_v45 = vpop.eup %5287  ;;  %v3607_v12 = vmul.f32 1.442695, %v5286_v9  ;;  %v3654_v13 = vrot.slane %v3571_v7, 2  ;;  %v4977_v37 = vpop.f32.mrb[54].mxu1 }
 0xe3a   : > { %v3605_v19 = vmul.f32 1.442695, %v5288_v45  ;;  %v3586_v21 = vadd.f32 %v4977_v37, %v3423_v28  ;;  %v3580_v3 = vpop.f32.mrb[55].mxu1  ;;  %v3681_v37 = vpop.permute.xlu1 %3680 }
 0xe3b   : > { %5297 = vpow2.f32 %v3607_v12  ;;  %v3655_v22 = vsel %vm984_vm8, %v3652_v34, %v3654_v13  ;;  %v3657_v1 = vsel %vm984_vm8, %v3654_v13, %v3656_v56  ;;  %v3581_v2 = vadd.f32 %v3580_v3, %v3418_v57  ;;  %v4497_v12 = vld [vmem:[%s6668_s6 + $0x8] sm:$0x7]  ;;  %v4501_v13 = vld [vmem:[%s6670_s8 + $0xc0] sm:$0xff]  ;;  %v4503_v3 = vld [vmem:[%s6670_s8 + $0xd0] sm:$0xff] }
 0xe3c   : > { %v5290_v20 = vpop.eup %5289  ;;  %5299 = vpow2.f32 %v3605_v19  ;;  %v3660_v43 = vrot.slane %v3586_v21, 2  ;;  %4995 = vmatprep.mubr.msk.f32.mxu0 %vm758_vm6, %v4501_v13 }
 0xe3d   : > { %v5292_v27 = vpop.eup %5291  ;;  %v3611_v0 = vmul.f32 1.442695, %v5290_v20  ;;  %v3658_v31 = vrot.slane %v3581_v2, 2  ;;  %v4507_v2 = vld [vmem:[%s6670_s8 + $0xf0] sm:$0xff]  ;;  %v4508_v20 = vld [vmem:[%s6670_s8 + $0xf8] sm:$0xff] }
 0xe3e   : > { %v3609_v47 = vmul.f32 1.442695, %v5292_v27  ;;  %v4510_v27 = vld [vmem:[%s6670_s8 + $0x108] sm:$0xff] }
 0xe3f   : > { %5301 = vpow2.f32 %v3611_v0  ;;  %v3659_v52 = vsel %vm984_vm8, %v3656_v56, %v3658_v31  ;;  %v3661_v11 = vsel %vm984_vm8, %v3658_v31, %v3660_v43  ;;  %v4509_v43 = vld [vmem:[%s6670_s8 + $0x100] sm:$0xff]  ;;  %v4511_v0 = vld [vmem:[%s6670_s8 + $0x110] sm:$0xff]  ;;  %v4512_v31 = vld [vmem:[%s6670_s8 + $0x118] sm:$0x3] }
 0xe40   : > { %5303 = vpow2.f32 %v3609_v47  ;;  %v3815_v47 = vpop.permute.xlu1 %3814 }
 0xe41   : > { %v5294_v32 = vpop.eup %5293 }
 0xe42   : > { %v5296_v39 = vpop.eup %5295  ;;  %v3620_v41 = vrot.slane %v5294_v32, 5 }
 0xe43   : > { %v3619_v18 = vrot.slane %v5296_v39, 5 }
 0xe45   : > { %v5298_v42 = vpop.eup %5297  ;;  %v3621_v48 = vsel %vm795_vm7, %v3619_v18, %v3620_v41  ;;  %v3636_v58 = vmul.f32 %v3619_v18, %v6429_v25 }
 0xe46   : > { %v5300_v15 = vpop.eup %5299  ;;  %v3624_v35 = vrot.slane %v5298_v42, 5  ;;  %v3637_v14 = vmul.f32 %v3621_v48, %v6431_v10 }
 0xe47   : > { %v3622_v53 = vrot.slane %v5300_v15, 5  ;;  %v6535_v33 = vadd.f32 %v3651_v46, %v3636_v58 }
 0xe48   : > { %v6537_v54 = vadd.f32 %v3653_v49, %v3637_v14 }
 0xe49   : > { %v5302_v24 = vpop.eup %5301  ;;  %v3623_v29 = vsel %vm795_vm7, %v3620_v41, %v3622_v53  ;;  %v3625_v30 = vsel %vm795_vm7, %v3622_v53, %v3624_v35  ;;  %v3689_v61 = vrot.slane %v6535_v33, 3 }
 0xe4a   : > { %v5304_v26 = vpop.eup %5303  ;;  %v3628_v23 = vrot.slane %v5302_v24, 5  ;;  %v3638_v60 = vmul.f32 %v3623_v29, %v6439_v16  ;;  %v3639_v25 = vmul.f32 %v3625_v30, %v6441_v51  ;;  %v3690_v10 = vrot.slane %v6537_v54, 3 }
 0xe4b   : > { %v3626_v38 = vrot.slane %v5304_v26, 5 }
 0xe4c   : > { %v6545_v34 = vadd.f32 %v3655_v22, %v3638_v60  ;;  %v6547_v8 = vadd.f32 %v3657_v1, %v3639_v25  ;;  %v3691_v51 = vsel %vm576_vm2, %v3689_v61, %v3690_v10  ;;  %v4505_v22 = vld [vmem:[%s6670_s8 + $0xe0] sm:$0xff]  ;;  %v4506_v1 = vld [vmem:[%s6670_s8 + $0xe8] sm:$0xff] }
 0xe4d   : > { %v3627_v62 = vsel %vm795_vm7, %v3624_v35, %v3626_v38  ;;  %v3629_v63 = vsel %vm795_vm7, %v3626_v38, %v3628_v23 }
 0xe4e   : > { %v3692_v36 = vrot.slane %v6545_v34, 3  ;;  %v3640_v4 = vmul.f32 %v3627_v62, %v6450_v40  ;;  %v3641_v16 = vmul.f32 %v3629_v63, %v6452_v55  ;;  %v3694_v5 = vrot.slane %v6547_v8, 3 }
 0xe50   : > { %v6556_v50 = vadd.f32 %v3659_v52, %v3640_v4  ;;  %v6558_v6 = vadd.f32 %v3661_v11, %v3641_v16  ;;  %v3693_v46 = vsel %vm576_vm2, %v3690_v10, %v3692_v36  ;;  %v3695_v40 = vsel %vm576_vm2, %v3692_v36, %v3694_v5  ;;  %v3810_v52 = vpop.permute.xlu0 %3809  ;;  %v3825_v11 = vpop.permute.xlu1 %3824 }
 0xe51   : > { %v5096_v49 = vpack.c.bf16 %v3693_v46, %v3691_v51 }
 0xe52   : > { %v3696_v7 = vrot.slane %v6556_v50, 3  ;;  %v3698_v9 = vrot.slane %v6558_v6, 3 }
 0xe53   : > { %5097 = vmatpush3.bf16.msra.mxu1 %v5096_v49 }
 0xe54   : > { %5098 = vmatprep.subr.bf16.mxu1 %v5354_v44  ;;  %v3697_v55 = vsel %vm576_vm2, %v3694_v5, %v3696_v7  ;;  %v3699_v45 = vsel %vm576_vm2, %v3696_v7, %v3698_v9  ;;  %v3820_v32 = vpop.permute.xlu0 %3819  ;;  %v3835_v42 = vpop.permute.xlu1 %3834 }
 0xe55   : > { %v5099_v56 = vpack.c.bf16 %v3697_v55, %v3695_v40  ;;  %v5102_v28 = vpack.c.bf16 %v3698_v9, %v3699_v45 }
 0xe57   : > { %5100 = vmatpush3.bf16.msra.mxu1 %v5099_v56 }
 0xe58   : > { %5101 = vmatprep.subr.bf16.mxu1 %v5354_v44  ;;  %v3830_v58 = vpop.permute.xlu0 %3829  ;;  %v3845_v26 = vpop.permute.xlu1 %3844 }
 0xe5b   : > { %5104 = vmatpush3.bf16.msk.msra.mxu1 %vm5746_vm4, %v5102_v28 }
 0xe5c   : > { %v3840_v25 = vpop.permute.xlu0 %3839  ;;  %v3855_v51 = vpop.permute.xlu1 %3854 }
 0xe5e   : > { %4991 = vmatmul.mubr.msk.f32.vlgmr.msra.gmra.mrb[56].mxu1 %vm593_vm5, %v4497_v12 }
 0xe60   : > { %v3850_v49 = vpop.permute.xlu0 %3849 }
 0xf31   : > { %v3776_v57 = vpop.f32.mrb[56].mxu1 }
 0xf32   : > { %v3777_v19 = vadd.f32 %v3776_v57, %v3681_v37  ;;  %v4992_v44 = vpop.f32.mrb[57].mxu1 }
 0xf34   : > { %v6579_v21 = vadd.f32 %v3777_v19, %v6473_v17  ;;  %v4504_v17 = vld [vmem:[%s6670_s8 + $0xd8] sm:$0xff] }
 0xf36   : > { %4993 = vmatprep.subr.msk.mxu0 %vm795_vm7, %v6579_v21 }
 0xf37   : > { %4994 = vmatpush3.msk.msra.mxu0 %vm795_vm7, %v6579_v21 }
 0xf38   : > { %4996 = vmatmul.mubr.msk.f32.vlgmr.msra.gmra.mrb[48].mxu0 %vm758_vm6, %v4502_v59 }
 0xf39   : > { %4998 = vmatprep.mubr.msk.f32.mxu0 %vm758_vm6, %v4503_v3 }
 0xf3c   : > { %4999 = vmatmul.mubr.msk.f32.gmra.mrb[50].mxu0 %vm758_vm6, %v4504_v17  ;;  %v3865_v17 = vpop.permute.xlu1 %3864 }
 0xf3d   : > { %5001 = vmatprep.mubr.msk.f32.mxu0 %vm758_vm6, %v4505_v22 }
 0xf40   : > { %5002 = vmatmul.mubr.msk.f32.gmra.mrb[52].mxu0 %vm758_vm6, %v4506_v1 }
 0xf41   : > { %5004 = vmatprep.mubr.msk.f32.mxu0 %vm758_vm6, %v4507_v2 }
 0xf44   : > { %5005 = vmatmul.mubr.msk.f32.gmra.mrb[54].mxu0 %vm758_vm6, %v4508_v20  ;;  %v3860_v20 = vpop.permute.xlu0 %3859 }
 0xf45   : > { %5007 = vmatprep.mubr.msk.f32.mxu0 %vm758_vm6, %v4509_v43 }
 0xf48   : > { %5008 = vmatmul.mubr.msk.f32.gmra.mrb[56].mxu0 %vm758_vm6, %v4510_v27 }
 0xf49   : > { %5010 = vmatprep.mubr.msk.f32.mxu0 %vm758_vm6, %v4511_v0 }
 0xf4c   : > { %5011 = vmatmul.mubr.msk.f32.gmra.mrb[58].mxu0 %vm758_vm6, %v4512_v31 }
0x100b   : > { %v4997_v39 = vpop.f32.mrb[48].mxu0 }
0x100c   : > { %v3978_v41 = vadd.f32 %v4997_v39, %v3815_v47  ;;  %v3972_v18 = vpop.f32.mrb[49].mxu0 }
0x100d   : > { %v3973_v48 = vadd.f32 %v3972_v18, %v3810_v52 }
0x100e   : > { %v4032_v15 = vmul.f32 0.5, %v3978_v41 }
0x100f   : > { %v4031_v35 = vmul.f32 0.5, %v3973_v48  ;;  %v5000_v14 = vpop.f32.mrb[50].mxu0 }
0x1010   : > { %5305 = vtanh.f32 %v4032_v15  ;;  %v3988_v53 = vadd.f32 %v5000_v14, %v3825_v11  ;;  %v3982_v24 = vpop.f32.mrb[51].mxu0 }
0x1011   : > { %5307 = vtanh.f32 %v4031_v35  ;;  %v3983_v29 = vadd.f32 %v3982_v24, %v3820_v32 }
0x1012   : > { %v4034_v30 = vmul.f32 0.5, %v3988_v53 }
0x1013   : > { %v4033_v23 = vmul.f32 0.5, %v3983_v29  ;;  %v5003_v60 = vpop.f32.mrb[52].mxu0 }
0x1014   : > { %5309 = vtanh.f32 %v4034_v30  ;;  %v3998_v38 = vadd.f32 %v5003_v60, %v3835_v42  ;;  %v3992_v61 = vpop.f32.mrb[53].mxu0 }
0x1015   : > { %5311 = vtanh.f32 %v4033_v23  ;;  %v3993_v10 = vadd.f32 %v3992_v61, %v3830_v58 }
0x1016   : > { %v4036_v62 = vmul.f32 0.5, %v3998_v38  ;;  %v4091_v55 = vrot.slane %v3998_v38, 2 }
0x1017   : > { %v4035_v63 = vmul.f32 0.5, %v3993_v10  ;;  %v5006_v36 = vpop.f32.mrb[54].mxu0 }
0x1018   : > { %5313 = vtanh.f32 %v4036_v62  ;;  %v4008_v4 = vadd.f32 %v5006_v36, %v3845_v26  ;;  %v4002_v16 = vpop.f32.mrb[55].mxu0 }
0x1019   : > { %5315 = vtanh.f32 %v4035_v63  ;;  %v4003_v5 = vadd.f32 %v4002_v16, %v3840_v25 }
0x101a   : > { %v5306_v46 = vpop.eup %5305  ;;  %v4094_v7 = vrot.slane %v4008_v4, 2 }
0x101b   : > { %v5308_v9 = vpop.eup %5307  ;;  %v4045_v40 = vmul.f32 1.442695, %v5306_v46  ;;  %v4092_v56 = vrot.slane %v4003_v5, 2  ;;  %v5009_v45 = vpop.f32.mrb[56].mxu0 }
0x101c   : > { %v4043_v28 = vmul.f32 1.442695, %v5308_v9  ;;  %v4018_v12 = vadd.f32 %v5009_v45, %v3855_v51  ;;  %v4012_v13 = vpop.f32.mrb[57].mxu0 }
0x101d   : > { %5317 = vpow2.f32 %v4045_v40  ;;  %v4093_v37 = vsel %vm984_vm8, %v4091_v55, %v4092_v56  ;;  %v4095_v57 = vsel %vm984_vm8, %v4092_v56, %v4094_v7  ;;  %v4013_v19 = vadd.f32 %v4012_v13, %v3850_v49 }
0x101e   : > { %v5310_v44 = vpop.eup %5309  ;;  %5319 = vpow2.f32 %v4043_v28  ;;  %v4098_v59 = vrot.slane %v4018_v12, 2 }
0x101f   : > { %v5312_v3 = vpop.eup %5311  ;;  %v4049_v22 = vmul.f32 1.442695, %v5310_v44  ;;  %v4096_v1 = vrot.slane %v4013_v19, 2  ;;  %v5012_v2 = vpop.f32.mrb[58].mxu0 }
0x1020   : > { %v4047_v43 = vmul.f32 1.442695, %v5312_v3  ;;  %v4028_v27 = vadd.f32 %v5012_v2, %v3865_v17  ;;  %v4022_v0 = vpop.f32.mrb[59].mxu0 }
0x1021   : > { %5321 = vpow2.f32 %v4049_v22  ;;  %v4097_v31 = vsel %vm984_vm8, %v4094_v7, %v4096_v1  ;;  %v4099_v47 = vsel %vm984_vm8, %v4096_v1, %v4098_v59  ;;  %v4023_v52 = vadd.f32 %v4022_v0, %v3860_v20 }
0x1022   : > { %v5314_v11 = vpop.eup %5313  ;;  %5323 = vpow2.f32 %v4047_v43  ;;  %v4102_v32 = vrot.slane %v4028_v27, 2 }
0x1023   : > { %v5316_v39 = vpop.eup %5315  ;;  %v4053_v41 = vmul.f32 1.442695, %v5314_v11  ;;  %v4100_v18 = vrot.slane %v4023_v52, 2 }
0x1024   : > { %v4051_v42 = vmul.f32 1.442695, %v5316_v39 }
0x1025   : > { %5325 = vpow2.f32 %v4053_v41  ;;  %v4101_v48 = vsel %vm984_vm8, %v4098_v59, %v4100_v18  ;;  %v4103_v58 = vsel %vm984_vm8, %v4100_v18, %v4102_v32 }
0x1026   : > { %5327 = vpow2.f32 %v4051_v42 }
0x1027   : > { %v5318_v15 = vpop.eup %5317 }
0x1028   : > { %v5320_v35 = vpop.eup %5319  ;;  %v4062_v14 = vrot.slane %v5318_v15, 5 }
0x1029   : > { %v4061_v53 = vrot.slane %v5320_v35, 5 }
0x102b   : > { %v5322_v24 = vpop.eup %5321  ;;  %v4063_v29 = vsel %vm795_vm7, %v4061_v53, %v4062_v14  ;;  %v4078_v30 = vmul.f32 %v4061_v53, %v6535_v33 }
0x102c   : > { %v5324_v26 = vpop.eup %5323  ;;  %v4066_v23 = vrot.slane %v5322_v24, 5  ;;  %v4079_v60 = vmul.f32 %v4063_v29, %v6537_v54 }
0x102d   : > { %v4064_v25 = vrot.slane %v5324_v26, 5  ;;  %v4110_v38 = vadd.f32 %v4093_v37, %v4078_v30 }
0x102e   : > { %v4111_v61 = vadd.f32 %v4095_v57, %v4079_v60 }
0x102f   : > { %v5326_v10 = vpop.eup %5325  ;;  %v4116_v62 = vsel %vm795_vm7, %v6579_v21, %v4110_v38  ;;  %v4065_v63 = vsel %vm795_vm7, %v4062_v14, %v4064_v25  ;;  %v4067_v33 = vsel %vm795_vm7, %v4064_v25, %v4066_v23 }
0x1030   : > { %v5328_v36 = vpop.eup %5327  ;;  %v4070_v4 = vrot.slane %v5326_v10, 5  ;;  %4117 = vst [vmem:[%s429_s24] sm:$0xff] %v4116_v62  ;;  %4118 = vst [vmem:[%s429_s24 + $0x8] sm:$0xff] %v4111_v61  ;;  %v4080_v54 = vmul.f32 %v4065_v63, %v6545_v34  ;;  %v4081_v16 = vmul.f32 %v4067_v33, %v6547_v8 }
0x1031   : > { %v4068_v51 = vrot.slane %v5328_v36, 5 }
0x1032   : > { %v4112_v5 = vadd.f32 %v4097_v31, %v4080_v54  ;;  %v4113_v46 = vadd.f32 %v4099_v47, %v4081_v16 }
0x1033   : > { %v4069_v49 = vsel %vm795_vm7, %v4066_v23, %v4068_v51  ;;  %v4071_v7 = vsel %vm795_vm7, %v4068_v51, %v4070_v4 }
0x1034   : > { %4119 = vst [vmem:[%s429_s24 + $0x10] sm:$0xff] %v4112_v5  ;;  %4120 = vst [vmem:[%s429_s24 + $0x18] sm:$0xff] %v4113_v46  ;;  %v4082_v21 = vmul.f32 %v4069_v49, %v6556_v50  ;;  %v4083_v9 = vmul.f32 %v4071_v7, %v6558_v6 }
0x1036   : > { %v4114_v40 = vadd.f32 %v4101_v48, %v4082_v21  ;;  %v4115_v55 = vadd.f32 %v4103_v58, %v4083_v9 }
0x1038   : > { %4121 = vst [vmem:[%s429_s24 + $0x20] sm:$0xff] %v4114_v40  ;;  %4122 = vst [vmem:[%s429_s24 + $0x28] sm:$0xff] %v4115_v55 }
0x1039 PF: > { %s22_s19 = sadd.s32 1, %s5351_s19   ;;  %s6676_s17 = smov %s5347_s18 }
0x103a   : > { %p19_p5 = scmp.ge.s32.totalorder %s22_s19, 4   ;;  %s6677_s18 = smov %s6679_s20 }
0x103c   :  { %21 = sbr.rel (!%p19_p5) target bundleno = 2 (0x2), region = 126 }

</bundles_post_ra>
